<compile_context>
chip_gen: v7x
topology: tpu7x:2x2x1
jax: 0.10.0
libtpu: 0.0.40
codegen_flags: <defaults>
</compile_context>

<pallas_src>
import functools

import jax
import jax.numpy as jnp
from jax import lax
from jax.experimental import pallas as pl
from jax.experimental.pallas import tpu as pltpu


def _round_up(x, m):
    return ((x + m - 1) // m) * m


def _pick_tile_ho(ho, wo, target_rows=1024):
    """Largest divisor of `ho` whose tile has ~<= target_rows output rows."""
    cap = max(1, target_rows // max(wo, 1))
    if cap >= ho:
        return ho
    for th in range(min(cap, ho), 0, -1):
        if ho % th == 0:
            return th
    return ho


def _vmem_bytes_estimate(hp, wp, c, tile_ho, wo, oc_pad, k, in_bytes, out_bytes):
    """Rough (layout-padded) VMEM footprint of one grid step, double-buffered."""
    ru = _round_up
    x_blk = hp * ru(wp, 8) * ru(c, 128) * in_bytes
    w_blk = k * k * ru(c, 8) * ru(2 * oc_pad, 128) * in_bytes
    b_blk = 8 * ru(2 * oc_pad, 128) * 4
    o_blk = tile_ho * ru(wo, 8) * ru(oc_pad, 128) * out_bytes
    acc = ru(tile_ho * wo, 8) * ru(2 * oc_pad, 128) * 4
    return 2 * (x_blk + w_blk + b_blk + o_blk) + 2 * acc


# -----------------------------------------------------------------------------
# Fused conv + Max-Feature-Map kernel.
#
# One grid step computes the (tile_ho, Wo, oc_pad) output block of one image:
# fused im2col (VMEM slicing of the k*k shifted windows) + k*k MXU dots with
# f32 accumulation + bias + element-wise max of the two channel halves.
# -----------------------------------------------------------------------------
def _mfm_conv_kernel(x_ref, w_ref, b_ref, o_ref, *, k, stride, tile_ho, wo, oc_pad):
    # x_ref: (1, Hp, Wp, C)            compute dtype (bf16 by default)
    # w_ref: (k*k, C, 2*oc_pad)        compute dtype
    # b_ref: (1, 2*oc_pad)             f32
    # o_ref: (1, tile_ho, Wo, oc_pad)  out dtype
    t = pl.program_id(1)
    h0 = t * (tile_ho * stride)          # first padded-input row of this tile
    m = tile_ho * wo

    acc = jnp.zeros((m, 2 * oc_pad), jnp.float32)
    for kh in range(k):                  # k*k unrolled shifted-window dots
        for kw in range(k):
            if stride == 1:
                xs = x_ref[0, pl.ds(h0 + kh, tile_ho), pl.ds(kw, wo), :]
            else:
                xs = x_ref[0, pl.ds(h0 + kh, tile_ho, stride),
                           pl.ds(kw, wo, stride), :]
            acc = acc + jnp.dot(xs.reshape(m, xs.shape[-1]),
                                w_ref[kh * k + kw],
                                preferred_element_type=jnp.float32)

    acc = acc + b_ref[...]                                  # broadcast bias
    out = jnp.maximum(acc[:, :oc_pad], acc[:, oc_pad:])     # Max-Feature-Map
    o_ref[0] = out.reshape(tile_ho, wo, oc_pad).astype(o_ref.dtype)


def _mfm_conv2d(x_pad_nhwc, w_fused, b_fused, *, k, stride, ho, wo, oc_pad,
                out_dtype, tile_ho=None):
    """x_pad_nhwc: (N, Hp, Wp, C) spatially pre-padded, compute dtype."""
    n, hp, wp, c = x_pad_nhwc.shape
    if tile_ho is None:
        tile_ho = _pick_tile_ho(ho, wo)
    assert ho % tile_ho == 0, "tile_ho must divide Ho"
    n_ht = ho // tile_ho

    kernel = functools.partial(_mfm_conv_kernel, k=k, stride=stride,
                               tile_ho=tile_ho, wo=wo, oc_pad=oc_pad)

    est = _vmem_bytes_estimate(hp, wp, c, tile_ho, wo, oc_pad, k,
                               x_pad_nhwc.dtype.itemsize,
                               jnp.dtype(out_dtype).itemsize)
    # Modest scoped limit (v7x has only 64 MiB physical VMEM); raise it only if
    # this kernel's blocks genuinely need the headroom (plentiful on v5e/v6e).
    vmem_limit = int(min(max(32 << 20, est + (8 << 20)), 100 << 20))

    return pl.pallas_call(
        kernel,
        out_shape=jax.ShapeDtypeStruct((n, ho, wo, oc_pad), out_dtype),
        grid_spec=pltpu.PrefetchScalarGridSpec(
            num_scalar_prefetch=0,
            grid=(n, n_ht),
            in_specs=[
                # Whole padded image; constant in t -> fetched once per image.
                pl.BlockSpec((1, hp, wp, c), lambda i, t: (i, 0, 0, 0)),
                # Fused weights / bias: constant index -> stay resident.
                pl.BlockSpec((k * k, c, 2 * oc_pad), lambda i, t: (0, 0, 0)),
                pl.BlockSpec((1, 2 * oc_pad), lambda i, t: (0, 0)),
            ],
            out_specs=pl.BlockSpec((1, tile_ho, wo, oc_pad),
                                   lambda i, t: (i, t, 0, 0)),
        ),
        compiler_params=pltpu.CompilerParams(
            dimension_semantics=("parallel", "parallel"),
            vmem_limit_bytes=vmem_limit,
        ),
    )(x_pad_nhwc, w_fused, b_fused)


class ConvLayerMFM:
    """JAX/Pallas equivalent of the PyTorch conv_layer_mfm module.

    compute_dtype: dtype the conv runs in on the MXU (bfloat16 default, with
      float32 accumulation). Pass jnp.float32 for full PyTorch-precision math.
    """

    def __init__(self, in_channels, out_channels, kernel_size, stride, padding,
                 key=jax.random.PRNGKey(0), compute_dtype=jnp.bfloat16):
        self.in_channels = in_channels
        self.out_channels = out_channels
        self.k = kernel_size
        self.stride = stride
        self.padding = padding
        self.compute_dtype = compute_dtype

        kw_, kb_ = jax.random.split(key)
        fan_in = in_channels * kernel_size * kernel_size
        bound = 1.0 / (fan_in ** 0.5)
        # PyTorch Conv2d params: weight (2*oc, C, k, k), uniform(-bound, bound).
        self.weight = jax.random.uniform(
            kw_, (2 * out_channels, in_channels, kernel_size, kernel_size),
            minval=-bound, maxval=bound, dtype=jnp.float32)
        self.bias = jax.random.uniform(
            kb_, (2 * out_channels,), minval=-bound, maxval=bound,
            dtype=jnp.float32)

        # Pre-fuse the two conv halves; pad output channels to 128 lanes only
        # when needed (skip padding + post-slice when oc % 128 == 0).
        oc = out_channels
        oc_pad = oc if oc % 128 == 0 else _round_up(oc, 128)
        self._oc_pad = oc_pad

        def prep_half(wh):                           # (oc, C, k, k) -> (k*k, C, oc_pad)
            wt = jnp.transpose(wh, (2, 3, 1, 0))     # (kh, kw, C, oc)
            wt = wt.reshape(kernel_size * kernel_size, in_channels, oc)
            return jnp.pad(wt, ((0, 0), (0, 0), (0, oc_pad - oc)))

        w1 = prep_half(self.weight[:oc])
        w2 = prep_half(self.weight[oc:])
        self._w_fused = jnp.concatenate([w1, w2], axis=-1).astype(compute_dtype)

        b1 = jnp.pad(self.bias[:oc], (0, oc_pad - oc))
        b2 = jnp.pad(self.bias[oc:], (0, oc_pad - oc))
        self._b_fused = jnp.concatenate([b1, b2]).reshape(1, 2 * oc_pad)
        self._b_fused = self._b_fused.astype(jnp.float32)

    def __call__(self, x, *, channels_last=False, out_dtype=None, tile_ho=None):
        # x: (N, C_in, H, W) float32 — NCHW, matching PyTorch.
        n, c, h, w = x.shape
        k, s, p = self.k, self.stride, self.padding
        oc = self.out_channels
        ho = (h + 2 * p - k) // s + 1
        wo = (w + 2 * p - k) // s + 1
        if out_dtype is None:
            out_dtype = jnp.float32

        # NHWC + spatial zero-pad + compute-dtype cast: one cheap pass over the
        # small input (the k^2-inflated im2col array is never materialized).
        x_nhwc = jnp.transpose(x, (0, 2, 3, 1))
        x_pad = jnp.pad(x_nhwc, ((0, 0), (p, p), (p, p), (0, 0)))
        x_pad = x_pad.astype(self.compute_dtype)

        out = _mfm_conv2d(x_pad, self._w_fused, self._b_fused,
                          k=k, stride=s, ho=ho, wo=wo, oc_pad=self._oc_pad,
                          out_dtype=out_dtype, tile_ho=tile_ho)  # (N,Ho,Wo,oc_pad)
        if self._oc_pad != oc:
            out = out[..., :oc]                      # drop lane padding
        if channels_last:
            return out                               # NHWC (natural TPU layout)
        return jnp.transpose(out, (0, 3, 1, 2))      # NCHW (PyTorch semantics)


# -----------------------------------------------------------------------------
# Pure-JAX references for correctness checks.
# -----------------------------------------------------------------------------
def _reference(layer, x, *, use_bf16):
    w = layer.weight
    if use_bf16:
        x = x.astype(jnp.bfloat16)
        w = w.astype(jnp.bfloat16)
    y = lax.conv_general_dilated(
        x, w,
        window_strides=(layer.stride, layer.stride),
        padding=[(layer.padding, layer.padding)] * 2,
        dimension_numbers=("NCHW", "OIHW", "NCHW"),
        preferred_element_type=jnp.float32)
    y = y + layer.bias.reshape(1, -1, 1, 1)
    oc = layer.out_channels
    return jnp.maximum(y[:, :oc], y[:, oc:])


if __name__ == "__main__":
    key = jax.random.PRNGKey(0)
    kx, kp = jax.random.split(key)

    # Small shapes consistent with the module's forward.
    N, C_in, H, W = 2, 4, 16, 16
    out_channels, ksize, stride, padding = 8, 3, 1, 1

    x = jax.random.normal(kx, (N, C_in, H, W), dtype=jnp.float32)
    layer = ConvLayerMFM(C_in, out_channels, ksize, stride, padding, key=kp)

    out = jax.block_until_ready(layer(x))
    assert out.shape == (N, out_channels, H, W), out.shape

    # Tight check vs a reference with the same bf16-input / f32-acc numerics.
    ref_bf16 = jax.block_until_ready(_reference(layer, x, use_bf16=True))
    assert jnp.allclose(out, ref_bf16, atol=2e-3, rtol=2e-3), \
        "mismatch vs bf16-input reference"

    # Looser sanity check vs the full-f32 reference (kernel inputs are bf16).
    ref_f32 = jax.block_until_ready(_reference(layer, x, use_bf16=False))
    assert jnp.allclose(out, ref_f32, atol=1e-1, rtol=1e-1), \
        "mismatch vs f32 reference"

    # Exercise the h-tiled grid path (>= 2 steps per image).
    out_tiled = jax.block_until_ready(layer(x, tile_ho=8))
    assert jnp.allclose(out_tiled, ref_bf16, atol=2e-3, rtol=2e-3), \
        "mismatch with tile_ho=8"

    # Exercise the chained-layer fast path: NHWC bf16 output, no transpose.
    out_cl = jax.block_until_ready(
        layer(x, channels_last=True, out_dtype=jnp.bfloat16))
    assert out_cl.shape == (N, H, W, out_channels), out_cl.shape
    out_cl_nchw = jnp.transpose(out_cl.astype(jnp.float32), (0, 3, 1, 2))
    assert jnp.allclose(out_cl_nchw, ref_bf16, atol=2e-2, rtol=2e-2), \
        "mismatch in channels_last/bf16 path"

    print("KERNEL_OK")
</pallas_src>

<mosaic_0001>
module attributes {stable_mosaic.version = 11 : i64} {
  func.func @_mfm_conv_kernel(%arg0: i32, %arg1: i32, %arg2: memref<1x18x18x4xbf16, #tpu.memory_space<vmem>>, %arg3: memref<9x4x256xbf16, #tpu.memory_space<vmem>>, %arg4: memref<1x256xf32, #tpu.memory_space<vmem>>, %arg5: memref<1x16x16x128xf32, #tpu.memory_space<vmem>>) attributes {dimension_semantics = [#tpu.dimension_semantics<parallel>, #tpu.dimension_semantics<parallel>], iteration_bounds = array<i64: 2, 1>, scalar_prefetch = 0 : i64, scratch_operands = 0 : i64, tpu.core_type = #tpu.core_type<tc>, window_params = [{transform_indices = @transform_0, window_bounds = array<i64: 1, 18, 18, 4>}, {pipeline_mode = #tpu.pipeline_mode<synchronous>, transform_indices = @transform_1, window_bounds = array<i64: 9, 4, 256>}, {pipeline_mode = #tpu.pipeline_mode<synchronous>, transform_indices = @transform_2, window_bounds = array<i64: 1, 256>}, {transform_indices = @transform_3, window_bounds = array<i64: 1, 16, 16, 128>}]} {
    %c16_i32 = arith.constant 16 : i32
    %0 = arith.muli %arg1, %c16_i32 : i32
    %cst = arith.constant 0.000000e+00 : f32
    %1 = vector.broadcast %cst : f32 to vector<256x256xf32>
    %c0_i32 = arith.constant 0 : i32
    %2 = arith.addi %0, %c0_i32 : i32
    %c0 = arith.constant 0 : index
    %3 = arith.index_cast %2 : i32 to index
    %c0_0 = arith.constant 0 : index
    %c0_1 = arith.constant 0 : index
    %4 = vector.load %arg2[%c0, %3, %c0_0, %c0_1] : memref<1x18x18x4xbf16, #tpu.memory_space<vmem>>, vector<1x16x16x4xbf16>
    %5 = vector.shape_cast %4 : vector<1x16x16x4xbf16> to vector<16x16x4xbf16>
    %6 = vector.shape_cast %5 : vector<16x16x4xbf16> to vector<256x4xbf16>
    %c0_2 = arith.constant 0 : index
    %c0_3 = arith.constant 0 : index
    %c0_4 = arith.constant 0 : index
    %7 = vector.load %arg3[%c0_2, %c0_3, %c0_4] : memref<9x4x256xbf16, #tpu.memory_space<vmem>>, vector<1x4x256xbf16>
    %8 = vector.shape_cast %7 : vector<1x4x256xbf16> to vector<4x256xbf16>
    %cst_5 = arith.constant dense<0.000000e+00> : vector<256x256xf32>
    %9 = tpu.matmul %6, %8, %cst_5 {dimension_numbers = #tpu.dot_dimension_numbers<[1], [0], [0], [1], [0, 0, 1, 1], [], []>} : vector<256x4xbf16>, vector<4x256xbf16>, vector<256x256xf32> -> vector<256x256xf32>
    %10 = arith.addf %1, %9 : vector<256x256xf32>
    %c0_i32_6 = arith.constant 0 : i32
    %11 = arith.addi %0, %c0_i32_6 : i32
    %c0_7 = arith.constant 0 : index
    %12 = arith.index_cast %11 : i32 to index
    %c1 = arith.constant 1 : index
    %c0_8 = arith.constant 0 : index
    %13 = vector.load %arg2[%c0_7, %12, %c1, %c0_8] : memref<1x18x18x4xbf16, #tpu.memory_space<vmem>>, vector<1x16x16x4xbf16>
    %14 = vector.shape_cast %13 : vector<1x16x16x4xbf16> to vector<16x16x4xbf16>
    %15 = vector.shape_cast %14 : vector<16x16x4xbf16> to vector<256x4xbf16>
    %c1_9 = arith.constant 1 : index
    %c0_10 = arith.constant 0 : index
    %c0_11 = arith.constant 0 : index
    %16 = vector.load %arg3[%c1_9, %c0_10, %c0_11] : memref<9x4x256xbf16, #tpu.memory_space<vmem>>, vector<1x4x256xbf16>
    %17 = vector.shape_cast %16 : vector<1x4x256xbf16> to vector<4x256xbf16>
    %cst_12 = arith.constant dense<0.000000e+00> : vector<256x256xf32>
    %18 = tpu.matmul %15, %17, %cst_12 {dimension_numbers = #tpu.dot_dimension_numbers<[1], [0], [0], [1], [0, 0, 1, 1], [], []>} : vector<256x4xbf16>, vector<4x256xbf16>, vector<256x256xf32> -> vector<256x256xf32>
    %19 = arith.addf %10, %18 : vector<256x256xf32>
    %c0_i32_13 = arith.constant 0 : i32
    %20 = arith.addi %0, %c0_i32_13 : i32
    %c0_14 = arith.constant 0 : index
    %21 = arith.index_cast %20 : i32 to index
    %c2 = arith.constant 2 : index
    %c0_15 = arith.constant 0 : index
    %22 = vector.load %arg2[%c0_14, %21, %c2, %c0_15] : memref<1x18x18x4xbf16, #tpu.memory_space<vmem>>, vector<1x16x16x4xbf16>
    %23 = vector.shape_cast %22 : vector<1x16x16x4xbf16> to vector<16x16x4xbf16>
    %24 = vector.shape_cast %23 : vector<16x16x4xbf16> to vector<256x4xbf16>
    %c2_16 = arith.constant 2 : index
    %c0_17 = arith.constant 0 : index
    %c0_18 = arith.constant 0 : index
    %25 = vector.load %arg3[%c2_16, %c0_17, %c0_18] : memref<9x4x256xbf16, #tpu.memory_space<vmem>>, vector<1x4x256xbf16>
    %26 = vector.shape_cast %25 : vector<1x4x256xbf16> to vector<4x256xbf16>
    %cst_19 = arith.constant dense<0.000000e+00> : vector<256x256xf32>
    %27 = tpu.matmul %24, %26, %cst_19 {dimension_numbers = #tpu.dot_dimension_numbers<[1], [0], [0], [1], [0, 0, 1, 1], [], []>} : vector<256x4xbf16>, vector<4x256xbf16>, vector<256x256xf32> -> vector<256x256xf32>
    %28 = arith.addf %19, %27 : vector<256x256xf32>
    %c1_i32 = arith.constant 1 : i32
    %29 = arith.addi %0, %c1_i32 : i32
    %c0_20 = arith.constant 0 : index
    %30 = arith.index_cast %29 : i32 to index
    %c0_21 = arith.constant 0 : index
    %c0_22 = arith.constant 0 : index
    %31 = vector.load %arg2[%c0_20, %30, %c0_21, %c0_22] : memref<1x18x18x4xbf16, #tpu.memory_space<vmem>>, vector<1x16x16x4xbf16>
    %32 = vector.shape_cast %31 : vector<1x16x16x4xbf16> to vector<16x16x4xbf16>
    %33 = vector.shape_cast %32 : vector<16x16x4xbf16> to vector<256x4xbf16>
    %c3 = arith.constant 3 : index
    %c0_23 = arith.constant 0 : index
    %c0_24 = arith.constant 0 : index
    %34 = vector.load %arg3[%c3, %c0_23, %c0_24] : memref<9x4x256xbf16, #tpu.memory_space<vmem>>, vector<1x4x256xbf16>
    %35 = vector.shape_cast %34 : vector<1x4x256xbf16> to vector<4x256xbf16>
    %cst_25 = arith.constant dense<0.000000e+00> : vector<256x256xf32>
    %36 = tpu.matmul %33, %35, %cst_25 {dimension_numbers = #tpu.dot_dimension_numbers<[1], [0], [0], [1], [0, 0, 1, 1], [], []>} : vector<256x4xbf16>, vector<4x256xbf16>, vector<256x256xf32> -> vector<256x256xf32>
    %37 = arith.addf %28, %36 : vector<256x256xf32>
    %c1_i32_26 = arith.constant 1 : i32
    %38 = arith.addi %0, %c1_i32_26 : i32
    %c0_27 = arith.constant 0 : index
    %39 = arith.index_cast %38 : i32 to index
    %c1_28 = arith.constant 1 : index
    %c0_29 = arith.constant 0 : index
    %40 = vector.load %arg2[%c0_27, %39, %c1_28, %c0_29] : memref<1x18x18x4xbf16, #tpu.memory_space<vmem>>, vector<1x16x16x4xbf16>
    %41 = vector.shape_cast %40 : vector<1x16x16x4xbf16> to vector<16x16x4xbf16>
    %42 = vector.shape_cast %41 : vector<16x16x4xbf16> to vector<256x4xbf16>
    %c4 = arith.constant 4 : index
    %c0_30 = arith.constant 0 : index
    %c0_31 = arith.constant 0 : index
    %43 = vector.load %arg3[%c4, %c0_30, %c0_31] : memref<9x4x256xbf16, #tpu.memory_space<vmem>>, vector<1x4x256xbf16>
    %44 = vector.shape_cast %43 : vector<1x4x256xbf16> to vector<4x256xbf16>
    %cst_32 = arith.constant dense<0.000000e+00> : vector<256x256xf32>
    %45 = tpu.matmul %42, %44, %cst_32 {dimension_numbers = #tpu.dot_dimension_numbers<[1], [0], [0], [1], [0, 0, 1, 1], [], []>} : vector<256x4xbf16>, vector<4x256xbf16>, vector<256x256xf32> -> vector<256x256xf32>
    %46 = arith.addf %37, %45 : vector<256x256xf32>
    %c1_i32_33 = arith.constant 1 : i32
    %47 = arith.addi %0, %c1_i32_33 : i32
    %c0_34 = arith.constant 0 : index
    %48 = arith.index_cast %47 : i32 to index
    %c2_35 = arith.constant 2 : index
    %c0_36 = arith.constant 0 : index
    %49 = vector.load %arg2[%c0_34, %48, %c2_35, %c0_36] : memref<1x18x18x4xbf16, #tpu.memory_space<vmem>>, vector<1x16x16x4xbf16>
    %50 = vector.shape_cast %49 : vector<1x16x16x4xbf16> to vector<16x16x4xbf16>
    %51 = vector.shape_cast %50 : vector<16x16x4xbf16> to vector<256x4xbf16>
    %c5 = arith.constant 5 : index
    %c0_37 = arith.constant 0 : index
    %c0_38 = arith.constant 0 : index
    %52 = vector.load %arg3[%c5, %c0_37, %c0_38] : memref<9x4x256xbf16, #tpu.memory_space<vmem>>, vector<1x4x256xbf16>
    %53 = vector.shape_cast %52 : vector<1x4x256xbf16> to vector<4x256xbf16>
    %cst_39 = arith.constant dense<0.000000e+00> : vector<256x256xf32>
    %54 = tpu.matmul %51, %53, %cst_39 {dimension_numbers = #tpu.dot_dimension_numbers<[1], [0], [0], [1], [0, 0, 1, 1], [], []>} : vector<256x4xbf16>, vector<4x256xbf16>, vector<256x256xf32> -> vector<256x256xf32>
    %55 = arith.addf %46, %54 : vector<256x256xf32>
    %c2_i32 = arith.constant 2 : i32
    %56 = arith.addi %0, %c2_i32 : i32
    %c0_40 = arith.constant 0 : index
    %57 = arith.index_cast %56 : i32 to index
    %c0_41 = arith.constant 0 : index
    %c0_42 = arith.constant 0 : index
    %58 = vector.load %arg2[%c0_40, %57, %c0_41, %c0_42] : memref<1x18x18x4xbf16, #tpu.memory_space<vmem>>, vector<1x16x16x4xbf16>
    %59 = vector.shape_cast %58 : vector<1x16x16x4xbf16> to vector<16x16x4xbf16>
    %60 = vector.shape_cast %59 : vector<16x16x4xbf16> to vector<256x4xbf16>
    %c6 = arith.constant 6 : index
    %c0_43 = arith.constant 0 : index
    %c0_44 = arith.constant 0 : index
    %61 = vector.load %arg3[%c6, %c0_43, %c0_44] : memref<9x4x256xbf16, #tpu.memory_space<vmem>>, vector<1x4x256xbf16>
    %62 = vector.shape_cast %61 : vector<1x4x256xbf16> to vector<4x256xbf16>
    %cst_45 = arith.constant dense<0.000000e+00> : vector<256x256xf32>
    %63 = tpu.matmul %60, %62, %cst_45 {dimension_numbers = #tpu.dot_dimension_numbers<[1], [0], [0], [1], [0, 0, 1, 1], [], []>} : vector<256x4xbf16>, vector<4x256xbf16>, vector<256x256xf32> -> vector<256x256xf32>
    %64 = arith.addf %55, %63 : vector<256x256xf32>
    %c2_i32_46 = arith.constant 2 : i32
    %65 = arith.addi %0, %c2_i32_46 : i32
    %c0_47 = arith.constant 0 : index
    %66 = arith.index_cast %65 : i32 to index
    %c1_48 = arith.constant 1 : index
    %c0_49 = arith.constant 0 : index
    %67 = vector.load %arg2[%c0_47, %66, %c1_48, %c0_49] : memref<1x18x18x4xbf16, #tpu.memory_space<vmem>>, vector<1x16x16x4xbf16>
    %68 = vector.shape_cast %67 : vector<1x16x16x4xbf16> to vector<16x16x4xbf16>
    %69 = vector.shape_cast %68 : vector<16x16x4xbf16> to vector<256x4xbf16>
    %c7 = arith.constant 7 : index
    %c0_50 = arith.constant 0 : index
    %c0_51 = arith.constant 0 : index
    %70 = vector.load %arg3[%c7, %c0_50, %c0_51] : memref<9x4x256xbf16, #tpu.memory_space<vmem>>, vector<1x4x256xbf16>
    %71 = vector.shape_cast %70 : vector<1x4x256xbf16> to vector<4x256xbf16>
    %cst_52 = arith.constant dense<0.000000e+00> : vector<256x256xf32>
    %72 = tpu.matmul %69, %71, %cst_52 {dimension_numbers = #tpu.dot_dimension_numbers<[1], [0], [0], [1], [0, 0, 1, 1], [], []>} : vector<256x4xbf16>, vector<4x256xbf16>, vector<256x256xf32> -> vector<256x256xf32>
    %73 = arith.addf %64, %72 : vector<256x256xf32>
    %c2_i32_53 = arith.constant 2 : i32
    %74 = arith.addi %0, %c2_i32_53 : i32
    %c0_54 = arith.constant 0 : index
    %75 = arith.index_cast %74 : i32 to index
    %c2_55 = arith.constant 2 : index
    %c0_56 = arith.constant 0 : index
    %76 = vector.load %arg2[%c0_54, %75, %c2_55, %c0_56] : memref<1x18x18x4xbf16, #tpu.memory_space<vmem>>, vector<1x16x16x4xbf16>
    %77 = vector.shape_cast %76 : vector<1x16x16x4xbf16> to vector<16x16x4xbf16>
    %78 = vector.shape_cast %77 : vector<16x16x4xbf16> to vector<256x4xbf16>
    %c8 = arith.constant 8 : index
    %c0_57 = arith.constant 0 : index
    %c0_58 = arith.constant 0 : index
    %79 = vector.load %arg3[%c8, %c0_57, %c0_58] : memref<9x4x256xbf16, #tpu.memory_space<vmem>>, vector<1x4x256xbf16>
    %80 = vector.shape_cast %79 : vector<1x4x256xbf16> to vector<4x256xbf16>
    %cst_59 = arith.constant dense<0.000000e+00> : vector<256x256xf32>
    %81 = tpu.matmul %78, %80, %cst_59 {dimension_numbers = #tpu.dot_dimension_numbers<[1], [0], [0], [1], [0, 0, 1, 1], [], []>} : vector<256x4xbf16>, vector<4x256xbf16>, vector<256x256xf32> -> vector<256x256xf32>
    %82 = arith.addf %73, %81 : vector<256x256xf32>
    %c0_60 = arith.constant 0 : index
    %c0_61 = arith.constant 0 : index
    %83 = vector.load %arg4[%c0_60, %c0_61] : memref<1x256xf32, #tpu.memory_space<vmem>>, vector<1x256xf32>
    %84 = vector.broadcast %83 : vector<1x256xf32> to vector<256x256xf32>
    %85 = arith.addf %82, %84 : vector<256x256xf32>
    %86 = vector.extract_strided_slice %85 {offsets = [0, 0], sizes = [256, 128], strides = [1, 1]} : vector<256x256xf32> to vector<256x128xf32>
    %87 = vector.extract_strided_slice %85 {offsets = [0, 128], sizes = [256, 128], strides = [1, 1]} : vector<256x256xf32> to vector<256x128xf32>
    %88 = arith.maximumf %86, %87 : vector<256x128xf32>
    %89 = vector.shape_cast %88 : vector<256x128xf32> to vector<16x16x128xf32>
    %c0_62 = arith.constant 0 : index
    %c0_63 = arith.constant 0 : index
    %c0_64 = arith.constant 0 : index
    %c0_65 = arith.constant 0 : index
    %90 = vector.load %arg5[%c0_62, %c0_63, %c0_64, %c0_65] : memref<1x16x16x128xf32, #tpu.memory_space<vmem>>, vector<1x16x16x128xf32>
    %91 = vector.shape_cast %90 : vector<1x16x16x128xf32> to vector<16x16x128xf32>
    %92 = vector.shape_cast %89 : vector<16x16x128xf32> to vector<1x16x16x128xf32>
    tpu.vector_store %arg5[%c0_62, %c0_63, %c0_64, %c0_65], %92 {strides = array<i32>} : memref<1x16x16x128xf32, #tpu.memory_space<vmem>>, vector<1x16x16x128xf32>,
    return
  }
  func.func @transform_0(%arg0: i32, %arg1: i32) -> (i32, i32, i32, i32) {
    %c0_i32 = arith.constant 0 : i32
    %c0_i32_0 = arith.constant 0 : i32
    %c0_i32_1 = arith.constant 0 : i32
    %c0_i32_2 = arith.constant 0 : i32
    return %arg0, %c0_i32, %c0_i32_0, %c0_i32_1 : i32, i32, i32, i32
  }
  func.func @transform_1(%arg0: i32, %arg1: i32) -> (i32, i32, i32) {
    %c0_i32 = arith.constant 0 : i32
    %c0_i32_0 = arith.constant 0 : i32
    %c0_i32_1 = arith.constant 0 : i32
    %c0_i32_2 = arith.constant 0 : i32
    return %c0_i32, %c0_i32_0, %c0_i32_1 : i32, i32, i32
  }
  func.func @transform_2(%arg0: i32, %arg1: i32) -> (i32, i32) {
    %c0_i32 = arith.constant 0 : i32
    %c0_i32_0 = arith.constant 0 : i32
    %c0_i32_1 = arith.constant 0 : i32
    return %c0_i32, %c0_i32_0 : i32, i32
  }
  func.func @transform_3(%arg0: i32, %arg1: i32) -> (i32, i32, i32, i32) {
    %c0_i32 = arith.constant 0 : i32
    %c0_i32_0 = arith.constant 0 : i32
    %c0_i32_1 = arith.constant 0 : i32
    return %arg0, %arg1, %c0_i32, %c0_i32_0 : i32, i32, i32, i32
  }
}

</mosaic_0001>

<bundles_post_ra>
// kernel: tpu_custom_call.1
= control target key start
LH: loop header
LB: loop body
LE: loop exit
PB: predicated region body
PF: predicated region fallthrough
CT: control target
= control target key end

     0   :  { %8 = vsyncpa [#allocation3], 0  ;;  %s8657_s0 = inlined_call_operand.vmem [shape: bf16[2,18,18,4], index: 0, kind: input, shape index: {}]   ;;  %s8658_s1 = inlined_call_operand.vmem [shape: bf16[9,4,256], index: 1, kind: input, shape index: {}]   ;;  %s8659_s2 = inlined_call_operand.vmem [shape: f32[1,256], index: 2, kind: input, shape index: {}]   ;;  %s8660_s3 = inlined_call_operand.hbm [shape: f32[2,16,16,128], index: 3, kind: output, shape index: {}]  }
   0x1   :  { %10 = vsyncpa [#allocation3 + $0x1], 0  ;;  %s7098_s12 = smov 0   ;;  %s7100_s13 = smov 0  }
   0x2   :  { %s7102_s14 = smov 0   ;;  %s7104_s15 = smov 0  }
   0x3   :  { %s7106_s16 = smov 0   ;;  %s7108_s17 = smov 0  }
   0x4 LB: > { %s5726_s18 = sadd.s32 4294967295, %s7072_s17   ;;  %s5727_s19 = sadd.s32 4294967294, %s7072_s17   ;;  %s7072_s17 = sphi %s7108_s17, %s16_s17   ;;  %s7068_s16 = sphi %s7106_s16, %s8671_s16   ;;  %s7064_s15 = sphi %s7104_s15, %s8670_s15   ;;  %s7060_s14 = sphi %s7102_s14, %s8669_s14   ;;  %s7056_s13 = sphi %s7100_s13, %s8668_s13   ;;  %s7052_s12 = sphi %s7098_s12, %s8667_s12  }
   0x5   : > { %s28_s20 = sadd.s32 1, %s7068_s16  ;;  %s105_s21 = sadd.s32 1, %s7060_s14 }
   0x6   : > { %p30_p0 = scmp.ge.s32.totalorder %s28_s20, 2  ;;  %p115_p1 = scmp.ne.s32.totalorder %s7060_s14, %s7056_s13 }
   0x7   : > { %p116_p2 = scmp.eq.s32.totalorder %s5726_s18, 1  ;;  %p121_p3 = scmp.ne.s32.totalorder %s7056_s13, %s7052_s12 }
   0x8   : > { %s8673_s20 = smov (%p30_p0, %s28_s20), 0  ;;  %p122_p5 = scmp.eq.s32.totalorder %s5727_s19, 1 }
   0x9   : > { %p7138_p4 = por %p116_p2, %p115_p1  ;;  %s100_s23 = ssub.s32 %s7068_s16, %s8673_s20 }
   0xa   : > { %p5730_p6 = scmp.ge.s32.totalorder %s7072_s17, 1  ;;  %p103_p7 = scmp.eq.s32.totalorder %s100_s23, 0 }
   0xb   : > { %p7145_p8 = por %p122_p5, %p121_p3  ;;  %p154_p9 = scmp.lt.s32.totalorder %s7072_s17, 3 }
   0xc   : > { %s7151_s25 = scalar_select %p103_p7, %s7060_s14, %s105_s21  }
   0xd   : > { %p155_p10 = pnand %p5730_p6, %p154_p9 }
   0xe   : > { %v5750_v0 = vld.sshfl [vmem:[%s8658_s1 + $0x4] sm:$0x33 pattern:$0x76325410] (!%p155_p10)  ;;  %vm733_vm0 = vcmask (!%p155_p10), 1041408   ;;  %v7074_v4 = vmov (!%p155_p10), 0  }
   0xf   : > { %158 = sbr.rel (%p155_p10) target bundleno = 850 (0x352), region = 32  ;;  %v683_v1 = vcombine.high (!%p155_p10), %v5750_v0, %v5750_v0  ;;  %v5985_v2 = vld.sshfl [vmem:[%s8658_s1 + $0x10] sm:$0x33 pattern:$0x76325410] (!%p155_p10)  ;;  %v735_v3 = vsel (!%p155_p10), %vm733_vm0, %v5750_v0, 0  ;;  %772 = vmatprep.mubr.bf16.mxu1 (!%p155_p10), %v7074_v4  ;;  %2865 = vmatprep.mubr.bf16.mxu0 (!%p155_p10), %v7074_v4 }
  0x10   : > { %p178_p11 = scmp.lt.s32.totalorder (!%p155_p10), %s7064_s15, 1  ;;  %v7163_v5 = vcombine.high (!%p155_p10), %v5985_v2, %v5985_v2  ;;  %v7166_v6 = vsel (!%p155_p10), %vm733_vm0, %v5985_v2, 0  ;;  %v5784_v7 = vld.sshfl [vmem:[%s8658_s1] sm:$0x33 pattern:$0x76325410] (!%p155_p10) }
  0x11   : > { %5751 = vmatprep.subr.msk.bf16.mxu1 (!%p155_p10), %vm733_vm0, %v683_v1  ;;  %v1021_v8 = vcombine.high (!%p155_p10), %v5784_v7, %v5784_v7  ;;  %v6084_v9 = vld.sshfl [vmem:[%s8658_s1 + $0x14] sm:$0x33 pattern:$0x76325410] (!%p155_p10)  ;;  %v7182_v11 = vsel (!%p155_p10), %vm733_vm0, %v5784_v7, 0  ;;  %vm684_vm3 = vcmask (!%p155_p10), 31744  }
  0x12   : > { %5986 = vmatprep.subr.msk.bf16.mxu0 (!%p155_p10), %vm733_vm0, %v7163_v5  ;;  %741 = vmatpush1.bf16.msra.mxu1 (!%p155_p10), %v735_v3  ;;  %v3356_v10 = vcombine.high (!%p155_p10), %v6084_v9, %v6084_v9  ;;  %v7187_v12 = vld.sshfl [vmem:[%s8658_s1 + $0x18] sm:$0x33 pattern:$0x76325410] (!%p155_p10)  ;;  %vm238_vm1 = vsmask.f32 (!%p155_p10), 3328 }
  0x13   : > { %2834 = vmatpush1.bf16.msra.mxu0 (!%p155_p10), %v7166_v6  ;;  %5785 = vmatprep.subr.msk.bf16.mxu1 (!%p155_p10), %vm733_vm0, %v1021_v8  ;;  %vm239_vm2 = vsmask.f32 (!%p155_p10), 7440  ;;  %v7195_v13 = vsel (!%p155_p10), %vm733_vm0, %v6084_v9, 0  ;;  %v7199_v14 = vsel (!%p155_p10), %vm733_vm0, %v7187_v12, 0  ;;  %v3794_v27 = vcombine.high (!%p155_p10), %v7187_v12, %v7187_v12  ;;  %s6356_s10 = sshll.u32 (!%p155_p10), %s7064_s15, 12  ;;  %s7075_s26 = smov (!%p155_p10), [#allocation2]  }
  0x14   : > { %6085 = vmatprep.subr.msk.bf16.mxu0 (!%p155_p10), %vm733_vm0, %v3356_v10  ;;  %vm7213_vm4 = vmor (!%p155_p10), %vm238_vm1, %vm239_vm2  ;;  %vm1365_vm5 = vcmask (!%p155_p10), 1042432   ;;  %vm1366_vm6 = vcmask (!%p155_p10), 1046532   ;;  %s8603_s21 = scalar_lea.hbm (!%p155_p10), %s8660_s3, %s6356_s10  ;;  %s6998_s27 = sshll.u32 (!%p155_p10), %s7075_s26, 4  ;;  %s6999_s27 = int_to_ptr.vmem [resolvable:$false] %s6998_s27 }
  0x15   : > { %vm7372_vm7 = vmor (!%p155_p10), %vm1365_vm5, %vm1366_vm6  ;;  %s7000_s28 = scalar_lea.vmem (!%p155_p10), %s6999_s27, 8192 }
  0x16   : > { %s179_s7 = scalar_select %p178_p11, %s7064_s15, 1 }
  0x18   : > { %s6871_s8 = smul.u32 216, %s179_s7  ;;  %s175_s7 = sand.u32 1, %s7056_s13  }
  0x19   : > { %s8611_s15 = scalar_lea.sflag [#allocation3], %s175_s7 }
  0x1a   : > { %s7192_s19 = scalar_lea.vmem %s8657_s0, %s6871_s8  ;;  %s5731_s8 = sshll.u32 %s175_s7, 8 }
  0x1b   : > { %v189_v15 = vld [vmem:[%s7192_s19] sm:$0xf]  ;;  %v190_v16 = vld [vmem:[%s7192_s19 + $0x4] sm:$0xf]  ;;  %v222_v17 = vld [vmem:[%s7192_s19 + $0x8] sm:$0x1] }
  0x1c   : > { %v242_v18 = vshrl.u32 %v189_v15, 16  ;;  %v245_v19 = vshll.u32 %v189_v15, 16  ;;  %v251_v20 = vshll.u32 %v190_v16, 16  ;;  %v255_v21 = vshrl.u32 %v190_v16, 16  ;;  %v5920_v22 = vld [vmem:[%s7192_s19 + $0xc] sm:$0xf] }
  0x1d   : > { %v261_v23 = vshll.u32 %v222_v17, 16  ;;  %v5921_v24 = vld [vmem:[%s7192_s19 + $0x10] sm:$0xf]  ;;  %v5922_v25 = vld [vmem:[%s7192_s19 + $0x14] sm:$0x1]  ;;  %v2337_v26 = vshrl.u32 %v5920_v22, 16 }
  0x1e   : > { %v244_v28 = vrot.slane %v242_v18, 4  ;;  %v247_v29 = vrot.slane %v245_v19, 5  ;;  %v253_v30 = vrot.slane %v251_v20, 5  ;;  %v257_v31 = vrot.slane %v255_v21, 4  ;;  %v191_v32 = vld [vmem:[%s7192_s19 + $0xc] sm:$0xf] }
  0x1f   : > { %v263_v33 = vrot.slane %v261_v23, 5  ;;  %v2339_v34 = vrot.slane %v2337_v26, 4  ;;  %v2340_v35 = vshll.u32 %v5920_v22, 16  ;;  %v2346_v36 = vshll.u32 %v5921_v24, 16  ;;  %v192_v41 = vld [vmem:[%s7192_s19 + $0x10] sm:$0xf] }
  0x20   : > { %v248_v37 = vor.u32 %v247_v29, %v244_v28  ;;  %v258_v38 = vor.u32 %v257_v31, %v253_v30  ;;  %v2350_v39 = vshrl.u32 %v5921_v24, 16  ;;  %v2356_v40 = vshll.u32 %v5922_v25, 16  ;;  %v223_v51 = vld [vmem:[%s7192_s19 + $0x14] sm:$0x1]  ;;  %v5923_v56 = vld [vmem:[%s7192_s19 + $0x18] sm:$0xf] }
  0x21   : > { %v2342_v43 = vrot.slane %v2340_v35, 5  ;;  %v2348_v44 = vrot.slane %v2346_v36, 5  ;;  %v266_v45 = vshrl.u32 %v191_v32, 16  ;;  %v269_v46 = vshll.u32 %v191_v32, 16  ;;  %v5924_v61 = vld [vmem:[%s7192_s19 + $0x1c] sm:$0xf] }
  0x22   : > { %v249_v47 = vrot.slane %v248_v37, 4  ;;  %v259_v48 = vrot.slane %v258_v38, 4  ;;  %v2352_v49 = vrot.slane %v2350_v39, 4  ;;  %v2358_v50 = vrot.slane %v2356_v40, 5  ;;  %v5925_v8 = vld [vmem:[%s7192_s19 + $0x20] sm:$0x1] }
  0x23   : > { %v2343_v52 = vor.u32 %v2342_v43, %v2339_v34  ;;  %v268_v53 = vrot.slane %v266_v45, 4  ;;  %v271_v54 = vrot.slane %v269_v46, 5  ;;  %v275_v55 = vshll.u32 %v192_v41, 16  ;;  %v193_v18 = vld [vmem:[%s7192_s19 + $0x18] sm:$0xf]  ;;  %s8482_s9 = scalar_lea.vmem [#allocation2], %s5731_s8 }
  0x24   : > { %v254_v57 = vsel %vm7213_vm4, %v249_v47, %v253_v30  ;;  %v264_v58 = vsel %vm7213_vm4, %v259_v48, %v263_v33  ;;  %v2353_v59 = vor.u32 %v2352_v49, %v2348_v44  ;;  %v279_v60 = vshrl.u32 %v192_v41, 16  ;;  %v194_v23 = vld [vmem:[%s7192_s19 + $0x1c] sm:$0xf]  ;;  %v224_v31 = vld [vmem:[%s7192_s19 + $0x20] sm:$0x1]  ;;  %s5643_s11 = sshll.u32 %s8482_s9, 4  ;;  %s8605_s11 = int_to_ptr.vmem [resolvable:$true] %s5643_s11 }
  0x25   : > { %v5734_v62 = vcombine.low %v254_v57, %v264_v58  ;;  %v2344_v63 = vrot.slane %v2343_v52, 4  ;;  %v272_v0 = vor.u32 %v271_v54, %v268_v53  ;;  %v277_v1 = vrot.slane %v275_v55, 5  ;;  %v5926_v37 = vld [vmem:[%s7192_s19 + $0x24] sm:$0xf]  ;;  %v5927_v43 = vld [vmem:[%s7192_s19 + $0x28] sm:$0xf]  ;;  %p7001_p1 = scmp.lt.s32.totalorder %s8605_s11, %s6999_s27 }
  0x26   : > { %v2354_v2 = vrot.slane %v2353_v59, 4  ;;  %v281_v3 = vrot.slane %v279_v60, 4  ;;  %v285_v7 = vshll.u32 %v223_v51, 16  ;;  %v2361_v9 = vshrl.u32 %v5923_v56, 16  ;;  %v5928_v53 = vld [vmem:[%s7192_s19 + $0x2c] sm:$0x1] }
  0x27   : > { %5752 = vmatmul.mubr.msk.bf16.vlgmr.msra.gmra.mrb[0].mxu1 %vm684_vm3, %v5734_v62  ;;  %v2349_v10 = vsel %vm7213_vm4, %v2344_v63, %v2348_v44  ;;  %v273_v15 = vrot.slane %v272_v0, 4  ;;  %v2364_v16 = vshll.u32 %v5923_v56, 16  ;;  %v2370_v17 = vshll.u32 %v5924_v61, 16  ;;  %v195_v56 = vld [vmem:[%s7192_s19 + $0x24] sm:$0xf]  ;;  %s6994_s23 = scalar_lea.vmem %s8605_s11, 4096 }
  0x28   : > { %1077 = vmatpush1.bf16.msra.mxu1 %v7182_v11  ;;  %v2359_v19 = vsel %vm7213_vm4, %v2354_v2, %v2358_v50  ;;  %782 = vmatprep.mubr.bf16.mxu1 %v7074_v4  ;;  %v282_v20 = vor.u32 %v281_v3, %v277_v1  ;;  %v287_v21 = vrot.slane %v285_v7, 5  ;;  %v2363_v22 = vrot.slane %v2361_v9, 4  ;;  %v196_v2 = vld [vmem:[%s7192_s19 + $0x28] sm:$0xf]  ;;  %p6995_p12 = scmp.ne.s32.totalorder %s8605_s11, %s6994_s23  ;;  %p7002_p2 = scmp.lt.s32.totalorder %s7000_s28, %s6994_s23 }
  0x29   : > { %v5969_v24 = vcombine.low %v2349_v10, %v2359_v19  ;;  %v278_v25 = vsel %vm7213_vm4, %v273_v15, %v277_v1  ;;  %v2366_v26 = vrot.slane %v2364_v16, 5  ;;  %v2372_v28 = vrot.slane %v2370_v17, 5  ;;  %v225_v15 = vld [vmem:[%s7192_s19 + $0x2c] sm:$0x1]  ;;  %v5929_v16 = vld [vmem:[%s7192_s19 + $0x30] sm:$0xf] }
  0x2a   : > { %v283_v29 = vrot.slane %v282_v20, 4  ;;  %v2374_v30 = vshrl.u32 %v5924_v61, 16  ;;  %v2380_v11 = vshll.u32 %v5925_v8, 16  ;;  %v290_v32 = vshrl.u32 %v193_v18, 16  ;;  %p6996_p13 = pnand %p6995_p12, %p7138_p4  ;;  %p7003_p3 = por %p7002_p2, %p7001_p1 }
  0x2b   : > { %5987 = vmatmul.mubr.msk.bf16.vlgmr.msra.gmra.mrb[0].mxu0 %vm684_vm3, %v5969_v24  ;;  %v2367_v33 = vor.u32 %v2366_v26, %v2363_v22  ;;  %v293_v34 = vshll.u32 %v193_v18, 16  ;;  %v299_v35 = vshll.u32 %v194_v23, 16  ;;  %v303_v36 = vshrl.u32 %v194_v23, 16 }
  0x2c   : > { %3412 = vmatpush1.bf16.msra.mxu0 %v7195_v13  ;;  %2875 = vmatprep.mubr.bf16.mxu0 %v7074_v4  ;;  %v288_v38 = vsel %vm7213_vm4, %v283_v29, %v287_v21  ;;  %v2376_v39 = vrot.slane %v2374_v30, 4  ;;  %v2382_v40 = vrot.slane %v2380_v11, 5  ;;  %v292_v41 = vrot.slane %v290_v32, 4  ;;  %v5930_v29 = vld [vmem:[%s7192_s19 + $0x34] sm:$0xf]  ;;  %p6997_p0 = pneg %p6996_p13 }
  0x2d   : > { %v5735_v44 = vcombine.low %v278_v25, %v288_v38  ;;  %v2368_v45 = vrot.slane %v2367_v33, 4  ;;  %v295_v46 = vrot.slane %v293_v34, 5  ;;  %v301_v47 = vrot.slane %v299_v35, 5  ;;  %6152 = vmatprep.subr.msk.bf16.mxu0 %vm733_vm0, %v3794_v27  ;;  %v5931_v33 = vld [vmem:[%s7192_s19 + $0x38] sm:$0x1] }
  0x2e   : > { %v2377_v13 = vor.u32 %v2376_v39, %v2372_v28  ;;  %v305_v48 = vrot.slane %v303_v36, 4  ;;  %v309_v49 = vshll.u32 %v224_v31, 16  ;;  %v2385_v50 = vshrl.u32 %v5926_v37, 16  ;;  %v197_v39 = vld [vmem:[%s7192_s19 + $0x30] sm:$0xf]  ;;  %p7004_p5 = pnand %p7003_p3, %p6997_p0 }
  0x2f   : > { %5753 = vmatmul.mubr.msk.bf16.gmra.mrb[4].mxu1 %vm684_vm3, %v5735_v44  ;;  %v2373_v51 = vsel %vm7213_vm4, %v2368_v45, %v2372_v28  ;;  %v296_v52 = vor.u32 %v295_v46, %v292_v41  ;;  %v2388_v54 = vshll.u32 %v5926_v37, 16  ;;  %v2394_v55 = vshll.u32 %v5927_v43, 16 }
  0x30   : > { %v2378_v57 = vrot.slane %v2377_v13, 4  ;;  %792 = vmatprep.mubr.bf16.mxu1 %v7074_v4  ;;  %v306_v12 = vor.u32 %v305_v48, %v301_v47  ;;  %v311_v27 = vrot.slane %v309_v49, 5  ;;  %v2387_v58 = vrot.slane %v2385_v50, 4  ;;  %v198_v48 = vld [vmem:[%s7192_s19 + $0x34] sm:$0xf] }
  0x31   : > { %v297_v59 = vrot.slane %v296_v52, 4  ;;  %v2390_v60 = vrot.slane %v2388_v54, 5  ;;  %v2396_v61 = vrot.slane %v2394_v55, 5  ;;  %v2398_v62 = vshrl.u32 %v5927_v43, 16  ;;  %v226_v52 = vld [vmem:[%s7192_s19 + $0x38] sm:$0x1] }
  0x32   : > { %v2383_v63 = vsel %vm7213_vm4, %v2378_v57, %v2382_v40  ;;  %v307_v0 = vrot.slane %v306_v12, 4  ;;  %v2404_v1 = vshll.u32 %v5928_v53, 16  ;;  %v314_v3 = vshrl.u32 %v195_v56, 16 }
  0x33   : > { %v5970_v7 = vcombine.low %v2373_v51, %v2383_v63  ;;  %v302_v8 = vsel %vm7213_vm4, %v297_v59, %v301_v47  ;;  %v2391_v9 = vor.u32 %v2390_v60, %v2387_v58  ;;  %v2400_v10 = vrot.slane %v2398_v62, 4  ;;  %v5932_v60 = vld [vmem:[%s7192_s19 + $0x3c] sm:$0xf] }
  0x34   : > { %v312_v17 = vsel %vm7213_vm4, %v307_v0, %v311_v27  ;;  %v2406_v18 = vrot.slane %v2404_v1, 5  ;;  %v316_v19 = vrot.slane %v314_v3, 4  ;;  %v317_v20 = vshll.u32 %v195_v56, 16  ;;  %v5933_v1 = vld [vmem:[%s7192_s19 + $0x40] sm:$0xf] }
  0x35   : > { %5988 = vmatmul.mubr.msk.bf16.gmra.mrb[4].mxu0 %vm684_vm3, %v5970_v7  ;;  %v5736_v21 = vcombine.low %v302_v8, %v312_v17  ;;  %v2392_v22 = vrot.slane %v2391_v9, 4  ;;  %v2401_v23 = vor.u32 %v2400_v10, %v2396_v61  ;;  %v323_v24 = vshll.u32 %v196_v2, 16 }
  0x36   : > { %2885 = vmatprep.mubr.bf16.mxu0 %v7074_v4  ;;  %v319_v25 = vrot.slane %v317_v20, 5  ;;  %v327_v26 = vshrl.u32 %v196_v2, 16  ;;  %v333_v28 = vshll.u32 %v225_v15, 16  ;;  %v2409_v30 = vshrl.u32 %v5929_v16, 16 }
  0x37   : > { %5754 = vmatmul.mubr.msk.bf16.gmra.mrb[8].mxu1 %vm684_vm3, %v5736_v21  ;;  %v2397_v11 = vsel %vm7213_vm4, %v2392_v22, %v2396_v61  ;;  %v2402_v31 = vrot.slane %v2401_v23, 4  ;;  %v325_v32 = vrot.slane %v323_v24, 5  ;;  %v2412_v34 = vshll.u32 %v5929_v16, 16  ;;  %v5934_v16 = vld [vmem:[%s7192_s19 + $0x44] sm:$0x1] }
  0x38   : > { %802 = vmatprep.mubr.bf16.mxu1 %v7074_v4  ;;  %v320_v35 = vor.u32 %v319_v25, %v316_v19  ;;  %v329_v36 = vrot.slane %v327_v26, 4  ;;  %v335_v37 = vrot.slane %v333_v28, 5  ;;  %v2411_v38 = vrot.slane %v2409_v30, 4  ;;  %v199_v22 = vld [vmem:[%s7192_s19 + $0x3c] sm:$0xf] }
  0x39   : > { %v2407_v40 = vsel %vm7213_vm4, %v2402_v31, %v2406_v18  ;;  %v2414_v41 = vrot.slane %v2412_v34, 5  ;;  %v2418_v43 = vshll.u32 %v5930_v29, 16  ;;  %v2422_v44 = vshrl.u32 %v5930_v29, 16  ;;  %v200_v28 = vld [vmem:[%s7192_s19 + $0x40] sm:$0xf] }
  0x3a   : > { %v5971_v45 = vcombine.low %v2397_v11, %v2407_v40  ;;  %v321_v46 = vrot.slane %v320_v35, 4  ;;  %v330_v47 = vor.u32 %v329_v36, %v325_v32  ;;  %v2428_v13 = vshll.u32 %v5931_v33, 16 }
  0x3b   : > { %v2415_v49 = vor.u32 %v2414_v41, %v2411_v38  ;;  %v2420_v50 = vrot.slane %v2418_v43, 5  ;;  %v2424_v51 = vrot.slane %v2422_v44, 4  ;;  %v338_v53 = vshrl.u32 %v197_v39, 16  ;;  %v5935_v41 = vld [vmem:[%s7192_s19 + $0x48] sm:$0xf] }
  0x3c   : > { %v326_v54 = vsel %vm7213_vm4, %v321_v46, %v325_v32  ;;  %v331_v55 = vrot.slane %v330_v47, 4  ;;  %v2430_v56 = vrot.slane %v2428_v13, 5  ;;  %v341_v57 = vshll.u32 %v197_v39, 16  ;;  %v227_v39 = vld [vmem:[%s7192_s19 + $0x44] sm:$0x1] }
  0x3d   : > { %5989 = vmatmul.mubr.msk.bf16.gmra.mrb[8].mxu0 %vm684_vm3, %v5971_v45  ;;  %v2416_v12 = vrot.slane %v2415_v49, 4  ;;  %v2425_v27 = vor.u32 %v2424_v51, %v2420_v50  ;;  %v340_v58 = vrot.slane %v338_v53, 4  ;;  %v347_v59 = vshll.u32 %v198_v48, 16  ;;  %v5936_v47 = vld [vmem:[%s7192_s19 + $0x4c] sm:$0xf] }
  0x3e   : > { %2895 = vmatprep.mubr.bf16.mxu0 %v7074_v4  ;;  %v336_v61 = vsel %vm7213_vm4, %v331_v55, %v335_v37  ;;  %v343_v62 = vrot.slane %v341_v57, 5  ;;  %v351_v63 = vshrl.u32 %v198_v48, 16  ;;  %v357_v0 = vshll.u32 %v226_v52, 16  ;;  %v5937_v57 = vld [vmem:[%s7192_s19 + $0x50] sm:$0x1] }
  0x3f   : > { %v5737_v2 = vcombine.low %v326_v54, %v336_v61  ;;  %v2421_v3 = vsel %vm7213_vm4, %v2416_v12, %v2420_v50  ;;  %v2426_v7 = vrot.slane %v2425_v27, 4  ;;  %v349_v8 = vrot.slane %v347_v59, 5 }
  0x40   : > { %v344_v9 = vor.u32 %v343_v62, %v340_v58  ;;  %v353_v10 = vrot.slane %v351_v63, 4  ;;  %v359_v15 = vrot.slane %v357_v0, 5  ;;  %v2433_v17 = vshrl.u32 %v5932_v60, 16  ;;  %v201_v58 = vld [vmem:[%s7192_s19 + $0x48] sm:$0xf] }
  0x41   : > { %5755 = vmatmul.mubr.msk.bf16.gmra.mrb[12].mxu1 %vm684_vm3, %v5737_v2  ;;  %v2431_v18 = vsel %vm7213_vm4, %v2426_v7, %v2430_v56  ;;  %v2436_v19 = vshll.u32 %v5932_v60, 16  ;;  %v2442_v20 = vshll.u32 %v5933_v1, 16  ;;  %v2446_v21 = vshrl.u32 %v5933_v1, 16  ;;  %v202_v63 = vld [vmem:[%s7192_s19 + $0x4c] sm:$0xf] }
  0x42   : > { %v5972_v23 = vcombine.low %v2421_v3, %v2431_v18  ;;  %812 = vmatprep.mubr.bf16.mxu1 %v7074_v4  ;;  %v345_v24 = vrot.slane %v344_v9, 4  ;;  %v354_v25 = vor.u32 %v353_v10, %v349_v8  ;;  %v2435_v26 = vrot.slane %v2433_v17, 4  ;;  %v228_v10 = vld [vmem:[%s7192_s19 + $0x50] sm:$0x1] }
  0x43   : > { %v2438_v29 = vrot.slane %v2436_v19, 5  ;;  %v2444_v30 = vrot.slane %v2442_v20, 5  ;;  %v2448_v11 = vrot.slane %v2446_v21, 4  ;;  %v2452_v31 = vshll.u32 %v5934_v16, 16  ;;  %v5938_v20 = vld [vmem:[%s7192_s19 + $0x54] sm:$0xf] }
  0x44   : > { %v350_v32 = vsel %vm7213_vm4, %v345_v24, %v349_v8  ;;  %v355_v33 = vrot.slane %v354_v25, 4  ;;  %v362_v34 = vshrl.u32 %v199_v22, 16  ;;  %v365_v35 = vshll.u32 %v199_v22, 16 }
  0x45   : > { %5990 = vmatmul.mubr.msk.bf16.gmra.mrb[12].mxu0 %vm684_vm3, %v5972_v23  ;;  %v2439_v36 = vor.u32 %v2438_v29, %v2435_v26  ;;  %v2449_v37 = vor.u32 %v2448_v11, %v2444_v30  ;;  %v2454_v38 = vrot.slane %v2452_v31, 5  ;;  %v371_v40 = vshll.u32 %v200_v28, 16 }
  0x46   : > { %2905 = vmatprep.mubr.bf16.mxu0 %v7074_v4  ;;  %v360_v43 = vsel %vm7213_vm4, %v355_v33, %v359_v15  ;;  %v364_v44 = vrot.slane %v362_v34, 4  ;;  %v367_v45 = vrot.slane %v365_v35, 5  ;;  %v375_v46 = vshrl.u32 %v200_v28, 16 }
  0x47   : > { %v5738_v13 = vcombine.low %v350_v32, %v360_v43  ;;  %v2440_v48 = vrot.slane %v2439_v36, 4  ;;  %v2450_v49 = vrot.slane %v2449_v37, 4  ;;  %v373_v50 = vrot.slane %v371_v40, 5  ;;  %v5940_v37 = vld [vmem:[%s7192_s19 + $0x5c] sm:$0x1] }
  0x48   : > { %v368_v51 = vor.u32 %v367_v45, %v364_v44  ;;  %v377_v52 = vrot.slane %v375_v46, 4  ;;  %v381_v53 = vshll.u32 %v227_v39, 16  ;;  %v2457_v54 = vshrl.u32 %v5935_v41, 16  ;;  %v203_v44 = vld [vmem:[%s7192_s19 + $0x54] sm:$0xf] }
  0x49   : > { %5756 = vmatmul.mubr.msk.bf16.gmra.mrb[16].mxu1 %vm684_vm3, %v5738_v13  ;;  %v2445_v55 = vsel %vm7213_vm4, %v2440_v48, %v2444_v30  ;;  %v2455_v56 = vsel %vm7213_vm4, %v2450_v49, %v2454_v38  ;;  %v2460_v12 = vshll.u32 %v5935_v41, 16  ;;  %v2466_v27 = vshll.u32 %v5936_v47, 16  ;;  %v5939_v30 = vld [vmem:[%s7192_s19 + $0x58] sm:$0xf] }
  0x4a   : > { %v5973_v59 = vcombine.low %v2445_v55, %v2455_v56  ;;  %822 = vmatprep.mubr.bf16.mxu1 %v7074_v4  ;;  %v369_v60 = vrot.slane %v368_v51, 4  ;;  %v378_v61 = vor.u32 %v377_v52, %v373_v50  ;;  %v383_v62 = vrot.slane %v381_v53, 5  ;;  %v204_v48 = vld [vmem:[%s7192_s19 + $0x58] sm:$0xf]  ;;  %v229_v56 = vld [vmem:[%s7192_s19 + $0x5c] sm:$0x1] }
  0x4b   : > { %v2459_v0 = vrot.slane %v2457_v54, 4  ;;  %v2462_v1 = vrot.slane %v2460_v12, 5  ;;  %v2468_v2 = vrot.slane %v2466_v27, 5  ;;  %v2470_v3 = vshrl.u32 %v5936_v47, 16 }
  0x4c   : > { %v374_v7 = vsel %vm7213_vm4, %v369_v60, %v373_v50  ;;  %v379_v8 = vrot.slane %v378_v61, 4  ;;  %v2476_v9 = vshll.u32 %v5937_v57, 16  ;;  %v386_v15 = vshrl.u32 %v201_v58, 16  ;;  %v5941_v60 = vld [vmem:[%s7192_s19 + $0x60] sm:$0xf] }
  0x4d   : > { %5991 = vmatmul.mubr.msk.bf16.gmra.mrb[16].mxu0 %vm684_vm3, %v5973_v59  ;;  %v2463_v16 = vor.u32 %v2462_v1, %v2459_v0  ;;  %v2472_v17 = vrot.slane %v2470_v3, 4  ;;  %v389_v18 = vshll.u32 %v201_v58, 16  ;;  %v395_v19 = vshll.u32 %v202_v63, 16  ;;  %v5942_v1 = vld [vmem:[%s7192_s19 + $0x64] sm:$0xf] }
  0x4e   : > { %2915 = vmatprep.mubr.bf16.mxu0 %v7074_v4  ;;  %v384_v21 = vsel %vm7213_vm4, %v379_v8, %v383_v62  ;;  %v2478_v22 = vrot.slane %v2476_v9, 5  ;;  %v388_v23 = vrot.slane %v386_v15, 4  ;;  %v399_v24 = vshrl.u32 %v202_v63, 16  ;;  %v5943_v15 = vld [vmem:[%s7192_s19 + $0x68] sm:$0x1] }
  0x4f   : > { %v5739_v25 = vcombine.low %v374_v7, %v384_v21  ;;  %v2464_v26 = vrot.slane %v2463_v16, 4  ;;  %v2473_v28 = vor.u32 %v2472_v17, %v2468_v2  ;;  %v391_v29 = vrot.slane %v389_v18, 5 }
  0x50   : > { %v397_v11 = vrot.slane %v395_v19, 5  ;;  %v401_v31 = vrot.slane %v399_v24, 4  ;;  %v405_v32 = vshll.u32 %v228_v10, 16  ;;  %v2481_v33 = vshrl.u32 %v5938_v20, 16 }
  0x51   : > { %5757 = vmatmul.mubr.msk.bf16.gmra.mrb[20].mxu1 %vm684_vm3, %v5739_v25  ;;  %v2469_v34 = vsel %vm7213_vm4, %v2464_v26, %v2468_v2  ;;  %v2474_v35 = vrot.slane %v2473_v28, 4  ;;  %v392_v36 = vor.u32 %v391_v29, %v388_v23  ;;  %v2484_v38 = vshll.u32 %v5938_v20, 16  ;;  %v7349_v28 = vld [vmem:[%s7192_s19 + $0x64] sm:$0xf] }
  0x52   : > { %832 = vmatprep.mubr.bf16.mxu1 %v7074_v4  ;;  %v402_v39 = vor.u32 %v401_v31, %v397_v11  ;;  %v407_v40 = vrot.slane %v405_v32, 5  ;;  %v2483_v41 = vrot.slane %v2481_v33, 4  ;;  %v2490_v43 = vshll.u32 %v5939_v30, 16  ;;  %v230_v32 = vld [vmem:[%s7192_s19 + $0x68] sm:$0x1] }
  0x53   : > { %v2479_v45 = vsel %vm7213_vm4, %v2474_v35, %v2478_v22  ;;  %v393_v46 = vrot.slane %v392_v36, 4  ;;  %v2486_v47 = vrot.slane %v2484_v38, 5  ;;  %v2494_v13 = vshrl.u32 %v5939_v30, 16  ;;  %v7344_v22 = vld [vmem:[%s7192_s19 + $0x60] sm:$0xf] }
  0x54   : > { %v5974_v49 = vcombine.low %v2469_v34, %v2479_v45  ;;  %v403_v50 = vrot.slane %v402_v39, 4  ;;  %v2492_v51 = vrot.slane %v2490_v43, 5  ;;  %v2500_v52 = vshll.u32 %v5940_v37, 16  ;;  %v6003_v37 = vld [vmem:[%s7192_s19 + $0xc] sm:$0xe] }
  0x55   : > { %v398_v53 = vsel %vm7213_vm4, %v393_v46, %v397_v11  ;;  %v2487_v54 = vor.u32 %v2486_v47, %v2483_v41  ;;  %v2496_v55 = vrot.slane %v2494_v13, 4  ;;  %v410_v57 = vshrl.u32 %v203_v44, 16  ;;  %v6004_v43 = vld [vmem:[%s7192_s19 + $0x10] sm:$0xf]  ;;  %v6005_v13 = vld [vmem:[%s7192_s19 + $0x14] sm:$0x1] }
  0x56   : > { %5992 = vmatmul.mubr.msk.bf16.gmra.mrb[20].mxu0 %vm684_vm3, %v5974_v49  ;;  %v408_v12 = vsel %vm7213_vm4, %v403_v50, %v407_v40  ;;  %v2502_v27 = vrot.slane %v2500_v52, 5  ;;  %v413_v58 = vshll.u32 %v203_v44, 16  ;;  %v419_v59 = vshll.u32 %v204_v48, 16  ;;  %v7366_v52 = vld [vmem:[%s7192_s19 + $0x6c] sm:$0xf] }
  0x57   : > { %2925 = vmatprep.mubr.bf16.mxu0 %v7074_v4  ;;  %v5740_v61 = vcombine.low %v398_v53, %v408_v12  ;;  %v2488_v62 = vrot.slane %v2487_v54, 4  ;;  %v2497_v63 = vor.u32 %v2496_v55, %v2492_v51  ;;  %v412_v0 = vrot.slane %v410_v57, 4 }
  0x58   : > { %v415_v2 = vrot.slane %v413_v58, 5  ;;  %v421_v3 = vrot.slane %v419_v59, 5  ;;  %v423_v7 = vshrl.u32 %v204_v48, 16  ;;  %v429_v8 = vshll.u32 %v229_v56, 16 }
  0x59   : > { %5758 = vmatmul.mubr.msk.bf16.gmra.mrb[24].mxu1 %vm684_vm3, %v5740_v61  ;;  %v2493_v9 = vsel %vm7213_vm4, %v2488_v62, %v2492_v51  ;;  %v2498_v10 = vrot.slane %v2497_v63, 4  ;;  %v2505_v16 = vshrl.u32 %v5941_v60, 16  ;;  %v2508_v17 = vshll.u32 %v5941_v60, 16  ;;  %v7377_v60 = vld [vmem:[%s7192_s19 + $0x70] sm:$0xf] }
  0x5a   : > { %842 = vmatprep.mubr.bf16.mxu1 %v7074_v4  ;;  %v416_v18 = vor.u32 %v415_v2, %v412_v0  ;;  %v425_v19 = vrot.slane %v423_v7, 4  ;;  %v431_v20 = vrot.slane %v429_v8, 5  ;;  %v2514_v21 = vshll.u32 %v5942_v1, 16  ;;  %v231_v0 = vld [vmem:[%s7192_s19 + $0x74] sm:$0x1] }
  0x5b   : > { %v2503_v23 = vsel %vm7213_vm4, %v2498_v10, %v2502_v27  ;;  %v2507_v24 = vrot.slane %v2505_v16, 4  ;;  %v2510_v25 = vrot.slane %v2508_v17, 5  ;;  %v2518_v26 = vshrl.u32 %v5942_v1, 16  ;;  %v6007_v10 = vld [vmem:[%s7192_s19 + $0x1c] sm:$0xf] }
  0x5c   : > { %v5975_v29 = vcombine.low %v2493_v9, %v2503_v23  ;;  %v417_v30 = vrot.slane %v416_v18, 4  ;;  %v426_v11 = vor.u32 %v425_v19, %v421_v3  ;;  %v2516_v31 = vrot.slane %v2514_v21, 5  ;;  %v6006_v9 = vld [vmem:[%s7192_s19 + $0x18] sm:$0xe]  ;;  %v6008_v19 = vld [vmem:[%s7192_s19 + $0x20] sm:$0x1] }
  0x5d   : > { %v2511_v33 = vor.u32 %v2510_v25, %v2507_v24  ;;  %v2520_v34 = vrot.slane %v2518_v26, 4  ;;  %v2524_v35 = vshll.u32 %v5943_v15, 16  ;;  %v434_v36 = vshrl.u32 %v7344_v22, 16  ;;  %v7397_v25 = vld [vmem:[%s7192_s19 + $0x78] sm:$0xf] }
  0x5e   : > { %5993 = vmatmul.mubr.msk.bf16.gmra.mrb[24].mxu0 %vm684_vm3, %v5975_v29  ;;  %v422_v38 = vsel %vm7213_vm4, %v417_v30, %v421_v3  ;;  %v427_v39 = vrot.slane %v426_v11, 4  ;;  %v437_v40 = vshll.u32 %v7344_v22, 16  ;;  %v443_v41 = vshll.u32 %v7349_v28, 16 }
  0x5f   : > { %2935 = vmatprep.mubr.bf16.mxu0 %v7074_v4  ;;  %v2512_v44 = vrot.slane %v2511_v33, 4  ;;  %v2521_v45 = vor.u32 %v2520_v34, %v2516_v31  ;;  %v2526_v46 = vrot.slane %v2524_v35, 5  ;;  %v436_v47 = vrot.slane %v434_v36, 4 }
  0x60   : > { %v432_v48 = vsel %vm7213_vm4, %v427_v39, %v431_v20  ;;  %v439_v49 = vrot.slane %v437_v40, 5  ;;  %v445_v50 = vrot.slane %v443_v41, 5  ;;  %v447_v51 = vshrl.u32 %v7349_v28, 16  ;;  %v232_v41 = vld [vmem:[%s7192_s19 + $0x80] sm:$0x1] }
  0x61   : > { %v5741_v53 = vcombine.low %v422_v38, %v432_v48  ;;  %v2517_v54 = vsel %vm7213_vm4, %v2512_v44, %v2516_v31  ;;  %v2522_v55 = vrot.slane %v2521_v45, 4  ;;  %v453_v56 = vshll.u32 %v230_v32, 16  ;;  %v7403_v31 = vld [vmem:[%s7192_s19 + $0x7c] sm:$0xf] }
  0x62   : > { %v440_v12 = vor.u32 %v439_v49, %v436_v47  ;;  %v449_v27 = vrot.slane %v447_v51, 4  ;;  %v6051_v58 = vrot.slane %v6003_v37, 9  ;;  %v3188_v59 = vrot.slane %v6004_v43, 5 }
  0x63   : > { %5759 = vmatmul.mubr.msk.bf16.gmra.mrb[28].mxu1 %vm684_vm3, %v5741_v53  ;;  %v2527_v61 = vsel %vm7213_vm4, %v2522_v55, %v2526_v46  ;;  %v455_v62 = vrot.slane %v453_v56, 5  ;;  %v3191_v63 = vrot.slane %v6005_v13, 5  ;;  %v458_v1 = vshrl.u32 %v7366_v52, 16 }
  0x64   : > { %v5976_v2 = vcombine.low %v2517_v54, %v2527_v61  ;;  %852 = vmatprep.mubr.bf16.mxu1 %v7074_v4  ;;  %v441_v3 = vrot.slane %v440_v12, 4  ;;  %v450_v7 = vor.u32 %v449_v27, %v445_v50  ;;  %v3189_v8 = vsel %vm7372_vm7, %v6051_v58, %v3188_v59  ;;  %v6010_v54 = vld [vmem:[%s7192_s19 + $0x28] sm:$0xf]  ;;  %v6009_v58 = vld [vmem:[%s7192_s19 + $0x24] sm:$0xe] }
  0x65   : > { %v3190_v15 = vrot.slane %v3188_v59, 4  ;;  %v460_v16 = vrot.slane %v458_v1, 4  ;;  %v461_v17 = vshll.u32 %v7366_v52, 16  ;;  %v467_v18 = vshll.u32 %v7377_v60, 16  ;;  %v7423_v59 = vld [vmem:[%s7192_s19 + $0x84] sm:$0xf] }
  0x66   : > { %5994 = vmatmul.mubr.msk.bf16.gmra.mrb[28].mxu0 %vm684_vm3, %v5976_v2  ;;  %v446_v20 = vsel %vm7213_vm4, %v441_v3, %v445_v50  ;;  %v451_v21 = vrot.slane %v450_v7, 4  ;;  %v471_v23 = vshrl.u32 %v7377_v60, 16  ;;  %v477_v24 = vshll.u32 %v231_v0, 16  ;;  %v6011_v0 = vld [vmem:[%s7192_s19 + $0x2c] sm:$0x1] }
  0x67   : > { %3443 = vmatprep.mubr.bf16.mxu0 %v7074_v4  ;;  %v3192_v26 = vsel %vm7372_vm7, %v3190_v15, %v3191_v63  ;;  %v463_v29 = vrot.slane %v461_v17, 5  ;;  %v469_v30 = vrot.slane %v467_v18, 5  ;;  %v6052_v11 = vrot.slane %v6006_v9, 9  ;;  %v7430_v1 = vld [vmem:[%s7192_s19 + $0x88] sm:$0xf] }
  0x68   : > { %v456_v32 = vsel %vm7213_vm4, %v451_v21, %v455_v62  ;;  %v6068_v33 = vcombine.low %v3189_v8, %v3192_v26  ;;  %v473_v34 = vrot.slane %v471_v23, 4  ;;  %v479_v35 = vrot.slane %v477_v24, 5  ;;  %v233_v15 = vld [vmem:[%s7192_s19 + $0x8c] sm:$0x1] }
  0x69   : > { %v5742_v36 = vcombine.low %v446_v20, %v456_v32  ;;  %v464_v37 = vor.u32 %v463_v29, %v460_v16  ;;  %v3195_v38 = vrot.slane %v6007_v10, 5  ;;  %v3198_v39 = vrot.slane %v6008_v19, 5  ;;  %v6013_v29 = vld [vmem:[%s7192_s19 + $0x34] sm:$0xf] }
  0x6a   : > { %v474_v40 = vor.u32 %v473_v34, %v469_v30  ;;  %v482_v43 = vshrl.u32 %v7397_v25, 16  ;;  %v485_v44 = vshll.u32 %v7397_v25, 16  ;;  %v491_v45 = vshll.u32 %v7403_v31, 16 }
  0x6b   : > { %5760 = vmatmul.mubr.msk.bf16.gmra.mrb[32].mxu1 %vm684_vm3, %v5742_v36  ;;  %v465_v46 = vrot.slane %v464_v37, 4  ;;  %v3196_v47 = vsel %vm7372_vm7, %v6052_v11, %v3195_v38  ;;  %v3197_v13 = vrot.slane %v3195_v38, 4  ;;  %v495_v48 = vshrl.u32 %v7403_v31, 16  ;;  %v6012_v36 = vld [vmem:[%s7192_s19 + $0x30] sm:$0xe] }
  0x6c   : > { %862 = vmatprep.mubr.bf16.mxu1 %v7074_v4  ;;  %v475_v49 = vrot.slane %v474_v40, 4  ;;  %v484_v50 = vrot.slane %v482_v43, 4  ;;  %v487_v51 = vrot.slane %v485_v44, 5  ;;  %v493_v53 = vrot.slane %v491_v45, 5  ;;  %v7451_v37 = vld [vmem:[%s7192_s19 + $0x94] sm:$0xf] }
  0x6d   : > { %v470_v55 = vsel %vm7213_vm4, %v465_v46, %v469_v30  ;;  %v3199_v56 = vsel %vm7372_vm7, %v3197_v13, %v3198_v39  ;;  %v497_v12 = vrot.slane %v495_v48, 4  ;;  %v501_v27 = vshll.u32 %v232_v41, 16  ;;  %v6014_v41 = vld [vmem:[%s7192_s19 + $0x38] sm:$0x1] }
  0x6e   : > { %6086 = vmatmul.mubr.msk.bf16.vlgmr.msra.gmra.mrb[0].mxu0 %vm684_vm3, %v6068_v33  ;;  %v480_v61 = vsel %vm7213_vm4, %v475_v49, %v479_v35  ;;  %v6069_v62 = vcombine.low %v3196_v47, %v3199_v56  ;;  %v488_v63 = vor.u32 %v487_v51, %v484_v50  ;;  %v3202_v8 = vrot.slane %v6010_v54, 5  ;;  %v7446_v33 = vld [vmem:[%s7192_s19 + $0x90] sm:$0xf]  ;;  %v234_v44 = vld [vmem:[%s7192_s19 + $0x98] sm:$0x1] }
  0x6f   : > { %3850 = vmatpush1.bf16.msra.mxu0 %v7199_v14  ;;  %3453 = vmatprep.mubr.bf16.mxu0 %v7074_v4  ;;  %v5743_v2 = vcombine.low %v470_v55, %v480_v61  ;;  %v498_v3 = vor.u32 %v497_v12, %v493_v53  ;;  %v503_v7 = vrot.slane %v501_v27, 5  ;;  %v6053_v10 = vrot.slane %v6009_v58, 9 }
  0x70   : > { %v489_v9 = vrot.slane %v488_v63, 4  ;;  %v506_v16 = vshrl.u32 %v7423_v59, 16  ;;  %v509_v17 = vshll.u32 %v7423_v59, 16  ;;  %v3204_v19 = vrot.slane %v3202_v8, 4 }
  0x71   : > { %v499_v18 = vrot.slane %v498_v3, 4  ;;  %v3205_v20 = vrot.slane %v6011_v0, 5  ;;  %v515_v14 = vshll.u32 %v7430_v1, 16  ;;  %v519_v26 = vshrl.u32 %v7430_v1, 16  ;;  %v7471_v0 = vld [vmem:[%s7192_s19 + $0xa0] sm:$0xf] }
  0x72   : > { %v494_v21 = vsel %vm7213_vm4, %v489_v9, %v493_v53  ;;  %v508_v23 = vrot.slane %v506_v16, 4  ;;  %v511_v24 = vrot.slane %v509_v17, 5  ;;  %v525_v32 = vshll.u32 %v233_v15, 16  ;;  %v7466_v53 = vld [vmem:[%s7192_s19 + $0x9c] sm:$0xf] }
  0x73   : > { %5761 = vmatmul.mubr.msk.bf16.gmra.mrb[36].mxu1 %vm684_vm3, %v5743_v2  ;;  %v504_v30 = vsel %vm7213_vm4, %v499_v18, %v503_v7  ;;  %v517_v11 = vrot.slane %v515_v14, 5  ;;  %v521_v35 = vrot.slane %v519_v26, 4  ;;  %v3203_v39 = vsel %vm7372_vm7, %v6053_v10, %v3202_v8  ;;  %v6016_v7 = vld [vmem:[%s7192_s19 + $0x40] sm:$0xf]  ;;  %v6015_v10 = vld [vmem:[%s7192_s19 + $0x3c] sm:$0xe] }
  0x74   : > { %872 = vmatprep.mubr.bf16.mxu1 %v7074_v4  ;;  %v512_v34 = vor.u32 %v511_v24, %v508_v23  ;;  %v5744_v38 = vcombine.low %v494_v21, %v504_v30  ;;  %v3206_v40 = vsel %vm7372_vm7, %v3204_v19, %v3205_v20  ;;  %v3209_v43 = vrot.slane %v6013_v29, 5  ;;  %v6017_v15 = vld [vmem:[%s7192_s19 + $0x44] sm:$0x1]  ;;  %v7492_v23 = vld [vmem:[%s7192_s19 + $0xa8] sm:$0xf] }
  0x75   : > { %v522_v45 = vor.u32 %v521_v35, %v517_v11  ;;  %v527_v46 = vrot.slane %v525_v32, 5  ;;  %v530_v47 = vshrl.u32 %v7446_v33, 16  ;;  %v533_v13 = vshll.u32 %v7446_v33, 16  ;;  %v235_v16 = vld [vmem:[%s7192_s19 + $0xa4] sm:$0x1] }
  0x76   : > { %6087 = vmatmul.mubr.msk.bf16.gmra.mrb[4].mxu0 %vm684_vm3, %v6069_v62  ;;  %v513_v48 = vrot.slane %v512_v34, 4  ;;  %v6054_v49 = vrot.slane %v6012_v36, 9  ;;  %v539_v50 = vshll.u32 %v7451_v37, 16  ;;  %v543_v51 = vshrl.u32 %v7451_v37, 16 }
  0x77   : > { %3463 = vmatprep.mubr.bf16.mxu0 %v7074_v4  ;;  %v523_v54 = vrot.slane %v522_v45, 4  ;;  %v3212_v55 = vrot.slane %v6014_v41, 5  ;;  %v532_v56 = vrot.slane %v530_v47, 4  ;;  %v535_v12 = vrot.slane %v533_v13, 5 }
  0x78   : > { %v3211_v27 = vrot.slane %v3209_v43, 4  ;;  %v7468_v58 = vrot.slane %v539_v50, 5  ;;  %v545_v61 = vrot.slane %v543_v51, 4  ;;  %v549_v62 = vshll.u32 %v234_v44, 16 }
  0x79   : > { %v6070_v63 = vcombine.low %v3203_v39, %v3206_v40  ;;  %v518_v2 = vsel %vm7213_vm4, %v513_v48, %v517_v11  ;;  %v536_v3 = vor.u32 %v535_v12, %v532_v56  ;;  %v528_v8 = vsel %vm7213_vm4, %v523_v54, %v527_v46  ;;  %v7497_v11 = vld [vmem:[%s7192_s19 + $0xac] sm:$0xf]  ;;  %v6020_v56 = vld [vmem:[%s7192_s19 + $0x50] sm:$0x1] }
  0x7a   : > { %v546_v9 = vor.u32 %v545_v61, %v7468_v58  ;;  %v554_v17 = vshrl.u32 %v7466_v53, 16  ;;  %v557_v18 = vshll.u32 %v7466_v53, 16  ;;  %v3210_v19 = vsel %vm7372_vm7, %v6054_v49, %v3209_v43  ;;  %v6019_v40 = vld [vmem:[%s7192_s19 + $0x4c] sm:$0xf] }
  0x7b   : > { %5762 = vmatmul.mubr.msk.bf16.gmra.mrb[40].mxu1 %vm684_vm3, %v5744_v38  ;;  %v3213_v20 = vsel %vm7372_vm7, %v3211_v27, %v3212_v55  ;;  %v551_v14 = vrot.slane %v549_v62, 5  ;;  %v563_v21 = vshll.u32 %v7471_v0, 16  ;;  %v3216_v24 = vrot.slane %v6016_v7, 5  ;;  %v6018_v55 = vld [vmem:[%s7192_s19 + $0x48] sm:$0xe] }
  0x7c   : > { %882 = vmatprep.mubr.bf16.mxu1 %v7074_v4  ;;  %v556_v26 = vrot.slane %v554_v17, 4  ;;  %v559_v29 = vrot.slane %v557_v18, 5  ;;  %v567_v30 = vshrl.u32 %v7471_v0, 16  ;;  %v5745_v32 = vcombine.low %v518_v2, %v528_v8 }
  0x7d   : > { %v537_v34 = vrot.slane %v536_v3, 4  ;;  %v565_v35 = vrot.slane %v563_v21, 5  ;;  %v6071_v36 = vcombine.low %v3210_v19, %v3213_v20  ;;  %v547_v38 = vrot.slane %v546_v9, 4  ;;  %v7525_v19 = vld [vmem:[%s7192_s19 + $0xb8] sm:$0xf] }
  0x7e   : > { %6088 = vmatmul.mubr.msk.bf16.gmra.mrb[8].mxu0 %vm684_vm3, %v6070_v63  ;;  %v569_v39 = vrot.slane %v567_v30, 4  ;;  %v6055_v41 = vrot.slane %v6015_v10, 9  ;;  %v3219_v43 = vrot.slane %v6017_v15, 5  ;;  %v560_v44 = vor.u32 %v559_v29, %v556_v26  ;;  %v236_v63 = vld [vmem:[%s7192_s19 + $0xb0] sm:$0x1] }
  0x7f   : > { %3473 = vmatprep.mubr.bf16.mxu0 %v7074_v4  ;;  %v573_v45 = vshll.u32 %v235_v16, 16  ;;  %v3218_v46 = vrot.slane %v3216_v24, 4  ;;  %v578_v13 = vshrl.u32 %v7492_v23, 16  ;;  %v581_v48 = vshll.u32 %v7492_v23, 16  ;;  %v7522_v15 = vld [vmem:[%s7192_s19 + $0xb4] sm:$0xf] }
  0x80   : > { %v570_v47 = vor.u32 %v569_v39, %v565_v35  ;;  %v587_v49 = vshll.u32 %v7497_v11, 16  ;;  %v591_v50 = vshrl.u32 %v7497_v11, 16  ;;  %v542_v51 = vsel %vm7213_vm4, %v537_v34, %v7468_v58  ;;  %v7530_v20 = vld.sshfl [vmem:[%s8658_s1 + $0x8] sm:$0x33 pattern:$0x76325410] }
  0x81   : > { %v552_v54 = vsel %vm7213_vm4, %v547_v38, %v551_v14  ;;  %v561_v12 = vrot.slane %v560_v44, 4  ;;  %v575_v61 = vrot.slane %v573_v45, 5  ;;  %v3223_v62 = vrot.slane %v6019_v40, 5  ;;  %v6021_v39 = vld [vmem:[%s7192_s19 + $0x54] sm:$0xe] }
  0x82   : > { %v571_v27 = vrot.slane %v570_v47, 4  ;;  %v3217_v2 = vsel %vm7372_vm7, %v6055_v41, %v3216_v24  ;;  %v3220_v58 = vsel %vm7372_vm7, %v3218_v46, %v3219_v43  ;;  %v580_v3 = vrot.slane %v578_v13, 4  ;;  %v6023_v44 = vld [vmem:[%s7192_s19 + $0x5c] sm:$0x1] }
  0x83   : > { %5763 = vmatmul.mubr.msk.bf16.gmra.mrb[44].mxu1 %vm684_vm3, %v5745_v32  ;;  %v583_v7 = vrot.slane %v581_v48, 5  ;;  %v5746_v8 = vcombine.low %v542_v51, %v552_v54  ;;  %v589_v9 = vrot.slane %v587_v49, 5  ;;  %v593_v10 = vrot.slane %v591_v50, 4  ;;  %v6022_v32 = vld [vmem:[%s7192_s19 + $0x58] sm:$0xf] }
  0x84   : > { %892 = vmatprep.mubr.bf16.mxu1 %v7074_v4  ;;  %v6072_v16 = vcombine.low %v3217_v2, %v3220_v58  ;;  %v6056_v17 = vrot.slane %v6018_v55, 9  ;;  %v3226_v18 = vrot.slane %v6020_v56, 5  ;;  %v566_v14 = vsel %vm7213_vm4, %v561_v12, %v565_v35  ;;  %v237_v45 = vld [vmem:[%s7192_s19 + $0xbc] sm:$0x1] }
  0x85   : > { %v576_v21 = vsel %vm7213_vm4, %v571_v27, %v575_v61  ;;  %v3225_v24 = vrot.slane %v3223_v62, 4  ;;  %v597_v26 = vshll.u32 %v236_v63, 16  ;;  %v584_v29 = vor.u32 %v583_v7, %v580_v3  ;;  %v6025_v7 = vld [vmem:[%s7192_s19 + $0x64] sm:$0xf] }
  0x86   : > { %6089 = vmatmul.mubr.msk.bf16.gmra.mrb[12].mxu0 %vm684_vm3, %v6071_v36  ;;  %v594_v30 = vor.u32 %v593_v10, %v589_v9  ;;  %v602_v34 = vshrl.u32 %v7522_v15, 16  ;;  %v605_v36 = vshll.u32 %v7522_v15, 16  ;;  %v611_v35 = vshll.u32 %v7525_v19, 16  ;;  %v6024_v10 = vld [vmem:[%s7192_s19 + $0x60] sm:$0xe] }
  0x87   : > { %3483 = vmatprep.mubr.bf16.mxu0 %v7074_v4  ;;  %v615_v38 = vshrl.u32 %v7525_v19, 16  ;;  %v5747_v40 = vcombine.low %v566_v14, %v576_v21  ;;  %v3224_v41 = vsel %vm7372_vm7, %v6056_v17, %v3223_v62  ;;  %v3227_v43 = vsel %vm7372_vm7, %v3225_v24, %v3226_v18  ;;  %v6026_v18 = vld [vmem:[%s7192_s19 + $0x68] sm:$0x1] }
  0x88   : > { %v1538_v46 = vcombine.high %v7530_v20, %v7530_v20  ;;  %v585_v47 = vrot.slane %v584_v29, 4  ;;  %v595_v13 = vrot.slane %v594_v30, 4  ;;  %v599_v48 = vrot.slane %v597_v26, 5 }
  0x89   : > { %v3230_v49 = vrot.slane %v6022_v32, 5  ;;  %v604_v50 = vrot.slane %v602_v34, 4  ;;  %v607_v51 = vrot.slane %v605_v36, 5  ;;  %v613_v54 = vrot.slane %v611_v35, 5 }
  0x8a   : > { %v617_v55 = vrot.slane %v615_v38, 4  ;;  %5836 = vmatprep.subr.msk.bf16.mxu1 %vm733_vm0, %v1538_v46  ;;  %v6073_v56 = vcombine.low %v3224_v41, %v3227_v43  ;;  %v6057_v12 = vrot.slane %v6021_v39, 9  ;;  %v3233_v61 = vrot.slane %v6023_v44, 5  ;;  %v6028_v38 = vld [vmem:[%s7192_s19 + $0x70] sm:$0xf] }
  0x8b   : > { %5764 = vmatmul.mubr.msk.bf16.gmra.mrb[48].mxu1 %vm684_vm3, %v5746_v8  ;;  %v3232_v27 = vrot.slane %v3230_v49, 4  ;;  %v621_v62 = vshll.u32 %v237_v45, 16  ;;  %v590_v63 = vsel %vm7213_vm4, %v585_v47, %v589_v9  ;;  %v600_v2 = vsel %vm7213_vm4, %v595_v13, %v599_v48  ;;  %v7573_v30 = vld.sshfl [vmem:[%s8658_s1 + $0x1c] sm:$0x33 pattern:$0x76325410] }
  0x8c   : > { %902 = vmatprep.mubr.bf16.mxu1 %v7074_v4  ;;  %v608_v58 = vor.u32 %v607_v51, %v604_v50  ;;  %v618_v3 = vor.u32 %v617_v55, %v613_v54  ;;  %v3231_v8 = vsel %vm7372_vm7, %v6057_v12, %v3230_v49  ;;  %v3237_v14 = vrot.slane %v6025_v7, 5  ;;  %v6029_v46 = vld [vmem:[%s7192_s19 + $0x74] sm:$0x1] }
  0x8d   : > { %v3234_v17 = vsel %vm7372_vm7, %v3232_v27, %v3233_v61  ;;  %v623_v9 = vrot.slane %v621_v62, 5  ;;  %v6058_v29 = vrot.slane %v6024_v10, 9  ;;  %v3240_v34 = vrot.slane %v6026_v18, 5  ;;  %v6031_v61 = vld [vmem:[%s7192_s19 + $0x7c] sm:$0xf] }
  0x8e   : > { %6090 = vmatmul.mubr.msk.bf16.gmra.mrb[16].mxu0 %vm684_vm3, %v6072_v16  ;;  %v5748_v16 = vcombine.low %v590_v63, %v600_v2  ;;  %v609_v21 = vrot.slane %v608_v58, 4  ;;  %v619_v24 = vrot.slane %v618_v3, 4  ;;  %v6074_v26 = vcombine.low %v3231_v8, %v3234_v17  ;;  %v7614_v62 = vld.sshfl [vmem:[%s8658_s1 + $0xc] sm:$0x33 pattern:$0x76325410] }
  0x8f   : > { %3493 = vmatprep.mubr.bf16.mxu0 %v7074_v4  ;;  %v3239_v32 = vrot.slane %v3237_v14, 4  ;;  %v3238_v39 = vsel %vm7372_vm7, %v6058_v29, %v3237_v14  ;;  %v3244_v44 = vrot.slane %v6028_v38, 5  ;;  %v4596_v45 = vcombine.high %v7573_v30, %v7573_v30  ;;  %v6978_v63 = vld [vmem:[%s7192_s19] sm:$0xf]  ;;  %v6979_v2 = vld [vmem:[%s7192_s19 + $0x4] sm:$0xf] }
  0x90   : > { %v614_v36 = vsel %vm7213_vm4, %v609_v21, %v613_v54  ;;  %v624_v35 = vsel %vm7213_vm4, %v619_v24, %v623_v9  ;;  %v5777_v47 = vcombine.low %v7366_v52, %v7377_v60  ;;  %v5778_v13 = vcombine.low %v7397_v25, %v7403_v31  ;;  %v6030_v10 = vld [vmem:[%s7192_s19 + $0x78] sm:$0xe]  ;;  %v6981_v29 = vld [vmem:[%s7192_s19 + $0x10] sm:$0xf]  ;;  %v6033_v38 = vld [vmem:[%s7192_s19 + $0x84] sm:$0xe] }
  0x91   : > { %v5749_v41 = vcombine.low %v614_v36, %v624_v35  ;;  %v3241_v43 = vsel %vm7372_vm7, %v3239_v32, %v3240_v34  ;;  %6235 = vmatprep.subr.msk.bf16.mxu0 %vm733_vm0, %v4596_v45  ;;  %v5779_v48 = vcombine.low %v7423_v59, %v7430_v1  ;;  %v5780_v50 = vcombine.low %v7446_v33, %v7451_v37  ;;  %v6037_v45 = vld [vmem:[%s7192_s19 + $0x94] sm:$0xf]  ;;  %v6945_v52 = vld [vmem:[%s7192_s19 + $0x3c] sm:$0xff]   ;;  %v6947_v60 = vld [vmem:[%s7192_s19 + $0x48] sm:$0xff]  }
  0x92   : > { %v6075_v49 = vcombine.low %v3238_v39, %v3241_v43  ;;  %v5781_v51 = vcombine.low %v7466_v53, %v7471_v0  ;;  %v5782_v54 = vcombine.low %v7492_v23, %v7497_v11  ;;  %v3247_v12 = vrot.slane %v6029_v46, 5  ;;  %v6035_v39 = vld [vmem:[%s7192_s19 + $0x8c] sm:$0x1]  ;;  %v6982_v46 = vld [vmem:[%s7192_s19 + $0x18] sm:$0xf]  ;;  %v6951_v59 = vld [vmem:[%s7192_s19 + $0x60] sm:$0xff]  }
  0x93   : > { %5765 = vmatmul.mubr.msk.bf16.gmra.mrb[52].mxu1 %vm684_vm3, %v5747_v40  ;;  %v6027_v40 = vld [vmem:[%s7192_s19 + $0x6c] sm:$0xe]  ;;  %v5783_v27 = vcombine.low %v7522_v15, %v7525_v19  ;;  %v5768_v58 = vcombine.low %v6978_v63, %v6979_v2  ;;  %v3251_v8 = vrot.slane %v6031_v61, 5  ;;  %v1588_v17 = vsel %vm733_vm0, %v7530_v20, 0  ;;  %v6036_v63 = vld [vmem:[%s7192_s19 + $0x90] sm:$0xe] }
  0x94   : > { %912 = vmatprep.mubr.bf16.mxu1 %v7074_v4  ;;  %v6059_v55 = vrot.slane %v6027_v40, 9  ;;  %v1976_v9 = vcombine.high %v7614_v62, %v7614_v62  ;;  %v6060_v14 = vrot.slane %v6030_v10, 9  ;;  %v6980_v20 = vld [vmem:[%s7192_s19 + $0xc] sm:$0xf]  ;;  %v3265_v61 = vrot.slane %v6037_v45, 5  ;;  %v6949_v25 = vld [vmem:[%s7192_s19 + $0x54] sm:$0xff]  }
  0x95   : > { %v3253_v21 = vrot.slane %v3251_v8, 4  ;;  %v5769_v32 = vcombine.low %v6980_v20, %v6981_v29  ;;  %v6038_v2 = vld [vmem:[%s7192_s19 + $0x98] sm:$0x1]  ;;  %v6040_v10 = vld [vmem:[%s7192_s19 + $0xa0] sm:$0xf] }
  0x96   : > { %6091 = vmatmul.mubr.msk.bf16.gmra.mrb[20].mxu0 %vm684_vm3, %v6073_v56  ;;  %v3246_v56 = vrot.slane %v3244_v44, 4  ;;  %v3245_v3 = vsel %vm7372_vm7, %v6059_v55, %v3244_v44  ;;  %v3252_v34 = vsel %vm7372_vm7, %v6060_v14, %v3251_v8  ;;  %v3261_v44 = vrot.slane %v6035_v39, 5  ;;  %v6044_v45 = vld [vmem:[%s7192_s19 + $0xb0] sm:$0x1]  ;;  %v1270_v31 = vld [vmem:[%s7192_s19 + $0x4] sm:$0xf] }
  0x97   : > { %3503 = vmatprep.mubr.bf16.mxu0 %v7074_v4  ;;  %v3268_v8 = vrot.slane %v6038_v2, 5  ;;  %v1370_v1 = vrot.slane %v1270_v31, 5  ;;  %v1269_v33 = vld [vmem:[%s7192_s19] sm:$0xe]  ;;  %v1271_v37 = vld [vmem:[%s7192_s19 + $0x8] sm:$0x1] }
  0x98   : > { %v3248_v7 = vsel %vm7372_vm7, %v3246_v56, %v3247_v12  ;;  %v5802_v53 = vrot.slane %v1269_v33, 9  ;;  %v1286_v31 = vld [vmem:[%s7192_s19 + $0x44] sm:$0x1] }
  0x99   : > { %v6076_v18 = vcombine.low %v3245_v3, %v3248_v7  ;;  %v6062_v3 = vrot.slane %v6036_v63, 9  ;;  %v3267_v7 = vrot.slane %v3265_v61, 4  ;;  %v6989_v63 = vld [vmem:[%s7192_s19 + $0x40] sm:$0xf]  ;;  %v1372_v0 = vrot.slane %v1370_v1, 4 }
  0x9a   : > { %v1371_v23 = vsel %vm7372_vm7, %v5802_v53, %v1370_v1  ;;  %v1288_v53 = vld [vmem:[%s7192_s19 + $0x4c] sm:$0xf] }
  0x9b   : > { %5766 = vmatmul.mubr.msk.bf16.gmra.mrb[56].mxu1 %vm684_vm3, %v5748_v16  ;;  %v6032_v16 = vld [vmem:[%s7192_s19 + $0x80] sm:$0x1]  ;;  %v3269_v14 = vsel %vm7372_vm7, %v3267_v7, %v3268_v8  ;;  %v6045_v8 = vld [vmem:[%s7192_s19 + $0xb4] sm:$0xe] }
  0x9c   : > { %922 = vmatprep.mubr.bf16.mxu1 %v7074_v4  ;;  %v3254_v24 = vrot.slane %v6032_v16, 5  ;;  %v6984_v16 = vld [vmem:[%s7192_s19 + $0x24] sm:$0xf] }
  0x9e   : > { %6092 = vmatmul.mubr.msk.bf16.gmra.mrb[24].mxu0 %vm684_vm3, %v6074_v26  ;;  %v6034_v26 = vld [vmem:[%s7192_s19 + $0x88] sm:$0xf]  ;;  %v3255_v36 = vsel %vm7372_vm7, %v3253_v21, %v3254_v24  ;;  %v3272_v21 = vrot.slane %v6040_v10, 5  ;;  %v6039_v24 = vld [vmem:[%s7192_s19 + $0x9c] sm:$0xe] }
  0x9f   : > { %3513 = vmatprep.mubr.bf16.mxu0 %v7074_v4  ;;  %v3258_v35 = vrot.slane %v6034_v26, 5  ;;  %v6077_v40 = vcombine.low %v3252_v34, %v3255_v36  ;;  %v6041_v26 = vld [vmem:[%s7192_s19 + $0xa4] sm:$0x1]  ;;  %v6063_v29 = vrot.slane %v6039_v24, 9  ;;  %v6043_v36 = vld [vmem:[%s7192_s19 + $0xac] sm:$0xf] }
  0xa0   : > { %v3275_v34 = vrot.slane %v6041_v26, 5  ;;  %v6047_v10 = vld [vmem:[%s7192_s19 + $0xbc] sm:$0x1]  ;;  %v6991_v24 = vld [vmem:[%s7192_s19 + $0x4c] sm:$0xf] }
  0xa1   : > { %v3260_v43 = vrot.slane %v3258_v35, 4 }
  0xa3   : > { %5767 = vmatmul.mubr.msk.bf16.gmra.mrb[60].mxu1 %vm684_vm3, %v5749_v41  ;;  %v6061_v41 = vrot.slane %v6033_v38, 9  ;;  %v3262_v12 = vsel %vm7372_vm7, %v3260_v43, %v3261_v44  ;;  %v6987_v38 = vld [vmem:[%s7192_s19 + $0x34] sm:$0xf]  ;;  %v3279_v43 = vrot.slane %v6043_v36, 5  ;;  %v6042_v44 = vld [vmem:[%s7192_s19 + $0xa8] sm:$0xe] }
  0xa4   : > { %1108 = vmatprep.mubr.bf16.mxu1 %v7074_v4  ;;  %v6050_v36 = vld [vmem:[%s7192_s19 + $0xc8] sm:$0x1] }
  0xa5   : > { %v3259_v56 = vsel %vm7372_vm7, %v6061_v41, %v3258_v35  ;;  %v6986_v35 = vld [vmem:[%s7192_s19 + $0x30] sm:$0xf] }
  0xa6   : > { %6093 = vmatmul.mubr.msk.bf16.gmra.mrb[28].mxu0 %vm684_vm3, %v6075_v49  ;;  %v6983_v49 = vld [vmem:[%s7192_s19 + $0x1c] sm:$0xf]  ;;  %v5772_v39 = vcombine.low %v6986_v35, %v6987_v38 }
  0xa7   : > { %3523 = vmatprep.mubr.bf16.mxu0 %v7074_v4  ;;  %v5770_v55 = vcombine.low %v6982_v46, %v6983_v49  ;;  %v6064_v49 = vrot.slane %v6042_v44, 9 }
  0xab   : > { %5786 = vmatmul.mubr.msk.bf16.vlgmr.msra.gmra.mrb[0].mxu1 %vm684_vm3, %v5768_v58  ;;  %v6078_v58 = vcombine.low %v3259_v56, %v3262_v12  ;;  %v3282_v56 = vrot.slane %v6044_v45, 5  ;;  %v6046_v12 = vld [vmem:[%s7192_s19 + $0xb8] sm:$0xf] }
  0xac   : > { %1594 = vmatpush1.bf16.msra.mxu1 %v1588_v17  ;;  %1118 = vmatprep.mubr.bf16.mxu1 %v7074_v4  ;;  %v6985_v17 = vld [vmem:[%s7192_s19 + $0x28] sm:$0xf]  ;;  %v3286_v7 = vrot.slane %v6046_v12, 5  ;;  %v6939_v12 = vld [vmem:[%s7192_s19 + $0x18] sm:$0xff]  }
  0xad   : > { %5903 = vmatprep.subr.msk.bf16.mxu1 %vm733_vm0, %v1976_v9  ;;  %v5771_v9 = vcombine.low %v6984_v16, %v6985_v17  ;;  %v6065_v17 = vrot.slane %v6045_v8, 9 }
  0xae   : > { %6094 = vmatmul.mubr.msk.bf16.gmra.mrb[32].mxu0 %vm684_vm3, %v6076_v18  ;;  %v3266_v18 = vsel %vm7372_vm7, %v6062_v3, %v3265_v61  ;;  %v6988_v61 = vld [vmem:[%s7192_s19 + $0x3c] sm:$0xf] }
  0xaf   : > { %3533 = vmatprep.mubr.bf16.mxu0 %v7074_v4  ;;  %v6079_v20 = vcombine.low %v3266_v18, %v3269_v14  ;;  %v5773_v2 = vcombine.low %v6988_v61, %v6989_v63  ;;  %v3289_v18 = vrot.slane %v6047_v10, 5  ;;  %v6049_v14 = vld [vmem:[%s7192_s19 + $0xc4] sm:$0xf]  ;;  %v4646_v61 = vsel %vm733_vm0, %v7573_v30, 0 }
  0xb0   : > { %v1373_v30 = vrot.slane %v1271_v37, 5  ;;  %v1408_v37 = vrot.slane %v1286_v31, 5 }
  0xb2   : > { %v1374_v11 = vsel %vm7372_vm7, %v1372_v0, %v1373_v30  ;;  %v6958_v0 = vld [vmem:[%s7192_s19 + $0xa8] sm:$0xff]  }
  0xb3   : > { %5787 = vmatmul.mubr.msk.bf16.gmra.mrb[4].mxu1 %vm684_vm3, %v5769_v32  ;;  %v3274_v32 = vrot.slane %v3272_v21, 4  ;;  %v5819_v15 = vcombine.low %v1371_v23, %v1374_v11  ;;  %v1287_v23 = vld [vmem:[%s7192_s19 + $0x48] sm:$0xe]  ;;  %v1289_v11 = vld [vmem:[%s7192_s19 + $0x50] sm:$0x1] }
  0xb4   : > { %1128 = vmatprep.mubr.bf16.mxu1 %v7074_v4 }
  0xb5   : > { %v3276_v41 = vsel %vm7372_vm7, %v3274_v32, %v3275_v34  ;;  %v3293_v32 = vrot.slane %v6049_v14, 5  ;;  %v6048_v34 = vld [vmem:[%s7192_s19 + $0xc0] sm:$0xe] }
  0xb6   : > { %6095 = vmatmul.mubr.msk.bf16.gmra.mrb[36].mxu0 %vm684_vm3, %v6077_v40  ;;  %v3273_v40 = vsel %vm7372_vm7, %v6063_v29, %v3272_v21  ;;  %v6990_v21 = vld [vmem:[%s7192_s19 + $0x48] sm:$0xf]  ;;  %v6066_v38 = vrot.slane %v6048_v34, 9 }
  0xb7   : > { %3543 = vmatprep.mubr.bf16.mxu0 %v7074_v4  ;;  %v6080_v46 = vcombine.low %v3273_v40, %v3276_v41  ;;  %v5774_v26 = vcombine.low %v6990_v21, %v6991_v24  ;;  %v3296_v40 = vrot.slane %v6050_v36, 5  ;;  %v6992_v41 = vld [vmem:[%s7192_s19 + $0x54] sm:$0xf]  ;;  %v1279_v21 = vld [vmem:[%s7192_s19 + $0x28] sm:$0xf] }
  0xb8   : > { %v3294_v45 = vsel %vm7372_vm7, %v6066_v38, %v3293_v32  ;;  %v6955_v24 = vld [vmem:[%s7192_s19 + $0x84] sm:$0xff]  }
  0xbb   : > { %5788 = vmatmul.mubr.msk.bf16.gmra.mrb[8].mxu1 %vm684_vm3, %v5770_v55  ;;  %v3281_v55 = vrot.slane %v3279_v43, 4 }
  0xbc   : > { %1138 = vmatprep.mubr.bf16.mxu1 %v7074_v4 }
  0xbd   : > { %v3283_v3 = vsel %vm7372_vm7, %v3281_v55, %v3282_v56  ;;  %v5776_v55 = vcombine.low %v7344_v22, %v7349_v28  ;;  %v7727_v56 = vld.sshfl [vmem:[%s8658_s1 + $0x20] sm:$0x33 pattern:$0x76325410]  ;;  %v6941_v22 = vld [vmem:[%s7192_s19 + $0x24] sm:$0xff]   ;;  %v6943_v28 = vld [vmem:[%s7192_s19 + $0x30] sm:$0xff]  }
  0xbe   : > { %6096 = vmatmul.mubr.msk.bf16.gmra.mrb[40].mxu0 %vm684_vm3, %v6078_v58  ;;  %v3280_v58 = vsel %vm7372_vm7, %v6064_v49, %v3279_v43  ;;  %v6993_v43 = vld [vmem:[%s7192_s19 + $0x58] sm:$0xf]  ;;  %v5174_v63 = vcombine.high %v7727_v56, %v7727_v56 }
  0xbf   : > { %3553 = vmatprep.mubr.bf16.mxu0 %v7074_v4  ;;  %v6081_v16 = vcombine.low %v3280_v58, %v3283_v3  ;;  %v5775_v44 = vcombine.low %v6992_v41, %v6993_v43  ;;  %v1276_v58 = vld [vmem:[%s7192_s19 + $0x1c] sm:$0xf] }
  0xc0   : > { %v6954_v3 = vld [vmem:[%s7192_s19 + $0x78] sm:$0xff]   ;;  %v1384_v10 = vrot.slane %v1276_v58, 5 }
  0xc1   : > { %v1292_v58 = vld [vmem:[%s7192_s19 + $0x5c] sm:$0x1] }
  0xc3   : > { %5789 = vmatmul.mubr.msk.bf16.gmra.mrb[12].mxu1 %vm684_vm3, %v5771_v9  ;;  %v3288_v9 = vrot.slane %v3286_v7, 4 }
  0xc4   : > { %1148 = vmatprep.mubr.bf16.mxu1 %v7074_v4 }
  0xc5   : > { %v3290_v29 = vsel %vm7372_vm7, %v3288_v9, %v3289_v18  ;;  %v1386_v18 = vrot.slane %v1384_v10, 4 }
  0xc6   : > { %6097 = vmatmul.mubr.msk.bf16.gmra.mrb[44].mxu0 %vm684_vm3, %v6079_v20  ;;  %v3287_v20 = vsel %vm7372_vm7, %v6065_v17, %v3286_v7  ;;  %v1277_v17 = vld [vmem:[%s7192_s19 + $0x20] sm:$0x1] }
  0xc7   : > { %3563 = vmatprep.mubr.bf16.mxu0 %v7074_v4  ;;  %v6082_v35 = vcombine.low %v3287_v20, %v3290_v29  ;;  %v1387_v14 = vrot.slane %v1277_v17, 5  ;;  %v1391_v20 = vrot.slane %v1279_v21, 5  ;;  %v1278_v29 = vld [vmem:[%s7192_s19 + $0x24] sm:$0xe] }
  0xc8   : > { %v5805_v36 = vrot.slane %v1278_v29, 9 }
  0xca   : > { %v1392_v41 = vsel %vm7372_vm7, %v5805_v36, %v1391_v20  ;;  %v6171_v36 = vld [vmem:[%s7192_s19 + $0x20] sm:$0x1] }
  0xcb   : > { %5790 = vmatmul.mubr.msk.bf16.gmra.mrb[16].mxu1 %vm684_vm3, %v5772_v39  ;;  %v3295_v39 = vrot.slane %v3293_v32, 4  ;;  %v1280_v32 = vld [vmem:[%s7192_s19 + $0x2c] sm:$0x1] }
  0xcc   : > { %1158 = vmatprep.mubr.bf16.mxu1 %v7074_v4  ;;  %v1394_v38 = vrot.slane %v1280_v32, 5 }
  0xce   : > { %6098 = vmatmul.mubr.msk.bf16.gmra.mrb[48].mxu0 %vm684_vm3, %v6080_v46  ;;  %v3297_v46 = vsel %vm7372_vm7, %v3295_v39, %v3296_v40  ;;  %v1282_v39 = vld [vmem:[%s7192_s19 + $0x34] sm:$0xf] }
  0xcf   : > { %3573 = vmatprep.mubr.bf16.mxu0 %v7074_v4  ;;  %v6083_v49 = vcombine.low %v3294_v45, %v3297_v46  ;;  %v6956_v40 = vld [vmem:[%s7192_s19 + $0x90] sm:$0xff]   ;;  %v1283_v46 = vld [vmem:[%s7192_s19 + $0x38] sm:$0x1] }
  0xd0   : > { %v1281_v45 = vld [vmem:[%s7192_s19 + $0x30] sm:$0xe] }
  0xd3   : > { %5791 = vmatmul.mubr.msk.bf16.gmra.mrb[20].mxu1 %vm684_vm3, %v5773_v2  ;;  %v2026_v2 = vsel %vm733_vm0, %v7614_v62, 0 }
  0xd4   : > { %1168 = vmatprep.mubr.bf16.mxu1 %v7074_v4 }
  0xd6   : > { %6099 = vmatmul.mubr.msk.bf16.gmra.mrb[52].mxu0 %vm684_vm3, %v6081_v16  ;;  %v1275_v16 = vld [vmem:[%s7192_s19 + $0x18] sm:$0xe] }
  0xd7   : > { %3583 = vmatprep.mubr.bf16.mxu0 %v7074_v4  ;;  %v5804_v9 = vrot.slane %v1275_v16, 9 }
  0xdb   : > { %5792 = vmatmul.mubr.msk.bf16.gmra.mrb[24].mxu1 %vm684_vm3, %v5774_v26  ;;  %v1385_v26 = vsel %vm7372_vm7, %v5804_v9, %v1384_v10 }
  0xdc   : > { %1178 = vmatprep.mubr.bf16.mxu1 %v7074_v4 }
  0xde   : > { %6100 = vmatmul.mubr.msk.bf16.gmra.mrb[56].mxu0 %vm684_vm3, %v6082_v35  ;;  %v1393_v35 = vrot.slane %v1391_v20, 4  ;;  %v6960_v20 = vld [vmem:[%s7192_s19 + $0xc0] sm:$0xff]  }
  0xdf   : > { %3593 = vmatprep.mubr.bf16.mxu0 %v7074_v4 }
  0xe0   : > { %v1395_v43 = vsel %vm7372_vm7, %v1393_v35, %v1394_v38 }
  0xe3   : > { %5793 = vmatmul.mubr.msk.bf16.gmra.mrb[28].mxu1 %vm684_vm3, %v5775_v44  ;;  %v1398_v44 = vrot.slane %v1282_v39, 5 }
  0xe4   : > { %1188 = vmatprep.mubr.bf16.mxu1 %v7074_v4 }
  0xe6   : > { %6101 = vmatmul.mubr.msk.bf16.gmra.mrb[60].mxu0 %vm684_vm3, %v6083_v49  ;;  %v5822_v49 = vcombine.low %v1392_v41, %v1395_v43  ;;  %v1293_v41 = vld [vmem:[%s7192_s19 + $0x60] sm:$0xe] }
  0xe7   : > { %3881 = vmatprep.mubr.bf16.mxu0 %v7074_v4 }
  0xeb   : > { %5794 = vmatmul.mubr.msk.bf16.gmra.mrb[32].mxu1 %vm684_vm3, %v5776_v55  ;;  %v5806_v55 = vrot.slane %v1281_v45, 9 }
  0xec   : > { %1198 = vmatprep.mubr.bf16.mxu1 %v7074_v4 }
  0xee   : > { %6153 = vmatmul.mubr.msk.bf16.vlgmr.msra.gmra.mrb[0].mxu0 %vm684_vm3, %v6939_v12  ;;  %v1400_v12 = vrot.slane %v1398_v44, 4 }
  0xef   : > { %4652 = vmatpush1.bf16.msra.mxu0 %v4646_v61  ;;  %3891 = vmatprep.mubr.bf16.mxu0 %v7074_v4  ;;  %v1401_v61 = vrot.slane %v1283_v46, 5  ;;  %v1295_v46 = vld [vmem:[%s7192_s19 + $0x68] sm:$0x1] }
  0xf0   : > { %6334 = vmatprep.subr.msk.bf16.mxu0 %vm733_vm0, %v5174_v63  ;;  %v1285_v63 = vld [vmem:[%s7192_s19 + $0x40] sm:$0xf] }
  0xf3   : > { %5795 = vmatmul.mubr.msk.bf16.gmra.mrb[36].mxu1 %vm684_vm3, %v5777_v47  ;;  %v1273_v47 = vld [vmem:[%s7192_s19 + $0x10] sm:$0xf] }
  0xf4   : > { %1208 = vmatprep.mubr.bf16.mxu1 %v7074_v4 }
  0xf6   : > { %6154 = vmatmul.mubr.msk.bf16.gmra.mrb[4].mxu0 %vm684_vm3, %v6941_v22  ;;  %v6957_v22 = vld [vmem:[%s7192_s19 + $0x9c] sm:$0xff]  }
  0xf7   : > { %3901 = vmatprep.mubr.bf16.mxu0 %v7074_v4 }
  0xfb   : > { %5796 = vmatmul.mubr.msk.bf16.gmra.mrb[40].mxu1 %vm684_vm3, %v5778_v13  ;;  %v6953_v13 = vld [vmem:[%s7192_s19 + $0x6c] sm:$0xff]  }
  0xfc   : > { %1218 = vmatprep.mubr.bf16.mxu1 %v7074_v4 }
  0xfe   : > { %6155 = vmatmul.mubr.msk.bf16.gmra.mrb[8].mxu0 %vm684_vm3, %v6943_v28  ;;  %v1399_v28 = vsel %vm7372_vm7, %v5806_v55, %v1398_v44 }
  0xff   : > { %3911 = vmatprep.mubr.bf16.mxu0 %v7074_v4 }
 0x103   : > { %5797 = vmatmul.mubr.msk.bf16.gmra.mrb[44].mxu1 %vm684_vm3, %v5779_v48  ;;  %v1377_v48 = vrot.slane %v1273_v47, 5 }
 0x104   : > { %1228 = vmatprep.mubr.bf16.mxu1 %v7074_v4 }
 0x106   : > { %6156 = vmatmul.mubr.msk.bf16.gmra.mrb[12].mxu0 %vm684_vm3, %v6945_v52  ;;  %v1402_v52 = vsel %vm7372_vm7, %v1400_v12, %v1401_v61  ;;  %v5810_v61 = vrot.slane %v1293_v41, 9 }
 0x107   : > { %3921 = vmatprep.mubr.bf16.mxu0 %v7074_v4 }
 0x10b   : > { %5798 = vmatmul.mubr.msk.bf16.gmra.mrb[48].mxu1 %vm684_vm3, %v5780_v50  ;;  %v1272_v50 = vld [vmem:[%s7192_s19 + $0xc] sm:$0xe] }
 0x10c   : > { %1238 = vmatprep.mubr.bf16.mxu1 %v7074_v4  ;;  %v5803_v19 = vrot.slane %v1272_v50, 9 }
 0x10e   : > { %6157 = vmatmul.mubr.msk.bf16.gmra.mrb[16].mxu0 %vm684_vm3, %v6947_v60  ;;  %v1378_v7 = vsel %vm7372_vm7, %v5803_v19, %v1377_v48  ;;  %v1405_v60 = vrot.slane %v1285_v63, 5  ;;  %v1415_v19 = vrot.slane %v1289_v11, 5 }
 0x10f   : > { %3931 = vmatprep.mubr.bf16.mxu0 %v7074_v4 }
 0x110   : > { %v1407_v33 = vrot.slane %v1405_v60, 4 }
 0x112   : > { %v1409_v47 = vsel %vm7372_vm7, %v1407_v33, %v1408_v37 }
 0x113   : > { %5799 = vmatmul.mubr.msk.bf16.gmra.mrb[52].mxu1 %vm684_vm3, %v5781_v51  ;;  %v1274_v51 = vld [vmem:[%s7192_s19 + $0x14] sm:$0x1] }
 0x114   : > { %1248 = vmatprep.mubr.bf16.mxu1 %v7074_v4 }
 0x116   : > { %6158 = vmatmul.mubr.msk.bf16.gmra.mrb[20].mxu0 %vm684_vm3, %v6949_v25  ;;  %v1284_v25 = vld [vmem:[%s7192_s19 + $0x3c] sm:$0xe] }
 0x117   : > { %3941 = vmatprep.mubr.bf16.mxu0 %v7074_v4  ;;  %v5807_v1 = vrot.slane %v1284_v25, 9 }
 0x119   : > { %v1406_v30 = vsel %vm7372_vm7, %v5807_v1, %v1405_v60  ;;  %v1429_v60 = vrot.slane %v1295_v46, 5  ;;  %v6174_v1 = vld [vmem:[%s7192_s19 + $0x2c] sm:$0x1] }
 0x11a   : > { %v5824_v50 = vcombine.low %v1406_v30, %v1409_v47  ;;  %v6961_v30 = vld [vmem:[%s7192_s19 + $0xcc] sm:$0xff]  }
 0x11b   : > { %5800 = vmatmul.mubr.msk.bf16.gmra.mrb[56].mxu1 %vm684_vm3, %v5782_v54  ;;  %v1379_v54 = vrot.slane %v1377_v48, 4  ;;  %v1291_v48 = vld [vmem:[%s7192_s19 + $0x58] sm:$0xf] }
 0x11c   : > { %1258 = vmatprep.mubr.bf16.mxu1 %v7074_v4 }
 0x11e   : > { %6159 = vmatmul.mubr.msk.bf16.gmra.mrb[24].mxu0 %vm684_vm3, %v6951_v59  ;;  %v5823_v59 = vcombine.low %v1399_v28, %v1402_v52  ;;  %v4174_v28 = vshll.u32 %v6171_v36, 16 }
 0x11f   : > { %3951 = vmatprep.mubr.bf16.mxu0 %v7074_v4 }
 0x120   : > { %v4176_v11 = vrot.slane %v4174_v28, 5 }
 0x123   : > { %5801 = vmatmul.mubr.msk.bf16.gmra.mrb[60].mxu1 %vm684_vm3, %v5783_v27  ;;  %v1380_v27 = vrot.slane %v1274_v51, 5  ;;  %v5808_v51 = vrot.slane %v1287_v23, 9 }
 0x124   : > { %1625 = vmatprep.mubr.bf16.mxu1 %v7074_v4 }
 0x125   : > { %v1381_v8 = vsel %vm7372_vm7, %v1379_v54, %v1380_v27  ;;  %v1419_v54 = vrot.slane %v1291_v48, 5  ;;  %v6959_v27 = vld [vmem:[%s7192_s19 + $0xb4] sm:$0xff]  }
 0x126   : > { %6160 = vmatmul.mubr.msk.bf16.gmra.mrb[28].mxu0 %vm684_vm3, %v6953_v13  ;;  %v5820_v62 = vcombine.low %v1378_v7, %v1381_v8  ;;  %v1412_v13 = vrot.slane %v1288_v53, 5  ;;  %v6170_v7 = vld [vmem:[%s7192_s19 + $0x1c] sm:$0xf]  ;;  %v6175_v53 = vld [vmem:[%s7192_s19 + $0x30] sm:$0xf] }
 0x127   : > { %3961 = vmatprep.mubr.bf16.mxu0 %v7074_v4  ;;  %v1421_v17 = vrot.slane %v1419_v54, 4  ;;  %v4168_v21 = vshrl.u32 %v6170_v7, 16 }
 0x128   : > { %v1413_v8 = vsel %vm7372_vm7, %v5808_v51, %v1412_v13 }
 0x12b   : > { %5837 = vmatmul.mubr.msk.bf16.vlgmr.msra.gmra.mrb[0].mxu1 %vm684_vm3, %v5819_v15  ;;  %v1414_v15 = vrot.slane %v1412_v13, 4 }
 0x12c   : > { %2032 = vmatpush1.bf16.msra.mxu1 %v2026_v2  ;;  %1635 = vmatprep.mubr.bf16.mxu1 %v7074_v4  ;;  %v1290_v2 = vld [vmem:[%s7192_s19 + $0x54] sm:$0xe] }
 0x12d   : > { %6357 = vmatprep.subr.msk.bf16.mxu1 %vm733_vm0, %v7163_v5  ;;  %v1388_v5 = vsel %vm7372_vm7, %v1386_v18, %v1387_v14  ;;  %v1416_v10 = vsel %vm7372_vm7, %v1414_v15, %v1415_v19  ;;  %v5809_v16 = vrot.slane %v1290_v2, 9  ;;  %v4164_v14 = vshll.u32 %v6170_v7, 16 }
 0x12e   : > { %6161 = vmatmul.mubr.msk.bf16.gmra.mrb[32].mxu0 %vm684_vm3, %v6954_v3  ;;  %v5821_v34 = vcombine.low %v1385_v26, %v1388_v5  ;;  %v6169_v3 = vld [vmem:[%s7192_s19 + $0x18] sm:$0xf]  ;;  %v1294_v26 = vld [vmem:[%s7192_s19 + $0x64] sm:$0xf]  ;;  %v4198_v19 = vshll.u32 %v6174_v1, 16  ;;  %v4203_v2 = vshrl.u32 %v6175_v53, 16 }
 0x12f   : > { %3971 = vmatprep.mubr.bf16.mxu0 %v7074_v4  ;;  %v4155_v9 = vshrl.u32 %v6169_v3, 16  ;;  %v4158_v18 = vshll.u32 %v6169_v3, 16  ;;  %v6172_v5 = vld [vmem:[%s7192_s19 + $0x24] sm:$0xf]  ;;  %v1420_v29 = vsel %vm7372_vm7, %v5809_v16, %v1419_v54  ;;  %v7892_v39 = vrot.slane %v4164_v14, 5 }
 0x130   : > { %v1426_v43 = vrot.slane %v1294_v26, 5  ;;  %v4179_v44 = vshrl.u32 %v6172_v5, 16  ;;  %v4182_v45 = vshll.u32 %v6172_v5, 16  ;;  %v1298_v54 = vld [vmem:[%s7192_s19 + $0x74] sm:$0x1]  ;;  %v4205_v26 = vrot.slane %v4203_v2, 4 }
 0x131   : > { %v4157_v35 = vrot.slane %v4155_v9, 4  ;;  %v4160_v38 = vrot.slane %v4158_v18, 5  ;;  %v1436_v18 = vrot.slane %v1298_v54, 5  ;;  %v1303_v1 = vld [vmem:[%s7192_s19 + $0x88] sm:$0xf] }
 0x132   : > { %v1428_v52 = vrot.slane %v1426_v43, 4  ;;  %v4181_v25 = vrot.slane %v4179_v44, 4  ;;  %v4184_v31 = vrot.slane %v4182_v45, 5  ;;  %v1427_v47 = vsel %vm7372_vm7, %v5810_v61, %v1426_v43  ;;  %v6178_v43 = vld [vmem:[%s7192_s19 + $0x3c] sm:$0xf] }
 0x133   : > { %5838 = vmatmul.mubr.msk.bf16.gmra.mrb[4].mxu1 %vm684_vm3, %v5820_v62  ;;  %v1422_v62 = vrot.slane %v1292_v58, 5  ;;  %v4161_v63 = vor.u32 %v4160_v38, %v4157_v35  ;;  %v4206_v58 = vshll.u32 %v6175_v53, 16  ;;  %v6177_v38 = vld [vmem:[%s7192_s19 + $0x38] sm:$0x1]  ;;  %v6179_v44 = vld [vmem:[%s7192_s19 + $0x40] sm:$0xf] }
 0x134   : > { %1645 = vmatprep.mubr.bf16.mxu1 %v7074_v4  ;;  %v1430_v48 = vsel %vm7372_vm7, %v1428_v52, %v1429_v60  ;;  %v4185_v15 = vor.u32 %v4184_v31, %v4181_v25  ;;  %v4230_v28 = vshll.u32 %v6178_v43, 16  ;;  %v4236_v52 = vshll.u32 %v6179_v44, 16 }
 0x135   : > { %v1423_v32 = vsel %vm7372_vm7, %v1421_v17, %v1422_v62  ;;  %v4162_v13 = vrot.slane %v4161_v63, 4  ;;  %v1300_v62 = vld [vmem:[%s7192_s19 + $0x7c] sm:$0xf]  ;;  %v4208_v5 = vrot.slane %v4206_v58, 5  ;;  %v4222_v63 = vshll.u32 %v6177_v38, 16 }
 0x136   : > { %6162 = vmatmul.mubr.msk.bf16.gmra.mrb[36].mxu0 %vm684_vm3, %v6955_v24  ;;  %v5825_v24 = vcombine.low %v1413_v8, %v1416_v10  ;;  %v5826_v12 = vcombine.low %v1420_v29, %v1423_v32  ;;  %v5827_v8 = vcombine.low %v1427_v47, %v1430_v48  ;;  %v4186_v14 = vrot.slane %v4185_v15, 4  ;;  %v1299_v29 = vld [vmem:[%s7192_s19 + $0x78] sm:$0xe]  ;;  %v1301_v32 = vld [vmem:[%s7192_s19 + $0x80] sm:$0x1] }
 0x137   : > { %3981 = vmatprep.mubr.bf16.mxu0 %v7074_v4  ;;  %v4167_v10 = vsel %vm7213_vm4, %v4162_v13, %v7892_v39  ;;  %v4240_v60 = vshrl.u32 %v6179_v44, 16  ;;  %v6182_v47 = vld [vmem:[%s7192_s19 + $0x4c] sm:$0xf]  ;;  %v6180_v13 = vld [vmem:[%s7192_s19 + $0x44] sm:$0x1]  ;;  %v7956_v48 = vrot.slane %v4236_v52, 5 }
 0x138   : > { %v1447_v15 = vrot.slane %v1303_v1, 5  ;;  %v4260_v2 = vshll.u32 %v6182_v47, 16  ;;  %v4264_v58 = vshrl.u32 %v6182_v47, 16  ;;  %v6185_v38 = vld [vmem:[%s7192_s19 + $0x58] sm:$0xf] }
 0x13b   : > { %5839 = vmatmul.mubr.msk.bf16.gmra.mrb[8].mxu1 %vm684_vm3, %v5821_v34  ;;  %v6173_v34 = vld [vmem:[%s7192_s19 + $0x28] sm:$0xf] }
 0x13c   : > { %1655 = vmatprep.mubr.bf16.mxu1 %v7074_v4  ;;  %v4192_v55 = vshrl.u32 %v6173_v34, 16 }
 0x13e   : > { %6163 = vmatmul.mubr.msk.bf16.gmra.mrb[40].mxu0 %vm684_vm3, %v6956_v40  ;;  %v4170_v40 = vrot.slane %v4168_v21, 4  ;;  %v4194_v37 = vrot.slane %v4192_v55, 4  ;;  %v4200_v21 = vrot.slane %v4198_v19, 5 }
 0x13f   : > { %3991 = vmatprep.mubr.bf16.mxu0 %v7074_v4 }
 0x143   : > { %5840 = vmatmul.mubr.msk.bf16.gmra.mrb[12].mxu1 %vm684_vm3, %v5822_v49  ;;  %v4188_v49 = vshll.u32 %v6173_v34, 16  ;;  %v1440_v34 = vrot.slane %v1300_v62, 5  ;;  %v4246_v62 = vshll.u32 %v6180_v13, 16 }
 0x144   : > { %1665 = vmatprep.mubr.bf16.mxu1 %v7074_v4 }
 0x145   : > { %v7903_v33 = vrot.slane %v4188_v49, 5  ;;  %v5812_v49 = vrot.slane %v1299_v29, 9  ;;  %v1442_v55 = vrot.slane %v1440_v34, 4  ;;  %v6184_v29 = vld [vmem:[%s7192_s19 + $0x54] sm:$0xf] }
 0x146   : > { %6164 = vmatmul.mubr.msk.bf16.gmra.mrb[44].mxu0 %vm684_vm3, %v6957_v22  ;;  %v4171_v22 = vor.u32 %v4170_v40, %v7892_v39  ;;  %v5224_v39 = vsel %vm733_vm0, %v7727_v56, 0  ;;  %v1443_v56 = vrot.slane %v1301_v32, 5 }
 0x147   : > { %4001 = vmatprep.mubr.bf16.mxu0 %v7074_v4  ;;  %v4191_v45 = vsel %vm7213_vm4, %v4186_v14, %v7903_v33 }
 0x148   : > { %v4172_v23 = vrot.slane %v4171_v22, 4  ;;  %v4227_v22 = vshrl.u32 %v6178_v43, 16 }
 0x14a   : > { %v4177_v16 = vsel %vm7213_vm4, %v4172_v23, %v4176_v11  ;;  %v4229_v23 = vrot.slane %v4227_v22, 4  ;;  %v4232_v11 = vrot.slane %v4230_v28, 5 }
 0x14b   : > { %5841 = vmatmul.mubr.msk.bf16.gmra.mrb[16].mxu1 %vm684_vm3, %v5823_v59  ;;  %v1297_v59 = vld [vmem:[%s7192_s19 + $0x70] sm:$0xf]  ;;  %v6218_v35 = vcombine.low %v4167_v10, %v4177_v16 }
 0x14c   : > { %1675 = vmatprep.mubr.bf16.mxu1 %v7074_v4  ;;  %v1433_v51 = vrot.slane %v1297_v59, 5  ;;  %v1441_v59 = vsel %vm7372_vm7, %v5812_v49, %v1440_v34  ;;  %v4233_v16 = vor.u32 %v4232_v11, %v4229_v23  ;;  %v1308_v23 = vld [vmem:[%s7192_s19 + $0x9c] sm:$0xe] }
 0x14e   : > { %6165 = vmatmul.mubr.msk.bf16.gmra.mrb[48].mxu0 %vm684_vm3, %v6958_v0  ;;  %v6176_v0 = vld [vmem:[%s7192_s19 + $0x34] sm:$0xf]  ;;  %v1435_v9 = vrot.slane %v1433_v51, 4  ;;  %v4234_v34 = vrot.slane %v4233_v16, 4 }
 0x14f   : > { %4011 = vmatprep.mubr.bf16.mxu0 %v7074_v4  ;;  %v4212_v3 = vshll.u32 %v6176_v0, 16  ;;  %v4216_v7 = vshrl.u32 %v6176_v0, 16 }
 0x150   : > { %v1437_v41 = vsel %vm7372_vm7, %v1435_v9, %v1436_v18  ;;  %v1449_v9 = vrot.slane %v1447_v15, 4  ;;  %v4239_v22 = vsel %vm7213_vm4, %v4234_v34, %v7956_v48 }
 0x151   : > { %v4218_v36 = vrot.slane %v4216_v7, 4 }
 0x153   : > { %5842 = vmatmul.mubr.msk.bf16.gmra.mrb[20].mxu1 %vm684_vm3, %v5824_v50  ;;  %v1296_v50 = vld [vmem:[%s7192_s19 + $0x6c] sm:$0xe] }
 0x154   : > { %1685 = vmatprep.mubr.bf16.mxu1 %v7074_v4  ;;  %v5811_v17 = vrot.slane %v1296_v50, 9  ;;  %v4242_v50 = vrot.slane %v4240_v60, 4 }
 0x156   : > { %6166 = vmatmul.mubr.msk.bf16.gmra.mrb[52].mxu0 %vm684_vm3, %v6959_v27  ;;  %v4195_v27 = vor.u32 %v4194_v37, %v7903_v33  ;;  %v1434_v40 = vsel %vm7372_vm7, %v5811_v17, %v1433_v51  ;;  %v6181_v33 = vld [vmem:[%s7192_s19 + $0x48] sm:$0xf]  ;;  %v1444_v37 = vsel %vm7372_vm7, %v1442_v55, %v1443_v56  ;;  %v1302_v51 = vld [vmem:[%s7192_s19 + $0x84] sm:$0xe]  ;;  %v4243_v17 = vor.u32 %v4242_v50, %v7956_v48  ;;  %v6187_v48 = vld [vmem:[%s7192_s19 + $0x60] sm:$0xf] }
 0x157   : > { %4021 = vmatprep.mubr.bf16.mxu0 %v7074_v4  ;;  %v5828_v25 = vcombine.low %v1434_v40, %v1437_v41  ;;  %v4251_v19 = vshrl.u32 %v6181_v33, 16  ;;  %v4254_v54 = vshll.u32 %v6181_v33, 16  ;;  %v5813_v10 = vrot.slane %v1302_v51, 9  ;;  %v1305_v41 = vld [vmem:[%s7192_s19 + $0x90] sm:$0xe] }
 0x158   : > { %v4275_v56 = vshrl.u32 %v6184_v29, 16  ;;  %v4278_v55 = vshll.u32 %v6184_v29, 16  ;;  %v5814_v52 = vrot.slane %v1305_v41, 9  ;;  %v6190_v41 = vld [vmem:[%s7192_s19 + $0x6c] sm:$0xf] }
 0x159   : > { %v4253_v14 = vrot.slane %v4251_v19, 4  ;;  %v6188_v19 = vld [vmem:[%s7192_s19 + $0x64] sm:$0xf] }
 0x15b   : > { %5843 = vmatmul.mubr.msk.bf16.gmra.mrb[24].mxu1 %vm684_vm3, %v5825_v24  ;;  %v4196_v24 = vrot.slane %v4195_v27, 4  ;;  %v1304_v27 = vld [vmem:[%s7192_s19 + $0x8c] sm:$0x1] }
 0x15c   : > { %1695 = vmatprep.mubr.bf16.mxu1 %v7074_v4  ;;  %v1450_v18 = vrot.slane %v1304_v27, 5 }
 0x15d   : > { %v4201_v46 = vsel %vm7213_vm4, %v4196_v24, %v4200_v21  ;;  %v4256_v21 = vrot.slane %v4254_v54, 5  ;;  %v1306_v24 = vld [vmem:[%s7192_s19 + $0x94] sm:$0xf] }
 0x15e   : > { %6167 = vmatmul.mubr.msk.bf16.gmra.mrb[56].mxu0 %vm684_vm3, %v6960_v20  ;;  %v7925_v20 = vrot.slane %v4212_v3, 5  ;;  %v6219_v31 = vcombine.low %v4191_v45, %v4201_v46  ;;  %v5829_v3 = vcombine.low %v1441_v59, %v1444_v37  ;;  %v1451_v40 = vsel %vm7372_vm7, %v1449_v9, %v1450_v18  ;;  %v1307_v45 = vld [vmem:[%s7192_s19 + $0x98] sm:$0x1]  ;;  %v1309_v59 = vld [vmem:[%s7192_s19 + $0xa0] sm:$0xf] }
 0x15f   : > { %4031 = vmatprep.mubr.bf16.mxu0 %v7074_v4  ;;  %v1454_v43 = vrot.slane %v1306_v24, 5  ;;  %v4257_v44 = vor.u32 %v4256_v21, %v4253_v14  ;;  %v4277_v37 = vrot.slane %v4275_v56, 4  ;;  %v1461_v11 = vrot.slane %v1309_v59, 5  ;;  %v1312_v24 = vld [vmem:[%s7192_s19 + $0xac] sm:$0xf] }
 0x160   : > { %v4219_v61 = vor.u32 %v4218_v36, %v7925_v20  ;;  %v4244_v36 = vrot.slane %v4243_v17, 4  ;;  %v4312_v9 = vshrl.u32 %v6188_v19, 16 }
 0x161   : > { %v1456_v60 = vrot.slane %v1454_v43, 4  ;;  %v1455_v50 = vsel %vm7372_vm7, %v5814_v52, %v1454_v43  ;;  %v1463_v16 = vrot.slane %v1461_v11, 4 }
 0x162   : > { %v4220_v0 = vrot.slane %v4219_v61, 4  ;;  %v4288_v61 = vshrl.u32 %v6185_v38, 16 }
 0x163   : > { %5844 = vmatmul.mubr.msk.bf16.gmra.mrb[28].mxu1 %vm684_vm3, %v5826_v12  ;;  %v4209_v12 = vor.u32 %v4208_v5, %v4205_v26  ;;  %v7971_v26 = vrot.slane %v4260_v2, 5  ;;  %v4266_v5 = vrot.slane %v4264_v58, 4 }
 0x164   : > { %1705 = vmatprep.mubr.bf16.mxu1 %v7074_v4  ;;  %v4290_v47 = vrot.slane %v4288_v61, 4 }
 0x165   : > { %v4210_v53 = vrot.slane %v4209_v12, 4  ;;  %v4267_v46 = vor.u32 %v4266_v5, %v7971_v26  ;;  %v4284_v12 = vshll.u32 %v6185_v38, 16  ;;  %v4314_v38 = vrot.slane %v4312_v9, 4 }
 0x166   : > { %6168 = vmatmul.mubr.msk.bf16.gmra.mrb[60].mxu0 %vm684_vm3, %v6961_v30  ;;  %v4224_v30 = vrot.slane %v4222_v63, 5 }
 0x167   : > { %4683 = vmatprep.mubr.bf16.mxu0 %v7074_v4  ;;  %v4215_v7 = vsel %vm7213_vm4, %v4210_v53, %v7925_v20  ;;  %v6183_v20 = vld [vmem:[%s7192_s19 + $0x50] sm:$0x1]  ;;  %v4268_v1 = vrot.slane %v4267_v46, 4  ;;  %v4280_v53 = vrot.slane %v4278_v55, 5 }
 0x168   : > { %v4270_v49 = vshll.u32 %v6183_v20, 16 }
 0x169   : > { %v4281_v2 = vor.u32 %v4280_v53, %v4277_v37  ;;  %v6193_v37 = vld [vmem:[%s7192_s19 + $0x78] sm:$0xf]  ;;  %v6194_v53 = vld [vmem:[%s7192_s19 + $0x7c] sm:$0xf] }
 0x16a   : > { %v4272_v33 = vrot.slane %v4270_v49, 5 }
 0x16b   : > { %5845 = vmatmul.mubr.msk.bf16.gmra.mrb[32].mxu1 %vm684_vm3, %v5827_v8  ;;  %v4225_v8 = vsel %vm7213_vm4, %v4220_v0, %v4224_v30  ;;  %v6186_v0 = vld [vmem:[%s7192_s19 + $0x5c] sm:$0x1]  ;;  %v7994_v30 = vrot.slane %v4284_v12, 5  ;;  %v4282_v21 = vrot.slane %v4281_v2, 4  ;;  %v4356_v2 = vshll.u32 %v6194_v53, 16 }
 0x16c   : > { %1715 = vmatprep.mubr.bf16.mxu1 %v7074_v4  ;;  %v6220_v32 = vcombine.low %v4215_v7, %v4225_v8  ;;  %v4273_v27 = vsel %vm7213_vm4, %v4268_v1, %v4272_v33  ;;  %v4294_v58 = vshll.u32 %v6186_v0, 16  ;;  %v4299_v8 = vshrl.u32 %v6187_v48, 16 }
 0x16d   : > { %v4291_v7 = vor.u32 %v4290_v47, %v7994_v30  ;;  %v4287_v43 = vsel %vm7213_vm4, %v4282_v21, %v7994_v30  ;;  %v6192_v47 = vld [vmem:[%s7192_s19 + $0x74] sm:$0x1] }
 0x16e   : > { %6236 = vmatmul.mubr.msk.bf16.vlgmr.msra.gmra.mrb[0].mxu0 %vm684_vm3, %v6218_v35  ;;  %v4248_v35 = vrot.slane %v4246_v62, 5  ;;  %v4308_v62 = vshll.u32 %v6188_v19, 16  ;;  %v4296_v5 = vrot.slane %v4294_v58, 5  ;;  %v4301_v20 = vrot.slane %v4299_v8, 4  ;;  %v1316_v19 = vld [vmem:[%s7192_s19 + $0xbc] sm:$0x1] }
 0x16f   : > { %5230 = vmatpush1.bf16.msra.mxu0 %v5224_v39  ;;  %4693 = vmatprep.mubr.bf16.mxu0 %v7074_v4  ;;  %v1448_v39 = vsel %vm7372_vm7, %v5813_v10, %v1447_v15  ;;  %v1310_v15 = vld [vmem:[%s7192_s19 + $0xa4] sm:$0x1]  ;;  %v4302_v10 = vshll.u32 %v6187_v48, 16  ;;  %v1314_v48 = vld [vmem:[%s7192_s19 + $0xb4] sm:$0xe]  ;;  %v4360_v58 = vshrl.u32 %v6194_v53, 16 }
 0x170   : > { %v5830_v63 = vcombine.low %v1448_v39, %v1451_v40  ;;  %v4249_v28 = vsel %vm7213_vm4, %v4244_v36, %v4248_v35  ;;  %v1464_v17 = vrot.slane %v1310_v15, 5  ;;  %v6189_v36 = vld [vmem:[%s7192_s19 + $0x68] sm:$0x1]  ;;  %v8020_v35 = vrot.slane %v4308_v62, 5  ;;  %v1311_v39 = vld [vmem:[%s7192_s19 + $0xa8] sm:$0xe] }
 0x171   : > { %v6221_v13 = vcombine.low %v4239_v22, %v4249_v28  ;;  %v4304_v29 = vrot.slane %v4302_v10, 5  ;;  %v1468_v40 = vrot.slane %v1312_v24, 5  ;;  %v4318_v55 = vshll.u32 %v6189_v36, 16 }
 0x172   : > { %v1465_v34 = vsel %vm7372_vm7, %v1463_v16, %v1464_v17  ;;  %v5816_v12 = vrot.slane %v1311_v39, 9  ;;  %v4315_v61 = vor.u32 %v4314_v38, %v8020_v35  ;;  %v4326_v22 = vshll.u32 %v6190_v41, 16 }
 0x173   : > { %5846 = vmatmul.mubr.msk.bf16.gmra.mrb[36].mxu1 %vm684_vm3, %v5828_v25  ;;  %v1457_v25 = vrot.slane %v1307_v45, 5  ;;  %v6191_v45 = vld [vmem:[%s7192_s19 + $0x70] sm:$0xf]  ;;  %v4305_v56 = vor.u32 %v4304_v29, %v4301_v20  ;;  %v1470_v28 = vrot.slane %v1468_v40, 4  ;;  %v4320_v33 = vrot.slane %v4318_v55, 5 }
 0x174   : > { %1725 = vmatprep.mubr.bf16.mxu1 %v7074_v4  ;;  %v1469_v0 = vsel %vm7372_vm7, %v5816_v12, %v1468_v40  ;;  %v4316_v30 = vrot.slane %v4315_v61, 4  ;;  %v4342_v16 = vshll.u32 %v6192_v47, 16  ;;  %v5817_v17 = vrot.slane %v1314_v48, 9  ;;  %v6196_v29 = vld [vmem:[%s7192_s19 + $0x84] sm:$0xf] }
 0x175   : > { %v1458_v51 = vsel %vm7372_vm7, %v1456_v60, %v1457_v25  ;;  %v4332_v60 = vshll.u32 %v6191_v45, 16  ;;  %v4336_v25 = vshrl.u32 %v6191_v45, 16  ;;  %v4306_v1 = vrot.slane %v4305_v56, 4 }
 0x176   : > { %6237 = vmatmul.mubr.msk.bf16.gmra.mrb[4].mxu0 %vm684_vm3, %v6219_v31  ;;  %v4258_v31 = vrot.slane %v4257_v44, 4  ;;  %v5831_v18 = vcombine.low %v1455_v50, %v1458_v51  ;;  %v1313_v44 = vld [vmem:[%s7192_s19 + $0xb0] sm:$0x1]  ;;  %v4321_v8 = vsel %vm7213_vm4, %v4316_v30, %v4320_v33  ;;  %v1478_v9 = vrot.slane %v1316_v19, 5  ;;  %v6200_v33 = vld [vmem:[%s7192_s19 + $0x94] sm:$0xf] }
 0x177   : > { %4703 = vmatprep.mubr.bf16.mxu0 %v7074_v4  ;;  %v1471_v52 = vrot.slane %v1313_v44, 5  ;;  %v4334_v51 = vrot.slane %v4332_v60, 5  ;;  %v4338_v15 = vrot.slane %v4336_v25, 4  ;;  %v4358_v24 = vrot.slane %v4356_v2, 5 }
 0x178   : > { %v4263_v54 = vsel %vm7213_vm4, %v4258_v31, %v7971_v26  ;;  %v4292_v26 = vrot.slane %v4291_v7, 4  ;;  %v1315_v31 = vld [vmem:[%s7192_s19 + $0xb8] sm:$0xf]  ;;  %v4344_v38 = vrot.slane %v4342_v16, 5  ;;  %v4371_v44 = vshrl.u32 %v6196_v29, 16 }
 0x179   : > { %v6222_v14 = vcombine.low %v4263_v54, %v4273_v27  ;;  %v1475_v50 = vrot.slane %v1315_v31, 5  ;;  %v4347_v54 = vshrl.u32 %v6193_v37, 16  ;;  %v4350_v27 = vshll.u32 %v6193_v37, 16 }
 0x17a   : > { %v4297_v49 = vsel %vm7213_vm4, %v4292_v26, %v4296_v5  ;;  %v4362_v26 = vrot.slane %v4360_v58, 4  ;;  %v6195_v5 = vld [vmem:[%s7192_s19 + $0x80] sm:$0x1]  ;;  %v4374_v45 = vshll.u32 %v6196_v29, 16  ;;  %v4408_v48 = vshrl.u32 %v6200_v33, 16 }
 0x17b   : > { %5847 = vmatmul.mubr.msk.bf16.gmra.mrb[40].mxu1 %vm684_vm3, %v5829_v3  ;;  %v5815_v3 = vrot.slane %v1308_v23, 9  ;;  %v6223_v59 = vcombine.low %v4287_v43, %v4297_v49  ;;  %v4328_v23 = vrot.slane %v4326_v22, 5  ;;  %v1477_v62 = vrot.slane %v1475_v50, 4 }
 0x17c   : > { %1735 = vmatprep.mubr.bf16.mxu1 %v7074_v4  ;;  %v4352_v21 = vrot.slane %v4350_v27, 5  ;;  %v4366_v43 = vshll.u32 %v6195_v5, 16  ;;  %v6205_v5 = vld [vmem:[%s7192_s19 + $0xa8] sm:$0xf] }
 0x17d   : > { %v1479_v39 = vsel %vm7372_vm7, %v1477_v62, %v1478_v9 }
 0x17e   : > { %6238 = vmatmul.mubr.msk.bf16.gmra.mrb[8].mxu0 %vm684_vm3, %v6220_v32  ;;  %v1462_v32 = vsel %vm7372_vm7, %v5815_v3, %v1461_v11  ;;  %v1472_v11 = vsel %vm7372_vm7, %v1470_v28, %v1471_v52  ;;  %v4311_v3 = vsel %vm7213_vm4, %v4306_v1, %v8020_v35  ;;  %v4368_v22 = vrot.slane %v4366_v43, 5  ;;  %v6199_v1 = vld [vmem:[%s7192_s19 + $0x90] sm:$0xf] }
 0x17f   : > { %4713 = vmatprep.mubr.bf16.mxu0 %v7074_v4  ;;  %v5832_v46 = vcombine.low %v1462_v32, %v1465_v34  ;;  %v5833_v7 = vcombine.low %v1469_v0, %v1472_v11  ;;  %v6224_v20 = vcombine.low %v4311_v3, %v4321_v8  ;;  %v6197_v32 = vld [vmem:[%s7192_s19 + $0x88] sm:$0xf]  ;;  %v1476_v34 = vsel %vm7372_vm7, %v5817_v17, %v1475_v50  ;;  %v6962_v50 = vld [vmem:[%s7192_s19 + $0xc] sm:$0xff]   ;;  %v6202_v8 = vld [vmem:[%s7192_s19 + $0x9c] sm:$0xf] }
 0x180   : > { %v4384_v49 = vshrl.u32 %v6197_v32, 16  ;;  %v5834_v56 = vcombine.low %v1476_v34, %v1479_v39  ;;  %v4373_v28 = vrot.slane %v4371_v44, 4  ;;  %v4376_v52 = vrot.slane %v4374_v45, 5 }
 0x181   : > { %v4404_v11 = vshll.u32 %v6200_v33, 16  ;;  %v4410_v3 = vrot.slane %v4408_v48, 4  ;;  %v4443_v43 = vshrl.u32 %v6205_v5, 16  ;;  %v4446_v44 = vshll.u32 %v6205_v5, 16 }
 0x182   : > { %v4386_v25 = vrot.slane %v4384_v49, 4  ;;  %v4377_v0 = vor.u32 %v4376_v52, %v4373_v28 }
 0x183   : > { %5848 = vmatmul.mubr.msk.bf16.gmra.mrb[44].mxu1 %vm684_vm3, %v5830_v63  ;;  %v4323_v63 = vshrl.u32 %v6190_v41, 16  ;;  %v4363_v41 = vor.u32 %v4362_v26, %v4358_v24  ;;  %v4406_v58 = vrot.slane %v4404_v11, 5  ;;  %v4448_v28 = vrot.slane %v4446_v44, 5  ;;  %v6215_v44 = vld [vmem:[%s7192_s19 + $0xd0] sm:$0xf] }
 0x184   : > { %1745 = vmatprep.mubr.bf16.mxu1 %v7074_v4 }
 0x185   : > { %v4411_v9 = vor.u32 %v4410_v3, %v4406_v58 }
 0x186   : > { %6239 = vmatmul.mubr.msk.bf16.gmra.mrb[12].mxu0 %vm684_vm3, %v6221_v13  ;;  %v4325_v13 = vrot.slane %v4323_v63, 4  ;;  %v4364_v63 = vrot.slane %v4363_v41, 4  ;;  %v6204_v41 = vld [vmem:[%s7192_s19 + $0xa4] sm:$0x1] }
 0x187   : > { %4723 = vmatprep.mubr.bf16.mxu0 %v7074_v4  ;;  %v4412_v34 = vrot.slane %v4411_v9, 4 }
 0x188   : > { %v4329_v10 = vor.u32 %v4328_v23, %v4325_v13  ;;  %v4369_v53 = vsel %vm7213_vm4, %v4364_v63, %v4368_v22  ;;  %v4395_v13 = vshrl.u32 %v6199_v1, 16  ;;  %v4398_v23 = vshll.u32 %v6199_v1, 16  ;;  %v6209_v1 = vld [vmem:[%s7192_s19 + $0xb8] sm:$0xf] }
 0x189   : > { %v4438_v63 = vshll.u32 %v6204_v41, 16  ;;  %v4445_v22 = vrot.slane %v4443_v43, 4  ;;  %v4476_v11 = vshll.u32 %v6209_v1, 16  ;;  %v4480_v48 = vshrl.u32 %v6209_v1, 16  ;;  %v6213_v41 = vld [vmem:[%s7192_s19 + $0xc8] sm:$0x1] }
 0x18a   : > { %v4330_v36 = vrot.slane %v4329_v10, 4  ;;  %v4397_v27 = vrot.slane %v4395_v13, 4  ;;  %v4400_v2 = vrot.slane %v4398_v23, 5  ;;  %v6203_v10 = vld [vmem:[%s7192_s19 + $0xa0] sm:$0xf] }
 0x18b   : > { %5849 = vmatmul.mubr.msk.bf16.gmra.mrb[48].mxu1 %vm684_vm3, %v5831_v18  ;;  %v4339_v18 = vor.u32 %v4338_v15, %v4334_v51  ;;  %v4378_v15 = vrot.slane %v4377_v0, 4  ;;  %v4432_v26 = vshrl.u32 %v6203_v10, 16  ;;  %v4449_v0 = vor.u32 %v4448_v28, %v4445_v22  ;;  %v6214_v43 = vld [vmem:[%s7192_s19 + $0xcc] sm:$0xf] }
 0x18c   : > { %1755 = vmatprep.mubr.bf16.mxu1 %v7074_v4  ;;  %v4335_v55 = vsel %vm7213_vm4, %v4330_v36, %v4334_v51  ;;  %v4401_v62 = vor.u32 %v4400_v2, %v4397_v27  ;;  %v4478_v3 = vrot.slane %v4476_v11, 5  ;;  %v4524_v22 = vshll.u32 %v6215_v44, 16 }
 0x18d   : > { %v4340_v35 = vrot.slane %v4339_v18, 4  ;;  %v4528_v28 = vshrl.u32 %v6215_v44, 16 }
 0x18e   : > { %6240 = vmatmul.mubr.msk.bf16.gmra.mrb[16].mxu0 %vm684_vm3, %v6222_v14  ;;  %v4349_v14 = vrot.slane %v4347_v54, 4 }
 0x18f   : > { %4733 = vmatprep.mubr.bf16.mxu0 %v7074_v4  ;;  %v4345_v12 = vsel %vm7213_vm4, %v4340_v35, %v4344_v38 }
 0x190   : > { %v4353_v40 = vor.u32 %v4352_v21, %v4349_v14  ;;  %v6225_v31 = vcombine.low %v4335_v55, %v4345_v12  ;;  %v4419_v14 = vshrl.u32 %v6202_v8, 16  ;;  %v4422_v21 = vshll.u32 %v6202_v8, 16 }
 0x192   : > { %v4354_v61 = vrot.slane %v4353_v40, 4  ;;  %v4421_v35 = vrot.slane %v4419_v14, 4  ;;  %v4424_v38 = vrot.slane %v4422_v21, 5  ;;  %v4434_v40 = vrot.slane %v4432_v26, 4 }
 0x193   : > { %5850 = vmatmul.mubr.msk.bf16.gmra.mrb[52].mxu1 %vm684_vm3, %v5832_v46  ;;  %v4380_v46 = vshll.u32 %v6197_v32, 16  ;;  %v4402_v32 = vrot.slane %v4401_v62, 4 }
 0x194   : > { %1765 = vmatprep.mubr.bf16.mxu1 %v7074_v4  ;;  %v4359_v37 = vsel %vm7213_vm4, %v4354_v61, %v4358_v24  ;;  %v4428_v24 = vshll.u32 %v6203_v10, 16  ;;  %v4425_v12 = vor.u32 %v4424_v38, %v4421_v35  ;;  %v6210_v10 = vld [vmem:[%s7192_s19 + $0xbc] sm:$0x1] }
 0x195   : > { %v4382_v60 = vrot.slane %v4380_v46, 5  ;;  %v6226_v51 = vcombine.low %v4359_v37, %v4369_v53  ;;  %v4407_v49 = vsel %vm7213_vm4, %v4402_v32, %v4406_v58  ;;  %v4440_v53 = vrot.slane %v4438_v63, 5 }
 0x196   : > { %6241 = vmatmul.mubr.msk.bf16.gmra.mrb[20].mxu0 %vm684_vm3, %v6223_v59  ;;  %v6198_v59 = vld [vmem:[%s7192_s19 + $0x8c] sm:$0x1]  ;;  %v4430_v39 = vrot.slane %v4428_v24, 5  ;;  %v4426_v33 = vrot.slane %v4425_v12, 4  ;;  %v4486_v14 = vshll.u32 %v6210_v10, 16  ;;  %v4518_v63 = vshll.u32 %v6214_v43, 16 }
 0x197   : > { %4743 = vmatprep.mubr.bf16.mxu0 %v7074_v4  ;;  %v4387_v30 = vor.u32 %v4386_v25, %v4382_v60  ;;  %v4390_v47 = vshll.u32 %v6198_v59, 16  ;;  %v4383_v16 = vsel %vm7213_vm4, %v4378_v15, %v4382_v60  ;;  %v6207_v25 = vld [vmem:[%s7192_s19 + $0xb0] sm:$0x1]  ;;  %v6208_v59 = vld [vmem:[%s7192_s19 + $0xb4] sm:$0xf]  ;;  %v6967_v12 = vld [vmem:[%s7192_s19 + $0x48] sm:$0xff]  }
 0x198   : > { %v4435_v61 = vor.u32 %v4434_v40, %v4430_v39  ;;  %v4467_v13 = vshrl.u32 %v6208_v59, 16  ;;  %v4470_v23 = vshll.u32 %v6208_v59, 16  ;;  %v4520_v1 = vrot.slane %v4518_v63, 5  ;;  %v6263_v63 = vld [vmem:[%s7192_s19 + $0x44] sm:$0x1] }
 0x199   : > { %v4388_v19 = vrot.slane %v4387_v30, 4  ;;  %v4392_v54 = vrot.slane %v4390_v47, 5  ;;  %v4462_v47 = vshll.u32 %v6207_v25, 16 }
 0x19a   : > { %v4436_v37 = vrot.slane %v4435_v61, 4  ;;  %v4469_v2 = vrot.slane %v4467_v13, 4  ;;  %v4472_v58 = vrot.slane %v4470_v23, 5  ;;  %v4515_v61 = vshrl.u32 %v6214_v43, 16 }
 0x19b   : > { %5851 = vmatmul.mubr.msk.bf16.gmra.mrb[56].mxu1 %vm684_vm3, %v5833_v7  ;;  %v6201_v7 = vld [vmem:[%s7192_s19 + $0x98] sm:$0x1]  ;;  %v4393_v17 = vsel %vm7213_vm4, %v4388_v19, %v4392_v54  ;;  %v4450_v19 = vrot.slane %v4449_v0, 4  ;;  %v4464_v27 = vrot.slane %v4462_v47, 5 }
 0x19c   : > { %1775 = vmatprep.mubr.bf16.mxu1 %v7074_v4  ;;  %v4414_v18 = vshll.u32 %v6201_v7, 16  ;;  %v6227_v29 = vcombine.low %v4383_v16, %v4393_v17  ;;  %v4441_v15 = vsel %vm7213_vm4, %v4436_v37, %v4440_v53  ;;  %v4482_v7 = vrot.slane %v4480_v48, 4  ;;  %v6211_v16 = vld [vmem:[%s7192_s19 + $0xc0] sm:$0xf]  ;;  %v6212_v17 = vld [vmem:[%s7192_s19 + $0xc4] sm:$0xf] }
 0x19d   : > { %v4491_v21 = vshrl.u32 %v6211_v16, 16  ;;  %v4494_v24 = vshll.u32 %v6211_v16, 16  ;;  %v4500_v26 = vshll.u32 %v6212_v17, 16  ;;  %v4504_v5 = vshrl.u32 %v6212_v17, 16  ;;  %v6216_v53 = vld [vmem:[%s7192_s19 + $0xd4] sm:$0x1] }
 0x19e   : > { %6242 = vmatmul.mubr.msk.bf16.gmra.mrb[24].mxu0 %vm684_vm3, %v6224_v20  ;;  %v6206_v20 = vld [vmem:[%s7192_s19 + $0xac] sm:$0xf]  ;;  %v4416_v36 = vrot.slane %v4414_v18, 5  ;;  %v4473_v18 = vor.u32 %v4472_v58, %v4469_v2  ;;  %v4517_v59 = vrot.slane %v4515_v61, 4  ;;  %v4530_v37 = vrot.slane %v4528_v28, 4 }
 0x19f   : > { %4753 = vmatprep.mubr.bf16.mxu0 %v7074_v4  ;;  %v4452_v45 = vshll.u32 %v6206_v20, 16  ;;  %v4456_v46 = vshrl.u32 %v6206_v20, 16  ;;  %v6966_v20 = vld [vmem:[%s7192_s19 + $0x3c] sm:$0xff]   ;;  %v4493_v35 = vrot.slane %v4491_v21, 4  ;;  %v4496_v38 = vrot.slane %v4494_v24, 5 }
 0x1a0   : > { %v4417_v55 = vsel %vm7213_vm4, %v4412_v34, %v4416_v36  ;;  %v4474_v32 = vrot.slane %v4473_v18, 4  ;;  %v4488_v36 = vrot.slane %v4486_v14, 5  ;;  %v4506_v40 = vrot.slane %v4504_v5, 4  ;;  %v6255_v21 = vld [vmem:[%s7192_s19 + $0x24] sm:$0xe] }
 0x1a1   : > { %v4454_v52 = vrot.slane %v4452_v45, 5  ;;  %v4458_v60 = vrot.slane %v4456_v46, 4  ;;  %v4521_v13 = vor.u32 %v4520_v1, %v4517_v59  ;;  %v4534_v11 = vshll.u32 %v6216_v53, 16  ;;  %v6257_v24 = vld [vmem:[%s7192_s19 + $0x2c] sm:$0x1] }
 0x1a2   : > { %v4479_v45 = vsel %vm7213_vm4, %v4474_v32, %v4478_v3  ;;  %v6301_v5 = vrot.slane %v6255_v21, 9  ;;  %v6259_v32 = vld [vmem:[%s7192_s19 + $0x34] sm:$0xf]  ;;  %v6261_v61 = vld [vmem:[%s7192_s19 + $0x3c] sm:$0xe] }
 0x1a3   : > { %5852 = vmatmul.mubr.msk.bf16.gmra.mrb[60].mxu1 %vm684_vm3, %v5834_v56  ;;  %v6964_v56 = vld [vmem:[%s7192_s19 + $0x24] sm:$0xff]   ;;  %v4459_v30 = vor.u32 %v4458_v60, %v4454_v52  ;;  %v4455_v62 = vsel %vm7213_vm4, %v4450_v19, %v4454_v52  ;;  %v6253_v19 = vld [vmem:[%s7192_s19 + $0x1c] sm:$0xf]  ;;  %v6303_v28 = vrot.slane %v6261_v61, 9  ;;  %v6266_v53 = vld [vmem:[%s7192_s19 + $0x50] sm:$0x1] }
 0x1a4   : > { %2063 = vmatprep.mubr.bf16.mxu1 %v7074_v4  ;;  %v5006_v58 = vrot.slane %v6253_v19, 5  ;;  %v6269_v19 = vld [vmem:[%s7192_s19 + $0x5c] sm:$0x1] }
 0x1a5   : > { %v4460_v54 = vrot.slane %v4459_v30, 4  ;;  %v6968_v30 = vld [vmem:[%s7192_s19 + $0x54] sm:$0xff]  }
 0x1a6   : > { %6243 = vmatmul.mubr.msk.bf16.gmra.mrb[28].mxu0 %vm684_vm3, %v6225_v31  ;;  %v6228_v31 = vcombine.low %v4407_v49, %v4417_v55  ;;  %v4497_v49 = vor.u32 %v4496_v38, %v4493_v35  ;;  %v4510_v55 = vshll.u32 %v6213_v41, 16  ;;  %v5008_v16 = vrot.slane %v5006_v58, 4 }
 0x1a7   : > { %4763 = vmatprep.mubr.bf16.mxu0 %v7074_v4  ;;  %v4465_v9 = vsel %vm7213_vm4, %v4460_v54, %v4464_v27  ;;  %v6969_v54 = vld [vmem:[%s7192_s19 + $0x60] sm:$0xff]   ;;  %v5020_v38 = vrot.slane %v6259_v32, 5 }
 0x1a8   : > { %v4498_v60 = vrot.slane %v4497_v49, 4  ;;  %v6972_v49 = vld [vmem:[%s7192_s19 + $0x84] sm:$0xff]  }
 0x1a9   : > { %v5022_v44 = vrot.slane %v5020_v38, 4 }
 0x1ab   : > { %5904 = vmatmul.mubr.msk.bf16.vlgmr.msra.gmra.mrb[0].mxu1 %vm684_vm3, %v6962_v50  ;;  %v6965_v50 = vld [vmem:[%s7192_s19 + $0x30] sm:$0xff]  }
 0x1ac   : > { %6358 = vmatpush1.bf16.msra.mxu1 %v7166_v6  ;;  %2073 = vmatprep.mubr.bf16.mxu1 %v7074_v4  ;;  %v6963_v6 = vld [vmem:[%s7192_s19 + $0x18] sm:$0xff]  }
 0x1ae   : > { %6244 = vmatmul.mubr.msk.bf16.gmra.mrb[32].mxu0 %vm684_vm3, %v6226_v51  ;;  %v4431_v51 = vsel %vm7213_vm4, %v4426_v33, %v4430_v39  ;;  %v4502_v39 = vrot.slane %v4500_v26, 5  ;;  %v4526_v33 = vrot.slane %v4524_v22, 5 }
 0x1af   : > { %4773 = vmatprep.mubr.bf16.mxu0 %v7074_v4  ;;  %v6229_v8 = vcombine.low %v4431_v51, %v4441_v15  ;;  %v4536_v15 = vrot.slane %v4534_v11, 5  ;;  %v6974_v11 = vld [vmem:[%s7192_s19 + $0x9c] sm:$0xff]  }
 0x1b0   : > { %v4503_v0 = vsel %vm7213_vm4, %v4498_v60, %v4502_v39  ;;  %v4531_v23 = vor.u32 %v4530_v37, %v4526_v33  ;;  %v5030_v60 = vrot.slane %v6263_v63, 5  ;;  %v6264_v37 = vld [vmem:[%s7192_s19 + $0x48] sm:$0xe] }
 0x1b2   : > { %v4532_v51 = vrot.slane %v4531_v23, 4  ;;  %v6268_v23 = vld [vmem:[%s7192_s19 + $0x58] sm:$0xf] }
 0x1b3   : > { %5905 = vmatmul.mubr.msk.bf16.gmra.mrb[4].mxu1 %vm684_vm3, %v6963_v6  ;;  %v4483_v6 = vor.u32 %v4482_v7, %v4478_v3  ;;  %v6252_v3 = vld [vmem:[%s7192_s19 + $0x18] sm:$0xe]  ;;  %v6254_v7 = vld [vmem:[%s7192_s19 + $0x20] sm:$0x1] }
 0x1b4   : > { %2083 = vmatprep.mubr.bf16.mxu1 %v7074_v4  ;;  %v4537_v2 = vsel %vm7213_vm4, %v4532_v51, %v4536_v15  ;;  %v6300_v10 = vrot.slane %v6252_v3, 9  ;;  %v5009_v17 = vrot.slane %v6254_v7, 5  ;;  %v5041_v51 = vrot.slane %v6268_v23, 5  ;;  %v6267_v15 = vld [vmem:[%s7192_s19 + $0x54] sm:$0xe] }
 0x1b5   : > { %v4484_v34 = vrot.slane %v4483_v6, 4  ;;  %v5044_v3 = vrot.slane %v6269_v19, 5  ;;  %v6270_v7 = vld [vmem:[%s7192_s19 + $0x60] sm:$0xe]  ;;  %v5949_v19 = vld [vmem:[%s7192_s19 + $0x80] sm:$0x1] }
 0x1b6   : > { %6245 = vmatmul.mubr.msk.bf16.gmra.mrb[36].mxu0 %vm684_vm3, %v6227_v29  ;;  %v6230_v29 = vcombine.low %v4455_v62, %v4465_v9  ;;  %v6256_v62 = vld [vmem:[%s7192_s19 + $0x28] sm:$0xf]  ;;  %v6970_v9 = vld [vmem:[%s7192_s19 + $0x6c] sm:$0xff]   ;;  %v5007_v18 = vsel %vm7372_vm7, %v6300_v10, %v5006_v58  ;;  %v5010_v6 = vsel %vm7372_vm7, %v5008_v16, %v5009_v17  ;;  %v5043_v58 = vrot.slane %v5041_v51, 4 }
 0x1b7   : > { %4783 = vmatprep.mubr.bf16.mxu0 %v7074_v4  ;;  %v4489_v46 = vsel %vm7213_vm4, %v4484_v34, %v4488_v36  ;;  %v5013_v14 = vrot.slane %v6256_v62, 5  ;;  %v6317_v26 = vcombine.low %v5007_v18, %v5010_v6  ;;  %v6971_v34 = vld [vmem:[%s7192_s19 + $0x78] sm:$0xff]   ;;  %v6272_v10 = vld [vmem:[%s7192_s19 + $0x68] sm:$0x1]  ;;  %v5944_v16 = vld [vmem:[%s7192_s19 + $0x6c] sm:$0xf] }
 0x1b8   : > { %v6231_v52 = vcombine.low %v4479_v45, %v4489_v46  ;;  %v6262_v46 = vld [vmem:[%s7192_s19 + $0x40] sm:$0xf]  ;;  %v6975_v17 = vld [vmem:[%s7192_s19 + $0xa8] sm:$0xff]   ;;  %v5945_v18 = vld [vmem:[%s7192_s19 + $0x70] sm:$0xf]  ;;  %v6306_v6 = vrot.slane %v6270_v7, 9 }
 0x1b9   : > { %v5014_v36 = vsel %vm7372_vm7, %v6301_v5, %v5013_v14  ;;  %v5051_v21 = vrot.slane %v6272_v10, 5  ;;  %v2542_v32 = vshrl.u32 %v5945_v18, 16 }
 0x1bb   : > { %5906 = vmatmul.mubr.msk.bf16.gmra.mrb[8].mxu1 %vm684_vm3, %v6964_v56  ;;  %v4507_v56 = vor.u32 %v4506_v40, %v4502_v39  ;;  %v6258_v39 = vld [vmem:[%s7192_s19 + $0x30] sm:$0xe]  ;;  %v6260_v40 = vld [vmem:[%s7192_s19 + $0x38] sm:$0x1] }
 0x1bc   : > { %2093 = vmatprep.mubr.bf16.mxu1 %v7074_v4  ;;  %v6302_v43 = vrot.slane %v6258_v39, 9  ;;  %v5023_v45 = vrot.slane %v6260_v40, 5  ;;  %v6273_v40 = vld [vmem:[%s7192_s19 + $0x6c] sm:$0xe] }
 0x1bd   : > { %v4508_v25 = vrot.slane %v4507_v56, 4 }
 0x1be   : > { %6246 = vmatmul.mubr.msk.bf16.gmra.mrb[40].mxu0 %vm684_vm3, %v6228_v31  ;;  %v4512_v31 = vrot.slane %v4510_v55, 5  ;;  %v5021_v56 = vsel %vm7372_vm7, %v6302_v43, %v5020_v38  ;;  %v5024_v55 = vsel %vm7372_vm7, %v5022_v44, %v5023_v45  ;;  %v2544_v44 = vrot.slane %v2542_v32, 4  ;;  %v6976_v45 = vld [vmem:[%s7192_s19 + $0xb4] sm:$0xff]  }
 0x1bf   : > { %4793 = vmatprep.mubr.bf16.mxu0 %v7074_v4  ;;  %v6319_v22 = vcombine.low %v5021_v56, %v5024_v55  ;;  %v5948_v55 = vld [vmem:[%s7192_s19 + $0x7c] sm:$0xf] }
 0x1c0   : > { %v4513_v47 = vsel %vm7213_vm4, %v4508_v25, %v4512_v31  ;;  %v6265_v25 = vld [vmem:[%s7192_s19 + $0x4c] sm:$0xf]  ;;  %v6973_v31 = vld [vmem:[%s7192_s19 + $0x90] sm:$0xff]  }
 0x1c1   : > { %v6232_v48 = vcombine.low %v4503_v0, %v4513_v47 }
 0x1c3   : > { %5907 = vmatmul.mubr.msk.bf16.gmra.mrb[12].mxu1 %vm684_vm3, %v6965_v50  ;;  %v4522_v50 = vrot.slane %v4521_v13, 4  ;;  %v5037_v13 = vrot.slane %v6266_v53, 5 }
 0x1c4   : > { %2103 = vmatprep.mubr.bf16.mxu1 %v7074_v4 }
 0x1c5   : > { %v4527_v27 = vsel %vm7213_vm4, %v4522_v50, %v4526_v33  ;;  %v5034_v33 = vrot.slane %v6265_v25, 5 }
 0x1c6   : > { %6247 = vmatmul.mubr.msk.bf16.gmra.mrb[44].mxu0 %vm684_vm3, %v6229_v8  ;;  %v6233_v8 = vcombine.low %v4527_v27, %v4537_v2  ;;  %v6271_v27 = vld [vmem:[%s7192_s19 + $0x64] sm:$0xf]  ;;  %v6305_v2 = vrot.slane %v6267_v15, 9 }
 0x1c7   : > { %4803 = vmatprep.mubr.bf16.mxu0 %v7074_v4  ;;  %v5036_v47 = vrot.slane %v5034_v33, 4 }
 0x1c8   : > { %v5042_v62 = vsel %vm7372_vm7, %v6305_v2, %v5041_v51 }
 0x1c9   : > { %v5038_v50 = vsel %vm7372_vm7, %v5036_v47, %v5037_v13  ;;  %v6276_v13 = vld [vmem:[%s7192_s19 + $0x78] sm:$0xe] }
 0x1ca   : > { %v6308_v2 = vrot.slane %v6276_v13, 9 }
 0x1cb   : > { %5908 = vmatmul.mubr.msk.bf16.gmra.mrb[16].mxu1 %vm684_vm3, %v6966_v20  ;;  %v5015_v20 = vrot.slane %v5013_v14, 4 }
 0x1cc   : > { %2113 = vmatprep.mubr.bf16.mxu1 %v7074_v4 }
 0x1ce   : > { %6248 = vmatmul.mubr.msk.bf16.gmra.mrb[48].mxu0 %vm684_vm3, %v6230_v29  ;;  %v5016_v29 = vrot.slane %v6257_v24, 5  ;;  %v2529_v24 = vshrl.u32 %v5944_v16, 16 }
 0x1cf   : > { %4813 = vmatprep.mubr.bf16.mxu0 %v7074_v4 }
 0x1d0   : > { %v5017_v35 = vsel %vm7372_vm7, %v5015_v20, %v5016_v29  ;;  %v6274_v20 = vld [vmem:[%s7192_s19 + $0x70] sm:$0xf]  ;;  %v2538_v29 = vshll.u32 %v5945_v18, 16  ;;  %v2531_v38 = vrot.slane %v2529_v24, 4 }
 0x1d1   : > { %v6318_v41 = vcombine.low %v5014_v36, %v5017_v35  ;;  %v5055_v35 = vrot.slane %v6274_v20, 5 }
 0x1d2   : > { %v2540_v43 = vrot.slane %v2538_v29, 5  ;;  %v6279_v29 = vld [vmem:[%s7192_s19 + $0x84] sm:$0xe] }
 0x1d3   : > { %5909 = vmatmul.mubr.msk.bf16.gmra.mrb[20].mxu1 %vm684_vm3, %v6967_v12  ;;  %v5027_v12 = vrot.slane %v6262_v46, 5  ;;  %v5946_v46 = vld [vmem:[%s7192_s19 + $0x74] sm:$0x1]  ;;  %v5057_v61 = vrot.slane %v5055_v35, 4 }
 0x1d4   : > { %2123 = vmatprep.mubr.bf16.mxu1 %v7074_v4 }
 0x1d5   : > { %v5028_v59 = vsel %vm7372_vm7, %v6303_v28, %v5027_v12  ;;  %v2545_v28 = vor.u32 %v2544_v44, %v2540_v43 }
 0x1d6   : > { %6249 = vmatmul.mubr.msk.bf16.gmra.mrb[52].mxu0 %vm684_vm3, %v6231_v52  ;;  %v5029_v52 = vrot.slane %v5027_v12, 4  ;;  %v6307_v12 = vrot.slane %v6273_v40, 9 }
 0x1d7   : > { %4823 = vmatprep.mubr.bf16.mxu0 %v7074_v4 }
 0x1d8   : > { %v5031_v1 = vsel %vm7372_vm7, %v5029_v52, %v5030_v60  ;;  %v2548_v52 = vshll.u32 %v5946_v46, 16  ;;  %v6277_v60 = vld [vmem:[%s7192_s19 + $0x7c] sm:$0xf]  ;;  %v5954_v46 = vld [vmem:[%s7192_s19 + $0x94] sm:$0xf] }
 0x1d9   : > { %v6320_v0 = vcombine.low %v5028_v59, %v5031_v1  ;;  %v2562_v59 = vshll.u32 %v5948_v55, 16  ;;  %v2566_v1 = vshrl.u32 %v5948_v55, 16 }
 0x1da   : > { %v2550_v47 = vrot.slane %v2548_v52, 5 }
 0x1db   : > { %5910 = vmatmul.mubr.msk.bf16.gmra.mrb[24].mxu1 %vm684_vm3, %v6968_v30  ;;  %v6304_v30 = vrot.slane %v6264_v37, 9  ;;  %v8266_v51 = vrot.slane %v2562_v59, 5  ;;  %v2568_v15 = vrot.slane %v2566_v1, 4  ;;  %v2614_v59 = vshrl.u32 %v5954_v46, 16 }
 0x1dc   : > { %2133 = vmatprep.mubr.bf16.mxu1 %v7074_v4 }
 0x1de   : > { %6250 = vmatmul.mubr.msk.bf16.gmra.mrb[56].mxu0 %vm684_vm3, %v6232_v48  ;;  %v5035_v48 = vsel %vm7372_vm7, %v6304_v30, %v5034_v33  ;;  %v5056_v33 = vsel %vm7372_vm7, %v6307_v12, %v5055_v35  ;;  %v2546_v30 = vrot.slane %v2545_v28, 4  ;;  %v6281_v35 = vld [vmem:[%s7192_s19 + $0x8c] sm:$0x1] }
 0x1df   : > { %4833 = vmatprep.mubr.bf16.mxu0 %v7074_v4  ;;  %v5072_v12 = vrot.slane %v6281_v35, 5  ;;  %v5958_v35 = vld [vmem:[%s7192_s19 + $0xa4] sm:$0x1] }
 0x1e3   : > { %5911 = vmatmul.mubr.msk.bf16.gmra.mrb[28].mxu1 %vm684_vm3, %v6969_v54  ;;  %v6321_v54 = vcombine.low %v5035_v48, %v5038_v50  ;;  %v6977_v48 = vld [vmem:[%s7192_s19 + $0xc0] sm:$0xff]  }
 0x1e4   : > { %2143 = vmatprep.mubr.bf16.mxu1 %v7074_v4  ;;  %v6278_v50 = vld [vmem:[%s7192_s19 + $0x80] sm:$0x1] }
 0x1e5   : > { %v5065_v10 = vrot.slane %v6278_v50, 5 }
 0x1e6   : > { %6251 = vmatmul.mubr.msk.bf16.gmra.mrb[60].mxu0 %vm684_vm3, %v6233_v8  ;;  %v5048_v8 = vrot.slane %v6271_v27, 5 }
 0x1e7   : > { %5261 = vmatprep.mubr.bf16.mxu0 %v7074_v4 }
 0x1e8   : > { %v5050_v14 = vrot.slane %v5048_v8, 4 }
 0x1ea   : > { %v5052_v36 = vsel %vm7372_vm7, %v5050_v14, %v5051_v21 }
 0x1eb   : > { %5912 = vmatmul.mubr.msk.bf16.gmra.mrb[32].mxu1 %vm684_vm3, %v6970_v9  ;;  %v5045_v9 = vsel %vm7372_vm7, %v5043_v58, %v5044_v3  ;;  %v5951_v3 = vld [vmem:[%s7192_s19 + $0x88] sm:$0xf] }
 0x1ec   : > { %2153 = vmatprep.mubr.bf16.mxu1 %v7074_v4  ;;  %v6322_v5 = vcombine.low %v5042_v62, %v5045_v9  ;;  %v2572_v62 = vshll.u32 %v5949_v19, 16  ;;  %v6280_v9 = vld [vmem:[%s7192_s19 + $0x88] sm:$0xf]  ;;  %v2586_v14 = vshll.u32 %v5951_v3, 16  ;;  %v2590_v21 = vshrl.u32 %v5951_v3, 16 }
 0x1ed   : > { %v5069_v32 = vrot.slane %v6280_v9, 5 }
 0x1ee   : > { %6335 = vmatmul.mubr.msk.bf16.vlgmr.msra.gmra.mrb[0].mxu0 %vm684_vm3, %v6317_v26  ;;  %v2532_v26 = vshll.u32 %v5944_v16, 16  ;;  %v8287_v40 = vrot.slane %v2586_v14, 5 }
 0x1ef   : > { %5271 = vmatprep.mubr.bf16.mxu0 %v7074_v4  ;;  %v5071_v55 = vrot.slane %v5069_v32, 4 }
 0x1f0   : > { %v2534_v39 = vrot.slane %v2532_v26, 5 }
 0x1f3   : > { %5913 = vmatmul.mubr.msk.bf16.gmra.mrb[36].mxu1 %vm684_vm3, %v6971_v34  ;;  %v5049_v34 = vsel %vm7372_vm7, %v6306_v6, %v5048_v8  ;;  %v2551_v8 = vsel %vm7213_vm4, %v2546_v30, %v2550_v47  ;;  %v5957_v30 = vld [vmem:[%s7192_s19 + $0xa0] sm:$0xf] }
 0x1f4   : > { %2163 = vmatprep.mubr.bf16.mxu1 %v7074_v4  ;;  %v6323_v56 = vcombine.low %v5049_v34, %v5052_v36  ;;  %v2574_v36 = vrot.slane %v2572_v62, 5  ;;  %v2634_v3 = vshll.u32 %v5957_v30, 16 }
 0x1f6   : > { %6336 = vmatmul.mubr.msk.bf16.gmra.mrb[4].mxu0 %vm684_vm3, %v6318_v41  ;;  %v6275_v41 = vld [vmem:[%s7192_s19 + $0x74] sm:$0x1] }
 0x1f7   : > { %5281 = vmatprep.mubr.bf16.mxu0 %v7074_v4  ;;  %v5058_v63 = vrot.slane %v6275_v41, 5  ;;  %v2592_v41 = vrot.slane %v2590_v21, 4  ;;  %v6285_v21 = vld [vmem:[%s7192_s19 + $0x9c] sm:$0xe] }
 0x1f9   : > { %v5059_v37 = vsel %vm7372_vm7, %v5057_v61, %v5058_v63  ;;  %v6283_v61 = vld [vmem:[%s7192_s19 + $0x94] sm:$0xf] }
 0x1fa   : > { %v6324_v27 = vcombine.low %v5056_v33, %v5059_v37  ;;  %v5076_v1 = vrot.slane %v6283_v61, 5  ;;  %v5073_v37 = vsel %vm7372_vm7, %v5071_v55, %v5072_v12  ;;  %v2644_v61 = vshll.u32 %v5958_v35, 16 }
 0x1fb   : > { %5914 = vmatmul.mubr.msk.bf16.gmra.mrb[40].mxu1 %vm684_vm3, %v6972_v49  ;;  %v5947_v49 = vld [vmem:[%s7192_s19 + $0x78] sm:$0xf] }
 0x1fc   : > { %2173 = vmatprep.mubr.bf16.mxu1 %v7074_v4  ;;  %v2553_v25 = vshrl.u32 %v5947_v49, 16 }
 0x1fe   : > { %6337 = vmatmul.mubr.msk.bf16.gmra.mrb[8].mxu0 %vm684_vm3, %v6319_v22  ;;  %v2535_v22 = vor.u32 %v2534_v39, %v2531_v38  ;;  %v2555_v23 = vrot.slane %v2553_v25, 4 }
 0x1ff   : > { %5291 = vmatprep.mubr.bf16.mxu0 %v7074_v4 }
 0x200   : > { %v2536_v53 = vrot.slane %v2535_v22, 4 }
 0x202   : > { %v2541_v7 = vsel %vm7213_vm4, %v2536_v53, %v2540_v43  ;;  %v5953_v43 = vld [vmem:[%s7192_s19 + $0x90] sm:$0xf] }
 0x203   : > { %5915 = vmatmul.mubr.msk.bf16.gmra.mrb[44].mxu1 %vm684_vm3, %v6973_v31  ;;  %v2556_v31 = vshll.u32 %v5947_v49, 16  ;;  %v5977_v26 = vcombine.low %v2541_v7, %v2551_v8  ;;  %v2601_v28 = vshrl.u32 %v5953_v43, 16  ;;  %v2604_v52 = vshll.u32 %v5953_v43, 16  ;;  %v6282_v53 = vld [vmem:[%s7192_s19 + $0x90] sm:$0xe] }
 0x204   : > { %2183 = vmatprep.mubr.bf16.mxu1 %v7074_v4  ;;  %v2638_v7 = vshrl.u32 %v5957_v30, 16  ;;  %v5960_v43 = vld [vmem:[%s7192_s19 + $0xac] sm:$0xf] }
 0x206   : > { %6338 = vmatmul.mubr.msk.bf16.gmra.mrb[12].mxu0 %vm684_vm3, %v6320_v0  ;;  %v5062_v0 = vrot.slane %v6277_v60, 5  ;;  %v2593_v60 = vor.u32 %v2592_v41, %v8287_v40  ;;  %v5959_v41 = vld [vmem:[%s7192_s19 + $0xa8] sm:$0xf] }
 0x207   : > { %5301 = vmatprep.mubr.bf16.mxu0 %v7074_v4 }
 0x208   : > { %v5064_v58 = vrot.slane %v5062_v0, 4  ;;  %v5063_v24 = vsel %vm7372_vm7, %v6308_v2, %v5062_v0  ;;  %v5956_v0 = vld [vmem:[%s7192_s19 + $0x9c] sm:$0xf]  ;;  %v2594_v50 = vrot.slane %v2593_v60, 4  ;;  %v2662_v60 = vshrl.u32 %v5960_v43, 16 }
 0x209   : > { %v2625_v2 = vshrl.u32 %v5956_v0, 16 }
 0x20b   : > { %5916 = vmatmul.mubr.msk.bf16.gmra.mrb[48].mxu1 %vm684_vm3, %v6974_v11  ;;  %v2558_v11 = vrot.slane %v2556_v31, 5  ;;  %v2610_v31 = vshll.u32 %v5954_v46, 16 }
 0x20c   : > { %2193 = vmatprep.mubr.bf16.mxu1 %v7074_v4 }
 0x20d   : > { %v2559_v16 = vor.u32 %v2558_v11, %v2555_v23  ;;  %v6284_v23 = vld [vmem:[%s7192_s19 + $0x98] sm:$0x1]  ;;  %v2603_v11 = vrot.slane %v2601_v28, 4  ;;  %v8312_v19 = vrot.slane %v2610_v31, 5  ;;  %v2652_v28 = vshll.u32 %v5959_v41, 16 }
 0x20e   : > { %6339 = vmatmul.mubr.msk.bf16.gmra.mrb[16].mxu0 %vm684_vm3, %v6321_v54  ;;  %v5950_v54 = vld [vmem:[%s7192_s19 + $0x84] sm:$0xf] }
 0x20f   : > { %5311 = vmatprep.mubr.bf16.mxu0 %v7074_v4  ;;  %v2577_v18 = vshrl.u32 %v5950_v54, 16  ;;  %v2580_v6 = vshll.u32 %v5950_v54, 16  ;;  %v2560_v20 = vrot.slane %v2559_v16, 4  ;;  %v2616_v54 = vrot.slane %v2614_v59, 4 }
 0x210   : > { %v5078_v16 = vrot.slane %v5076_v1, 4 }
 0x211   : > { %v2579_v38 = vrot.slane %v2577_v18, 4  ;;  %v2582_v39 = vrot.slane %v2580_v6, 5  ;;  %v2565_v49 = vsel %vm7213_vm4, %v2560_v20, %v8266_v51  ;;  %v2617_v14 = vor.u32 %v2616_v54, %v8312_v19  ;;  %v5963_v54 = vld [vmem:[%s7192_s19 + $0xb8] sm:$0xf] }
 0x213   : > { %5917 = vmatmul.mubr.msk.bf16.gmra.mrb[52].mxu1 %vm684_vm3, %v6975_v17  ;;  %v2569_v17 = vor.u32 %v2568_v15, %v8266_v51  ;;  %v2583_v22 = vor.u32 %v2582_v39, %v2579_v38  ;;  %v5955_v15 = vld [vmem:[%s7192_s19 + $0x98] sm:$0x1] }
 0x214   : > { %2203 = vmatprep.mubr.bf16.mxu1 %v7074_v4  ;;  %v2620_v9 = vshll.u32 %v5955_v15, 16 }
 0x215   : > { %v2570_v34 = vrot.slane %v2569_v17, 4  ;;  %v2584_v13 = vrot.slane %v2583_v22, 4  ;;  %v5079_v17 = vrot.slane %v6284_v23, 5  ;;  %v2649_v22 = vshrl.u32 %v5959_v41, 16 }
 0x216   : > { %6340 = vmatmul.mubr.msk.bf16.gmra.mrb[20].mxu0 %vm684_vm3, %v6322_v5  ;;  %v5066_v5 = vsel %vm7372_vm7, %v5064_v58, %v5065_v10  ;;  %v2628_v58 = vshll.u32 %v5956_v0, 16  ;;  %v6310_v10 = vrot.slane %v6282_v53, 9  ;;  %v2646_v53 = vrot.slane %v2644_v61, 5  ;;  %v6288_v0 = vld [vmem:[%s7192_s19 + $0xa8] sm:$0xe] }
 0x217   : > { %5321 = vmatprep.mubr.bf16.mxu0 %v7074_v4  ;;  %v6325_v44 = vcombine.low %v5063_v24, %v5066_v5  ;;  %v2575_v63 = vsel %vm7213_vm4, %v2570_v34, %v2574_v36  ;;  %v2589_v18 = vsel %vm7213_vm4, %v2584_v13, %v8287_v40  ;;  %v2627_v5 = vrot.slane %v2625_v2, 4 }
 0x218   : > { %v5978_v47 = vcombine.low %v2565_v49, %v2575_v63  ;;  %v2630_v20 = vrot.slane %v2628_v58, 5  ;;  %v5077_v34 = vsel %vm7372_vm7, %v6310_v10, %v5076_v1  ;;  %v5080_v36 = vsel %vm7372_vm7, %v5078_v16, %v5079_v17  ;;  %v6289_v63 = vld [vmem:[%s7192_s19 + $0xac] sm:$0xf]  ;;  %v6292_v17 = vld [vmem:[%s7192_s19 + $0xb8] sm:$0xf] }
 0x219   : > { %v2622_v40 = vrot.slane %v2620_v9, 5  ;;  %v5090_v30 = vrot.slane %v6289_v63, 5  ;;  %v2651_v13 = vrot.slane %v2649_v22, 4  ;;  %v2654_v23 = vrot.slane %v2652_v28, 5  ;;  %v6295_v22 = vld [vmem:[%s7192_s19 + $0xc4] sm:$0xf] }
 0x21a   : > { %v2631_v55 = vor.u32 %v2630_v20, %v2627_v5  ;;  %v6312_v2 = vrot.slane %v6288_v0, 9  ;;  %v6294_v0 = vld [vmem:[%s7192_s19 + $0xc0] sm:$0xe] }
 0x21b   : > { %5918 = vmatmul.mubr.msk.bf16.gmra.mrb[56].mxu1 %vm684_vm3, %v6976_v45  ;;  %v5952_v45 = vld [vmem:[%s7192_s19 + $0x8c] sm:$0x1]  ;;  %v5092_v58 = vrot.slane %v5090_v30, 4 }
 0x21c   : > { %2213 = vmatprep.mubr.bf16.mxu1 %v7074_v4  ;;  %v2596_v25 = vshll.u32 %v5952_v45, 16  ;;  %v6311_v45 = vrot.slane %v6285_v21, 9  ;;  %v5091_v21 = vsel %vm7372_vm7, %v6312_v2, %v5090_v30  ;;  %v5104_v30 = vrot.slane %v6295_v22, 5 }
 0x21e   : > { %6341 = vmatmul.mubr.msk.bf16.gmra.mrb[24].mxu0 %vm684_vm3, %v6323_v56  ;;  %v6309_v56 = vrot.slane %v6279_v29, 9  ;;  %v2598_v51 = vrot.slane %v2596_v25, 5  ;;  %v8325_v29 = vrot.slane %v2634_v3, 5 }
 0x21f   : > { %5331 = vmatprep.mubr.bf16.mxu0 %v7074_v4 }
 0x220   : > { %v5070_v33 = vsel %vm7372_vm7, %v6309_v56, %v5069_v32  ;;  %v2599_v6 = vsel %vm7213_vm4, %v2594_v50, %v2598_v51  ;;  %v2640_v32 = vrot.slane %v2638_v7, 4  ;;  %v6327_v56 = vcombine.low %v5077_v34, %v5080_v36  ;;  %v5961_v51 = vld [vmem:[%s7192_s19 + $0xb0] sm:$0x1]  ;;  %v6293_v34 = vld [vmem:[%s7192_s19 + $0xbc] sm:$0x1] }
 0x221   : > { %v6326_v8 = vcombine.low %v5070_v33, %v5073_v37  ;;  %v5979_v38 = vcombine.low %v2589_v18, %v2599_v6  ;;  %v2632_v33 = vrot.slane %v2631_v55, 4  ;;  %v2668_v16 = vshll.u32 %v5961_v51, 16 }
 0x222   : > { %v2641_v12 = vor.u32 %v2640_v32, %v8325_v29  ;;  %v2682_v18 = vshll.u32 %v5963_v54, 16  ;;  %v2686_v6 = vshrl.u32 %v5963_v54, 16  ;;  %v5097_v32 = vrot.slane %v6292_v17, 5 }
 0x223   : > { %5919 = vmatmul.mubr.msk.bf16.gmra.mrb[60].mxu1 %vm684_vm3, %v6977_v48  ;;  %v2606_v48 = vrot.slane %v2604_v52, 5  ;;  %v2658_v52 = vshll.u32 %v5960_v43, 16  ;;  %v2670_v20 = vrot.slane %v2668_v16, 5  ;;  %v5965_v43 = vld [vmem:[%s7192_s19 + $0xc0] sm:$0xf]  ;;  %v5106_v54 = vrot.slane %v5104_v30, 4 }
 0x224   : > { %2945 = vmatprep.mubr.bf16.mxu1 %v7074_v4  ;;  %v2642_v37 = vrot.slane %v2641_v12, 4  ;;  %v2697_v28 = vshrl.u32 %v5965_v43, 16 }
 0x225   : > { %v2607_v62 = vor.u32 %v2606_v48, %v2603_v11  ;;  %v2660_v11 = vrot.slane %v2658_v52, 5  ;;  %v2664_v48 = vrot.slane %v2662_v60, 4  ;;  %v2700_v52 = vshll.u32 %v5965_v43, 16 }
 0x226   : > { %6342 = vmatmul.mubr.msk.bf16.gmra.mrb[28].mxu0 %vm684_vm3, %v6324_v27  ;;  %v6286_v27 = vld [vmem:[%s7192_s19 + $0xa0] sm:$0xf]  ;;  %v2647_v7 = vsel %vm7213_vm4, %v2642_v37, %v2646_v53 }
 0x227   : > { %5341 = vmatprep.mubr.bf16.mxu0 %v7074_v4  ;;  %v5083_v24 = vrot.slane %v6286_v27, 5  ;;  %v2608_v39 = vrot.slane %v2607_v62, 4  ;;  %v2637_v27 = vsel %vm7213_vm4, %v2632_v33, %v8325_v29  ;;  %v2665_v10 = vor.u32 %v2664_v48, %v2660_v11  ;;  %v6291_v29 = vld [vmem:[%s7192_s19 + $0xb4] sm:$0xe] }
 0x229   : > { %v5085_v46 = vrot.slane %v5083_v24, 4  ;;  %v2613_v25 = vsel %vm7213_vm4, %v2608_v39, %v8312_v19  ;;  %v5084_v59 = vsel %vm7372_vm7, %v6311_v45, %v5083_v24  ;;  %v5962_v19 = vld [vmem:[%s7192_s19 + $0xb4] sm:$0xf]  ;;  %v2666_v5 = vrot.slane %v2665_v10, 4 }
 0x22a   : > { %v2673_v62 = vshrl.u32 %v5962_v19, 16  ;;  %v2676_v9 = vshll.u32 %v5962_v19, 16  ;;  %v2688_v39 = vrot.slane %v2686_v6, 4  ;;  %v6314_v19 = vrot.slane %v6294_v0, 9 }
 0x22b   : > { %5995 = vmatmul.mubr.msk.bf16.vlgmr.msra.gmra.mrb[32].mxu1 %vm684_vm3, %v5977_v26  ;;  %v6287_v26 = vld [vmem:[%s7192_s19 + $0xa4] sm:$0x1]  ;;  %v2671_v55 = vsel %vm7213_vm4, %v2666_v5, %v2670_v20 }
 0x22c   : > { %2955 = vmatprep.mubr.bf16.mxu1 %v7074_v4  ;;  %v5086_v49 = vrot.slane %v6287_v26, 5  ;;  %v2675_v36 = vrot.slane %v2673_v62, 4  ;;  %v2678_v35 = vrot.slane %v2676_v9, 5  ;;  %v5105_v16 = vsel %vm7372_vm7, %v6314_v19, %v5104_v30  ;;  %v6297_v62 = vld [vmem:[%s7192_s19 + $0xcc] sm:$0xe] }
 0x22d   : > { %v5488_v30 = vlaneseq }
 0x22e   : > { %6343 = vmatmul.mubr.msk.bf16.gmra.mrb[32].mxu0 %vm684_vm3, %v6325_v44  ;;  %v2618_v44 = vrot.slane %v2617_v14, 4  ;;  %v5087_v1 = vsel %vm7372_vm7, %v5085_v46, %v5086_v49  ;;  %v5981_v14 = vcombine.low %v2637_v27, %v2647_v7  ;;  %v6313_v46 = vrot.slane %v6291_v29, 9 }
 0x22f   : > { %5351 = vmatprep.mubr.bf16.mxu0 %v7074_v4  ;;  %v6328_v15 = vcombine.low %v5084_v59, %v5087_v1  ;;  %v5099_v49 = vrot.slane %v5097_v32, 4  ;;  %v2679_v12 = vor.u32 %v2678_v35, %v2675_v36 }
 0x230   : > { %v2623_v31 = vsel %vm7213_vm4, %v2618_v44, %v2622_v40  ;;  %v5964_v40 = vld [vmem:[%s7192_s19 + $0xbc] sm:$0x1]  ;;  %v5966_v44 = vld [vmem:[%s7192_s19 + $0xc4] sm:$0xf]  ;;  %v5098_v59 = vsel %vm7372_vm7, %v6313_v46, %v5097_v32 }
 0x231   : > { %v5980_v50 = vcombine.low %v2613_v25, %v2623_v31  ;;  %v2692_v63 = vshll.u32 %v5964_v40, 16  ;;  %v2706_v60 = vshll.u32 %v5966_v44, 16  ;;  %v2710_v25 = vshrl.u32 %v5966_v44, 16 }
 0x232   : > { %v2680_v33 = vrot.slane %v2679_v12, 4 }
 0x233   : > { %5996 = vmatmul.mubr.msk.bf16.gmra.mrb[36].mxu1 %vm684_vm3, %v5978_v47  ;;  %v6290_v47 = vld [vmem:[%s7192_s19 + $0xb0] sm:$0x1]  ;;  %v2694_v53 = vrot.slane %v2692_v63, 5  ;;  %v2712_v48 = vrot.slane %v2710_v25, 4 }
 0x234   : > { %2965 = vmatprep.mubr.bf16.mxu1 %v7074_v4  ;;  %v5093_v3 = vrot.slane %v6290_v47, 5  ;;  %v6296_v47 = vld [vmem:[%s7192_s19 + $0xc8] sm:$0x1] }
 0x235   : > { %v5107_v27 = vrot.slane %v6296_v47, 5 }
 0x236   : > { %6344 = vmatmul.mubr.msk.bf16.gmra.mrb[36].mxu0 %vm684_vm3, %v6326_v8  ;;  %v2655_v8 = vor.u32 %v2654_v23, %v2651_v13  ;;  %v5094_v24 = vsel %vm7372_vm7, %v5092_v58, %v5093_v3  ;;  %v2699_v13 = vrot.slane %v2697_v28, 4  ;;  %v2702_v23 = vrot.slane %v2700_v52, 5 }
 0x237   : > { %5361 = vmatprep.mubr.bf16.mxu0 %v7074_v4  ;;  %v6329_v41 = vcombine.low %v5091_v21, %v5094_v24  ;;  %v5108_v17 = vsel %vm7372_vm7, %v5106_v54, %v5107_v27  ;;  %v6299_v21 = vld [vmem:[%s7192_s19 + $0xd4] sm:$0x1] }
 0x238   : > { %v2656_v26 = vrot.slane %v2655_v8, 4  ;;  %v2703_v58 = vor.u32 %v2702_v23, %v2699_v13  ;;  %v6298_v8 = vld [vmem:[%s7192_s19 + $0xd0] sm:$0xf]  ;;  %v6331_v24 = vcombine.low %v5105_v16, %v5108_v17  ;;  %v5114_v20 = vrot.slane %v6299_v21, 5 }
 0x239   : > { %v5111_v9 = vrot.slane %v6298_v8, 5 }
 0x23a   : > { %v2661_v45 = vsel %vm7213_vm4, %v2656_v26, %v2660_v11  ;;  %v2708_v11 = vrot.slane %v2706_v60, 5  ;;  %v6315_v26 = vrot.slane %v6297_v62, 9 }
 0x23b   : > { %5997 = vmatmul.mubr.msk.bf16.gmra.mrb[40].mxu1 %vm684_vm3, %v5979_v38  ;;  %v2684_v38 = vrot.slane %v2682_v18, 5  ;;  %v5982_v31 = vcombine.low %v2661_v45, %v2671_v55  ;;  %v2704_v18 = vrot.slane %v2703_v58, 4  ;;  %v5113_v5 = vrot.slane %v5111_v9, 4 }
 0x23c   : > { %2975 = vmatprep.mubr.bf16.mxu1 %v7074_v4  ;;  %v2713_v3 = vor.u32 %v2712_v48, %v2708_v11  ;;  %v5112_v36 = vsel %vm7372_vm7, %v6315_v26, %v5111_v9 }
 0x23d   : > { %v2689_v61 = vor.u32 %v2688_v39, %v2684_v38  ;;  %v2709_v29 = vsel %vm7213_vm4, %v2704_v18, %v2708_v11  ;;  %v5115_v35 = vsel %vm7372_vm7, %v5113_v5, %v5114_v20  ;;  %v5489_v11 = vshrl.u32 %v5488_v30, 7 }
 0x23e   : > { %6345 = vmatmul.mubr.msk.bf16.gmra.mrb[40].mxu0 %vm684_vm3, %v6327_v56  ;;  %v5100_v56 = vrot.slane %v6293_v34, 5  ;;  %v2714_v6 = vrot.slane %v2713_v3, 4 }
 0x23f   : > { %5371 = vmatprep.mubr.bf16.mxu0 %v7074_v4  ;;  %v2690_v37 = vrot.slane %v2689_v61, 4 }
 0x240   : > { %v5101_v1 = vsel %vm7372_vm7, %v5099_v49, %v5100_v56 }
 0x241   : > { %v6330_v51 = vcombine.low %v5098_v59, %v5101_v1  ;;  %v2695_v2 = vsel %vm7213_vm4, %v2690_v37, %v2694_v53 }
 0x243   : > { %5998 = vmatmul.mubr.msk.bf16.gmra.mrb[44].mxu1 %vm684_vm3, %v5980_v50  ;;  %v5967_v50 = vld [vmem:[%s7192_s19 + $0xc8] sm:$0x1] }
 0x244   : > { %2985 = vmatprep.mubr.bf16.mxu1 %v7074_v4  ;;  %v2716_v7 = vshll.u32 %v5967_v50, 16  ;;  %v5490_v50 = vsub.s32 0, %v5489_v11 }
 0x246   : > { %6346 = vmatmul.mubr.msk.bf16.gmra.mrb[44].mxu0 %vm684_vm3, %v6328_v15  ;;  %v2685_v15 = vsel %vm7213_vm4, %v2680_v33, %v2684_v38  ;;  %v6332_v38 = vcombine.low %v5112_v36, %v5115_v35 }
 0x247   : > { %5381 = vmatprep.mubr.bf16.mxu0 %v7074_v4  ;;  %v5983_v10 = vcombine.low %v2685_v15, %v2695_v2  ;;  %v5494_v15 = vsub.s32 1, %v5489_v11 }
 0x24b   : > { %5999 = vmatmul.mubr.msk.bf16.gmra.mrb[48].mxu1 %vm684_vm3, %v5981_v14  ;;  %v2718_v14 = vrot.slane %v2716_v7, 5 }
 0x24c   : > { %2995 = vmatprep.mubr.bf16.mxu1 %v7074_v4 }
 0x24d   : > { %v2719_v32 = vsel %vm7213_vm4, %v2714_v6, %v2718_v14 }
 0x24e   : > { %6347 = vmatmul.mubr.msk.bf16.gmra.mrb[48].mxu0 %vm684_vm3, %v6329_v41  ;;  %v5984_v34 = vcombine.low %v2709_v29, %v2719_v32 }
 0x24f   : > { %5391 = vmatprep.mubr.bf16.mxu0 %v7074_v4 }
 0x253   : > { %6000 = vmatmul.mubr.msk.bf16.gmra.mrb[52].mxu1 %vm684_vm3, %v5982_v31 }
 0x254   : > { %3005 = vmatprep.mubr.bf16.mxu1 %v7074_v4 }
 0x256   : > { %6348 = vmatmul.mubr.msk.bf16.gmra.mrb[52].mxu0 %vm684_vm3, %v6330_v51  ;;  %v5486_v51 = vld [vmem:[%s8659_s2] sm:$0x3] }
 0x257   : > { %5401 = vmatprep.mubr.bf16.mxu0 %v7074_v4  ;;  %v8471_v19 = vrot.slane %v5486_v51, %v5490_v50  ;;  %v8474_v27 = vrot.slane %v5486_v51, %v5494_v15 }
 0x25b   : > { %6001 = vmatmul.mubr.msk.bf16.gmra.mrb[56].mxu1 %vm684_vm3, %v5983_v10 }
 0x25c   : > { %3015 = vmatprep.mubr.bf16.mxu1 %v7074_v4 }
 0x25e   : > { %6349 = vmatmul.mubr.msk.bf16.gmra.mrb[56].mxu0 %vm684_vm3, %v6331_v24 }
 0x25f   : > { %5411 = vmatprep.mubr.bf16.mxu0 %v7074_v4 }
 0x263   : > { %6002 = vmatmul.mubr.msk.bf16.gmra.mrb[60].mxu1 %vm684_vm3, %v5984_v34 }
 0x266   : > { %6350 = vmatmul.mubr.msk.bf16.gmra.mrb[60].mxu0 %vm684_vm3, %v6332_v38 }
 0x27e   : > { %v2065_v39 = vpop.f32.mrb[0].mxu1 }
 0x27f   : > { %v2067_v40 = vpop.f32.mrb[1].mxu1 }
 0x280   : > { %v2069_v42 = vpop.f32.mrb[2].mxu1 }
 0x281   : > { %v2071_v41 = vpop.f32.mrb[3].mxu1 }
 0x286   : > { %v2075_v43 = vpop.f32.mrb[4].mxu1 }
 0x287   : > { %v2077_v44 = vpop.f32.mrb[5].mxu1 }
 0x288   : > { %v2079_v45 = vpop.f32.mrb[6].mxu1 }
 0x289   : > { %v2081_v4 = vpop.f32.mrb[7].mxu1 }
 0x28e   : > { %v8420_v46 = vpop.f32.mrb[8].mxu1 }
 0x28f   : > { %v8422_v49 = vpop.f32.mrb[9].mxu1 }
 0x290   : > { %v8424_v56 = vpop.f32.mrb[10].mxu1 }
 0x291   : > { %v8426_v57 = vpop.f32.mrb[11].mxu1 }
 0x296   : > { %v8428_v55 = vpop.f32.mrb[12].mxu1 }
 0x297   : > { %v8430_v12 = vpop.f32.mrb[13].mxu1 }
 0x298   : > { %v8432_v61 = vpop.f32.mrb[14].mxu1 }
 0x299   : > { %v8434_v63 = vpop.f32.mrb[15].mxu1 }
 0x29e   : > { %v8436_v22 = vpop.f32.mrb[16].mxu1 }
 0x29f   : > { %v8438_v28 = vpop.f32.mrb[17].mxu1 }
 0x2a0   : > { %v8440_v52 = vpop.f32.mrb[18].mxu1 }
 0x2a1   : > { %v8442_v60 = vpop.f32.mrb[19].mxu1 }
 0x2a6   : > { %v8444_v25 = vpop.f32.mrb[20].mxu1 }
 0x2a7   : > { %v8446_v31 = vpop.f32.mrb[21].mxu1 }
 0x2a8   : > { %v8448_v59 = vpop.f32.mrb[22].mxu1 }
 0x2a9   : > { %v8450_v1 = vpop.f32.mrb[23].mxu1 }
 0x2ae   : > { %v8452_v33 = vpop.f32.mrb[24].mxu1 }
 0x2af   : > { %v8454_v37 = vpop.f32.mrb[25].mxu1 }
 0x2b0   : > { %v8456_v53 = vpop.f32.mrb[26].mxu1 }
 0x2b1   : > { %v8458_v0 = vpop.f32.mrb[27].mxu1 }
 0x2b6   : > { %v8460_v47 = vpop.f32.mrb[28].mxu1 }
 0x2b7   : > { %v8462_v13 = vpop.f32.mrb[29].mxu1 }
 0x2b8   : > { %v8464_v23 = vpop.f32.mrb[30].mxu1 }
 0x2b9   : > { %v8466_v48 = vpop.f32.mrb[31].mxu1 }
 0x2c1   : > { %v5263_v54 = vpop.f32.mrb[0].mxu0 }
 0x2c2   : > { %v6359_v2 = vadd.f32 %v5263_v54, %v2065_v39  ;;  %v5265_v58 = vpop.f32.mrb[1].mxu0 }
 0x2c3   : > { %v6360_v3 = vadd.f32 %v5265_v58, %v2067_v40  ;;  %v5267_v7 = vpop.f32.mrb[2].mxu0 }
 0x2c4   : > { %v5498_v8 = vadd.f32 %v6359_v2, %v8471_v19  ;;  %v6361_v10 = vadd.f32 %v5267_v7, %v2069_v42  ;;  %v5269_v16 = vpop.f32.mrb[3].mxu0 }
 0x2c5   : > { %v5499_v17 = vadd.f32 %v6360_v3, %v8474_v27  ;;  %v6362_v62 = vadd.f32 %v5269_v16, %v2071_v41 }
 0x2c6   : > { %v5500_v9 = vadd.f32 %v6361_v10, %v8471_v19 }
 0x2c7   : > { %v5562_v18 = vmax.f32 %v5498_v8, %v5499_v17  ;;  %v5501_v6 = vadd.f32 %v6362_v62, %v8474_v27 }
 0x2c9   : > { %5594 = vst [vmem:[%s8482_s9] sm:$0xff] %v5562_v18  ;;  %v5563_v14 = vmax.f32 %v5500_v9, %v5501_v6  ;;  %v5273_v21 = vpop.f32.mrb[4].mxu0 }
 0x2ca   : > { %v6363_v24 = vadd.f32 %v5273_v21, %v2075_v43  ;;  %v5275_v26 = vpop.f32.mrb[5].mxu0 }
 0x2cb   : > { %5595 = vst [vmem:[%s8482_s9 + $0x8] sm:$0xff] %v5563_v14  ;;  %v6364_v5 = vadd.f32 %v5275_v26, %v2077_v44  ;;  %v5277_v20 = vpop.f32.mrb[6].mxu0 }
 0x2cc   : > { %v5502_v29 = vadd.f32 %v6363_v24, %v8471_v19  ;;  %v6365_v32 = vadd.f32 %v5277_v20, %v2079_v45  ;;  %v5279_v34 = vpop.f32.mrb[7].mxu0 }
 0x2cd   : > { %v5503_v36 = vadd.f32 %v6364_v5, %v8474_v27  ;;  %v6366_v35 = vadd.f32 %v5279_v34, %v2081_v4 }
 0x2ce   : > { %v5504_v38 = vadd.f32 %v6365_v32, %v8471_v19 }
 0x2cf   : > { %v5564_v39 = vmax.f32 %v5502_v29, %v5503_v36  ;;  %v5505_v40 = vadd.f32 %v6366_v35, %v8474_v27 }
 0x2d1   : > { %5596 = vst [vmem:[%s8482_s9 + $0x10] sm:$0xff] %v5564_v39  ;;  %v5565_v42 = vmax.f32 %v5504_v38, %v5505_v40  ;;  %v5283_v41 = vpop.f32.mrb[8].mxu0 }
 0x2d2   : > { %v6367_v43 = vadd.f32 %v5283_v41, %v8420_v46  ;;  %v5285_v44 = vpop.f32.mrb[9].mxu0 }
 0x2d3   : > { %5597 = vst [vmem:[%s8482_s9 + $0x18] sm:$0xff] %v5565_v42  ;;  %v6368_v45 = vadd.f32 %v5285_v44, %v8422_v49  ;;  %v5287_v30 = vpop.f32.mrb[10].mxu0 }
 0x2d4   : > { %v5506_v11 = vadd.f32 %v6367_v43, %v8471_v19  ;;  %v6369_v4 = vadd.f32 %v5287_v30, %v8424_v56  ;;  %v5289_v50 = vpop.f32.mrb[11].mxu0 }
 0x2d5   : > { %v5507_v51 = vadd.f32 %v6368_v45, %v8474_v27  ;;  %v6370_v15 = vadd.f32 %v5289_v50, %v8426_v57 }
 0x2d6   : > { %v5508_v54 = vadd.f32 %v6369_v4, %v8471_v19 }
 0x2d7   : > { %v5566_v2 = vmax.f32 %v5506_v11, %v5507_v51  ;;  %v5509_v46 = vadd.f32 %v6370_v15, %v8474_v27 }
 0x2d9   : > { %5598 = vst [vmem:[%s8482_s9 + $0x20] sm:$0xff] %v5566_v2  ;;  %v5567_v58 = vmax.f32 %v5508_v54, %v5509_v46  ;;  %v5293_v3 = vpop.f32.mrb[12].mxu0 }
 0x2da   : > { %v6371_v49 = vadd.f32 %v5293_v3, %v8428_v55  ;;  %v5295_v7 = vpop.f32.mrb[13].mxu0 }
 0x2db   : > { %5599 = vst [vmem:[%s8482_s9 + $0x28] sm:$0xff] %v5567_v58  ;;  %v6372_v56 = vadd.f32 %v5295_v7, %v8430_v12  ;;  %v5297_v8 = vpop.f32.mrb[14].mxu0 }
 0x2dc   : > { %v5510_v10 = vadd.f32 %v6371_v49, %v8471_v19  ;;  %v6373_v57 = vadd.f32 %v5297_v8, %v8432_v61  ;;  %v5299_v16 = vpop.f32.mrb[15].mxu0 }
 0x2dd   : > { %v5511_v17 = vadd.f32 %v6372_v56, %v8474_v27  ;;  %v6374_v62 = vadd.f32 %v5299_v16, %v8434_v63 }
 0x2de   : > { %v5512_v9 = vadd.f32 %v6373_v57, %v8471_v19 }
 0x2df   : > { %v5568_v18 = vmax.f32 %v5510_v10, %v5511_v17  ;;  %v5513_v55 = vadd.f32 %v6374_v62, %v8474_v27 }
 0x2e1   : > { %5600 = vst [vmem:[%s8482_s9 + $0x30] sm:$0xff] %v5568_v18  ;;  %v5569_v6 = vmax.f32 %v5512_v9, %v5513_v55  ;;  %v5303_v14 = vpop.f32.mrb[16].mxu0 }
 0x2e2   : > { %v6375_v12 = vadd.f32 %v5303_v14, %v8436_v22  ;;  %v5305_v21 = vpop.f32.mrb[17].mxu0 }
 0x2e3   : > { %5601 = vst [vmem:[%s8482_s9 + $0x38] sm:$0xff] %v5569_v6  ;;  %v6376_v61 = vadd.f32 %v5305_v21, %v8438_v28  ;;  %v5307_v24 = vpop.f32.mrb[18].mxu0 }
 0x2e4   : > { %v5514_v26 = vadd.f32 %v6375_v12, %v8471_v19  ;;  %v6377_v63 = vadd.f32 %v5307_v24, %v8440_v52  ;;  %v5309_v5 = vpop.f32.mrb[19].mxu0 }
 0x2e5   : > { %v5515_v20 = vadd.f32 %v6376_v61, %v8474_v27  ;;  %v6378_v29 = vadd.f32 %v5309_v5, %v8442_v60 }
 0x2e6   : > { %v5516_v32 = vadd.f32 %v6377_v63, %v8471_v19 }
 0x2e7   : > { %v5570_v34 = vmax.f32 %v5514_v26, %v5515_v20  ;;  %v5517_v22 = vadd.f32 %v6378_v29, %v8474_v27 }
 0x2e9   : > { %5602 = vst [vmem:[%s8482_s9 + $0x40] sm:$0xff] %v5570_v34  ;;  %v5571_v36 = vmax.f32 %v5516_v32, %v5517_v22  ;;  %v5313_v35 = vpop.f32.mrb[20].mxu0 }
 0x2ea   : > { %v6379_v28 = vadd.f32 %v5313_v35, %v8444_v25  ;;  %v5315_v38 = vpop.f32.mrb[21].mxu0 }
 0x2eb   : > { %5603 = vst [vmem:[%s8482_s9 + $0x48] sm:$0xff] %v5571_v36  ;;  %v6380_v52 = vadd.f32 %v5315_v38, %v8446_v31  ;;  %v5317_v39 = vpop.f32.mrb[22].mxu0 }
 0x2ec   : > { %v5518_v40 = vadd.f32 %v6379_v28, %v8471_v19  ;;  %v6381_v60 = vadd.f32 %v5317_v39, %v8448_v59  ;;  %v5319_v42 = vpop.f32.mrb[23].mxu0 }
 0x2ed   : > { %v5519_v41 = vadd.f32 %v6380_v52, %v8474_v27  ;;  %v6382_v43 = vadd.f32 %v5319_v42, %v8450_v1 }
 0x2ee   : > { %v5520_v44 = vadd.f32 %v6381_v60, %v8471_v19 }
 0x2ef   : > { %v5572_v45 = vmax.f32 %v5518_v40, %v5519_v41  ;;  %v5521_v25 = vadd.f32 %v6382_v43, %v8474_v27 }
 0x2f1   : > { %5604 = vst [vmem:[%s8482_s9 + $0x50] sm:$0xff] %v5572_v45  ;;  %v5573_v30 = vmax.f32 %v5520_v44, %v5521_v25  ;;  %v5323_v11 = vpop.f32.mrb[24].mxu0 }
 0x2f2   : > { %v6383_v31 = vadd.f32 %v5323_v11, %v8452_v33  ;;  %v5325_v4 = vpop.f32.mrb[25].mxu0 }
 0x2f3   : > { %5605 = vst [vmem:[%s8482_s9 + $0x58] sm:$0xff] %v5573_v30  ;;  %v6384_v59 = vadd.f32 %v5325_v4, %v8454_v37  ;;  %v5327_v50 = vpop.f32.mrb[26].mxu0 }
 0x2f4   : > { %v5522_v51 = vadd.f32 %v6383_v31, %v8471_v19  ;;  %v6385_v1 = vadd.f32 %v5327_v50, %v8456_v53  ;;  %v5329_v15 = vpop.f32.mrb[27].mxu0 }
 0x2f5   : > { %v5523_v54 = vadd.f32 %v6384_v59, %v8474_v27  ;;  %v6386_v2 = vadd.f32 %v5329_v15, %v8458_v0 }
 0x2f6   : > { %v5524_v46 = vadd.f32 %v6385_v1, %v8471_v19 }
 0x2f7   : > { %v5574_v58 = vmax.f32 %v5522_v51, %v5523_v54  ;;  %v5525_v33 = vadd.f32 %v6386_v2, %v8474_v27 }
 0x2f9   : > { %5606 = vst [vmem:[%s8482_s9 + $0x60] sm:$0xff] %v5574_v58  ;;  %v5575_v3 = vmax.f32 %v5524_v46, %v5525_v33  ;;  %v5333_v49 = vpop.f32.mrb[28].mxu0 }
 0x2fa   : > { %v6387_v37 = vadd.f32 %v5333_v49, %v8460_v47  ;;  %v5335_v7 = vpop.f32.mrb[29].mxu0 }
 0x2fb   : > { %5607 = vst [vmem:[%s8482_s9 + $0x68] sm:$0xff] %v5575_v3  ;;  %v6388_v53 = vadd.f32 %v5335_v7, %v8462_v13  ;;  %v5337_v56 = vpop.f32.mrb[30].mxu0 }
 0x2fc   : > { %v5526_v8 = vadd.f32 %v6387_v37, %v8471_v19  ;;  %v6389_v0 = vadd.f32 %v5337_v56, %v8464_v23  ;;  %v5339_v10 = vpop.f32.mrb[31].mxu0 }
 0x2fd   : > { %v5527_v57 = vadd.f32 %v6388_v53, %v8474_v27  ;;  %v6390_v16 = vadd.f32 %v5339_v10, %v8466_v48 }
 0x2fe   : > { %v5528_v17 = vadd.f32 %v6389_v0, %v8471_v19  ;;  %v2947_v62 = vpop.f32.mrb[32].mxu1 }
 0x2ff   : > { %v5576_v47 = vmax.f32 %v5526_v8, %v5527_v57  ;;  %v5529_v9 = vadd.f32 %v6390_v16, %v8474_v27  ;;  %v2949_v18 = vpop.f32.mrb[33].mxu1 }
 0x300   : > { %v2951_v55 = vpop.f32.mrb[34].mxu1 }
 0x301   : > { %5608 = vst [vmem:[%s8482_s9 + $0x70] sm:$0xff] %v5576_v47  ;;  %v5577_v13 = vmax.f32 %v5528_v17, %v5529_v9  ;;  %v5343_v6 = vpop.f32.mrb[32].mxu0  ;;  %v2953_v14 = vpop.f32.mrb[35].mxu1 }
 0x302   : > { %v6391_v12 = vadd.f32 %v5343_v6, %v2947_v62  ;;  %v5345_v23 = vpop.f32.mrb[33].mxu0 }
 0x303   : > { %5609 = vst [vmem:[%s8482_s9 + $0x78] sm:$0xff] %v5577_v13  ;;  %v6392_v21 = vadd.f32 %v5345_v23, %v2949_v18  ;;  %v5347_v61 = vpop.f32.mrb[34].mxu0 }
 0x304   : > { %v5530_v48 = vadd.f32 %v6391_v12, %v8471_v19  ;;  %v6393_v24 = vadd.f32 %v5347_v61, %v2951_v55  ;;  %v5349_v26 = vpop.f32.mrb[35].mxu0 }
 0x305   : > { %v5531_v63 = vadd.f32 %v6392_v21, %v8474_v27  ;;  %v6394_v5 = vadd.f32 %v5349_v26, %v2953_v14 }
 0x306   : > { %v5532_v20 = vadd.f32 %v6393_v24, %v8471_v19  ;;  %v2957_v29 = vpop.f32.mrb[36].mxu1 }
 0x307   : > { %v5578_v32 = vmax.f32 %v5530_v48, %v5531_v63  ;;  %v5533_v34 = vadd.f32 %v6394_v5, %v8474_v27  ;;  %v2959_v22 = vpop.f32.mrb[37].mxu1 }
 0x308   : > { %v2961_v36 = vpop.f32.mrb[38].mxu1 }
 0x309   : > { %5610 = vst [vmem:[%s8482_s9 + $0x80] sm:$0xff] %v5578_v32  ;;  %v5579_v35 = vmax.f32 %v5532_v20, %v5533_v34  ;;  %v5353_v28 = vpop.f32.mrb[36].mxu0  ;;  %v2963_v38 = vpop.f32.mrb[39].mxu1 }
 0x30a   : > { %v6395_v52 = vadd.f32 %v5353_v28, %v2957_v29  ;;  %v5355_v39 = vpop.f32.mrb[37].mxu0 }
 0x30b   : > { %5611 = vst [vmem:[%s8482_s9 + $0x88] sm:$0xff] %v5579_v35  ;;  %v6396_v40 = vadd.f32 %v5355_v39, %v2959_v22  ;;  %v5357_v60 = vpop.f32.mrb[38].mxu0 }
 0x30c   : > { %v5534_v42 = vadd.f32 %v6395_v52, %v8471_v19  ;;  %v6397_v41 = vadd.f32 %v5357_v60, %v2961_v36  ;;  %v5359_v43 = vpop.f32.mrb[39].mxu0 }
 0x30d   : > { %v5535_v44 = vadd.f32 %v6396_v40, %v8474_v27  ;;  %v6398_v45 = vadd.f32 %v5359_v43, %v2963_v38 }
 0x30e   : > { %v5536_v25 = vadd.f32 %v6397_v41, %v8471_v19  ;;  %v2967_v30 = vpop.f32.mrb[40].mxu1 }
 0x30f   : > { %v5580_v11 = vmax.f32 %v5534_v42, %v5535_v44  ;;  %v5537_v31 = vadd.f32 %v6398_v45, %v8474_v27  ;;  %v2969_v4 = vpop.f32.mrb[41].mxu1 }
 0x310   : > { %v2971_v59 = vpop.f32.mrb[42].mxu1 }
 0x311   : > { %5612 = vst [vmem:[%s8482_s9 + $0x90] sm:$0xff] %v5580_v11  ;;  %v5581_v50 = vmax.f32 %v5536_v25, %v5537_v31  ;;  %v5363_v51 = vpop.f32.mrb[40].mxu0  ;;  %v2973_v1 = vpop.f32.mrb[43].mxu1 }
 0x312   : > { %v6399_v15 = vadd.f32 %v5363_v51, %v2967_v30  ;;  %v5365_v54 = vpop.f32.mrb[41].mxu0 }
 0x313   : > { %5613 = vst [vmem:[%s8482_s9 + $0x98] sm:$0xff] %v5581_v50  ;;  %v6400_v2 = vadd.f32 %v5365_v54, %v2969_v4  ;;  %v5367_v46 = vpop.f32.mrb[42].mxu0 }
 0x314   : > { %v5538_v58 = vadd.f32 %v6399_v15, %v8471_v19  ;;  %v6401_v33 = vadd.f32 %v5367_v46, %v2971_v59  ;;  %v5369_v3 = vpop.f32.mrb[43].mxu0 }
 0x315   : > { %v5539_v49 = vadd.f32 %v6400_v2, %v8474_v27  ;;  %v6402_v37 = vadd.f32 %v5369_v3, %v2973_v1 }
 0x316   : > { %v5540_v7 = vadd.f32 %v6401_v33, %v8471_v19  ;;  %v2977_v53 = vpop.f32.mrb[44].mxu1 }
 0x317   : > { %v5582_v56 = vmax.f32 %v5538_v58, %v5539_v49  ;;  %v5541_v8 = vadd.f32 %v6402_v37, %v8474_v27  ;;  %v2979_v0 = vpop.f32.mrb[45].mxu1 }
 0x318   : > { %v2981_v10 = vpop.f32.mrb[46].mxu1 }
 0x319   : > { %5614 = vst [vmem:[%s8482_s9 + $0xa0] sm:$0xff] %v5582_v56  ;;  %v5583_v57 = vmax.f32 %v5540_v7, %v5541_v8  ;;  %v5373_v16 = vpop.f32.mrb[44].mxu0  ;;  %v2983_v17 = vpop.f32.mrb[47].mxu1 }
 0x31a   : > { %v6403_v62 = vadd.f32 %v5373_v16, %v2977_v53  ;;  %v5375_v47 = vpop.f32.mrb[45].mxu0 }
 0x31b   : > { %5615 = vst [vmem:[%s8482_s9 + $0xa8] sm:$0xff] %v5583_v57  ;;  %v6404_v9 = vadd.f32 %v5375_v47, %v2979_v0  ;;  %v5377_v18 = vpop.f32.mrb[46].mxu0 }
 0x31c   : > { %v5542_v55 = vadd.f32 %v6403_v62, %v8471_v19  ;;  %v6405_v13 = vadd.f32 %v5377_v18, %v2981_v10  ;;  %v5379_v6 = vpop.f32.mrb[47].mxu0 }
 0x31d   : > { %v5543_v14 = vadd.f32 %v6404_v9, %v8474_v27  ;;  %v6406_v12 = vadd.f32 %v5379_v6, %v2983_v17 }
 0x31e   : > { %v5544_v23 = vadd.f32 %v6405_v13, %v8471_v19  ;;  %v2987_v21 = vpop.f32.mrb[48].mxu1 }
 0x31f   : > { %v5584_v61 = vmax.f32 %v5542_v55, %v5543_v14  ;;  %v5545_v48 = vadd.f32 %v6406_v12, %v8474_v27  ;;  %v2989_v24 = vpop.f32.mrb[49].mxu1 }
 0x320   : > { %v2991_v26 = vpop.f32.mrb[50].mxu1 }
 0x321   : > { %5616 = vst [vmem:[%s8482_s9 + $0xb0] sm:$0xff] %v5584_v61  ;;  %v5585_v63 = vmax.f32 %v5544_v23, %v5545_v48  ;;  %v5383_v5 = vpop.f32.mrb[48].mxu0  ;;  %v2993_v20 = vpop.f32.mrb[51].mxu1 }
 0x322   : > { %v6407_v29 = vadd.f32 %v5383_v5, %v2987_v21  ;;  %v5385_v32 = vpop.f32.mrb[49].mxu0 }
 0x323   : > { %5617 = vst [vmem:[%s8482_s9 + $0xb8] sm:$0xff] %v5585_v63  ;;  %v6408_v34 = vadd.f32 %v5385_v32, %v2989_v24  ;;  %v5387_v22 = vpop.f32.mrb[50].mxu0 }
 0x324   : > { %v5546_v36 = vadd.f32 %v6407_v29, %v8471_v19  ;;  %v6409_v35 = vadd.f32 %v5387_v22, %v2991_v26  ;;  %v5389_v28 = vpop.f32.mrb[51].mxu0 }
 0x325   : > { %v5547_v38 = vadd.f32 %v6408_v34, %v8474_v27  ;;  %v6410_v52 = vadd.f32 %v5389_v28, %v2993_v20 }
 0x326   : > { %v5548_v39 = vadd.f32 %v6409_v35, %v8471_v19  ;;  %v2997_v40 = vpop.f32.mrb[52].mxu1 }
 0x327   : > { %v5586_v60 = vmax.f32 %v5546_v36, %v5547_v38  ;;  %v5549_v42 = vadd.f32 %v6410_v52, %v8474_v27  ;;  %v2999_v41 = vpop.f32.mrb[53].mxu1 }
 0x328   : > { %v3001_v43 = vpop.f32.mrb[54].mxu1 }
 0x329   : > { %5618 = vst [vmem:[%s8482_s9 + $0xc0] sm:$0xff] %v5586_v60  ;;  %v5587_v44 = vmax.f32 %v5548_v39, %v5549_v42  ;;  %v5393_v45 = vpop.f32.mrb[52].mxu0  ;;  %v3003_v25 = vpop.f32.mrb[55].mxu1 }
 0x32a   : > { %v6411_v30 = vadd.f32 %v5393_v45, %v2997_v40  ;;  %v5395_v11 = vpop.f32.mrb[53].mxu0 }
 0x32b   : > { %5619 = vst [vmem:[%s8482_s9 + $0xc8] sm:$0xff] %v5587_v44  ;;  %v6412_v31 = vadd.f32 %v5395_v11, %v2999_v41  ;;  %v5397_v4 = vpop.f32.mrb[54].mxu0 }
 0x32c   : > { %v5550_v59 = vadd.f32 %v6411_v30, %v8471_v19  ;;  %v6413_v50 = vadd.f32 %v5397_v4, %v3001_v43  ;;  %v5399_v51 = vpop.f32.mrb[55].mxu0 }
 0x32d   : > { %v5551_v1 = vadd.f32 %v6412_v31, %v8474_v27  ;;  %v6414_v15 = vadd.f32 %v5399_v51, %v3003_v25 }
 0x32e   : > { %v5552_v54 = vadd.f32 %v6413_v50, %v8471_v19  ;;  %v3007_v2 = vpop.f32.mrb[56].mxu1 }
 0x32f   : > { %v5588_v46 = vmax.f32 %v5550_v59, %v5551_v1  ;;  %v5553_v58 = vadd.f32 %v6414_v15, %v8474_v27  ;;  %v3009_v33 = vpop.f32.mrb[57].mxu1 }
 0x330   : > { %v3011_v3 = vpop.f32.mrb[58].mxu1 }
 0x331   : > { %5620 = vst [vmem:[%s8482_s9 + $0xd0] sm:$0xff] %v5588_v46  ;;  %v5589_v49 = vmax.f32 %v5552_v54, %v5553_v58  ;;  %v5403_v37 = vpop.f32.mrb[56].mxu0  ;;  %v3013_v7 = vpop.f32.mrb[59].mxu1 }
 0x332   : > { %v6415_v53 = vadd.f32 %v5403_v37, %v3007_v2  ;;  %v5405_v56 = vpop.f32.mrb[57].mxu0 }
 0x333   : > { %5621 = vst [vmem:[%s8482_s9 + $0xd8] sm:$0xff] %v5589_v49  ;;  %v6416_v8 = vadd.f32 %v5405_v56, %v3009_v33  ;;  %v5407_v0 = vpop.f32.mrb[58].mxu0 }
 0x334   : > { %v5554_v10 = vadd.f32 %v6415_v53, %v8471_v19  ;;  %v6417_v57 = vadd.f32 %v5407_v0, %v3011_v3  ;;  %v5409_v16 = vpop.f32.mrb[59].mxu0 }
 0x335   : > { %v5555_v17 = vadd.f32 %v6416_v8, %v8474_v27  ;;  %v6418_v62 = vadd.f32 %v5409_v16, %v3013_v7 }
 0x336   : > { %v5556_v47 = vadd.f32 %v6417_v57, %v8471_v19  ;;  %v3017_v9 = vpop.f32.mrb[60].mxu1 }
 0x337   : > { %v5590_v18 = vmax.f32 %v5554_v10, %v5555_v17  ;;  %v5557_v55 = vadd.f32 %v6418_v62, %v8474_v27  ;;  %v3019_v13 = vpop.f32.mrb[61].mxu1 }
 0x338   : > { %v3021_v6 = vpop.f32.mrb[62].mxu1 }
 0x339   : > { %5622 = vst [vmem:[%s8482_s9 + $0xe0] sm:$0xff] %v5590_v18  ;;  %v5591_v14 = vmax.f32 %v5556_v47, %v5557_v55  ;;  %v5413_v12 = vpop.f32.mrb[60].mxu0  ;;  %v3023_v23 = vpop.f32.mrb[63].mxu1 }
 0x33a   : > { %v6419_v21 = vadd.f32 %v5413_v12, %v3017_v9  ;;  %v5415_v61 = vpop.f32.mrb[61].mxu0 }
 0x33b   : > { %5623 = vst [vmem:[%s8482_s9 + $0xe8] sm:$0xff] %v5591_v14  ;;  %v6420_v48 = vadd.f32 %v5415_v61, %v3019_v13  ;;  %v5417_v24 = vpop.f32.mrb[62].mxu0 }
 0x33c   : > { %v5558_v26 = vadd.f32 %v6419_v21, %v8471_v19  ;;  %v6421_v63 = vadd.f32 %v5417_v24, %v3021_v6  ;;  %v5419_v5 = vpop.f32.mrb[63].mxu0 }
 0x33d   : > { %v5559_v20 = vadd.f32 %v6420_v48, %v8474_v27  ;;  %v6422_v29 = vadd.f32 %v5419_v5, %v3023_v23 }
 0x33e   : > { %v5560_v32 = vadd.f32 %v6421_v63, %v8471_v19 }
 0x33f   : > { %v5592_v34 = vmax.f32 %v5558_v26, %v5559_v20  ;;  %v5561_v22 = vadd.f32 %v6422_v29, %v8474_v27 }
 0x341   : > { %5624 = vst [vmem:[%s8482_s9 + $0xf0] sm:$0xff] %v5592_v34  ;;  %v5593_v36 = vmax.f32 %v5560_v32, %v5561_v22 }
 0x343   : > { %5625 = vst [vmem:[%s8482_s9 + $0xf8] sm:$0xff] %v5593_v36 }
 0x344   : > { %7007 = shalt.err (!%p7004_p5)
}
 0x345   : > { %s7008_s29 = scalar_lea.hbm %s8603_s21, 4096  ;;  %s7012_s5 = scalar_lea.hbm %s8660_s3, 8192 }
 0x346   : > { %p7009_p6 = scmp.ne.s32.totalorder %s8603_s21, %s7008_s29  ;;  %p7013_p10 = scmp.lt.u32.totalorder %s8603_s21, %s8660_s3 }
 0x347   : > { %p7014_p11 = scmp.lt.u32.totalorder %s7012_s5, %s7008_s29  ;;  %p7016_p13 = scmp.lt.u32.totalorder %s7008_s29, %s8603_s21 }
 0x348   : > { %p7010_p7 = pnand %p7009_p6, %p7138_p4 }
 0x349   : > { %p7015_p12 = por %p7014_p11, %p7013_p10 }
 0x34a   : > { %p7011_p9 = pneg %p7010_p7 }
 0x34b   : > { %p7017_p0 = por %p7016_p13, %p7015_p12 }
 0x34d   : > { %p7018_p1 = pnand %p7017_p0, %p7011_p9 }
 0x34f   : > { %7021 = shalt.err (!%p7018_p1)
}
 0x350   : > { %s7076_s8 = smov 128   ;;  %s7077_s9 = smov 8  }
 0x351   : > { %6872 = dma.vmem_to_hbm [thread:$0]  (%p7138_p4), %s8605_s11, 4096, %s8603_s21, %s8611_s15, %s7076_s8, %s7076_s8, %s7077_s9  }
 0x352 PF: > { %p6878_p2 = scmp.ge.s32.totalorder %s7072_s17, 2  ;;  %s5658_s10 = sand.u32 1, %s7052_s12  }
 0x353   : > { %s5659_s18 = scalar_lea.sflag [#allocation3], %s5658_s10 }
 0x354   : > { %p6875_p3 = pnand %p6878_p2, %p7145_p8 }
 0x356   : > { %7047 = dma.done.wait (!%p6875_p3), %s5659_s18, 4096  }
 0x357   : > { %7049 = vsyncadd (!%p6875_p3), %s5659_s18, 4294963200  ;;  %s16_s17 = sadd.s32 1, %s7072_s17   ;;  %s8667_s12 = smov %s7056_s13 }
 0x358   : > { %p13_p5 = scmp.ge.s32.totalorder %s16_s17, 4   ;;  %s8668_s13 = smov %s7060_s14 }
 0x359   : > { %s8669_s14 = smov %s7151_s25  ;;  %s8670_s15 = smov %s7068_s16 }
 0x35a   : > { %s8671_s16 = smov %s8673_s20  ;;  %15 = sbr.rel (!%p13_p5) target bundleno = 4 (0x4), region = 78 }
 0x361   :  { %5664 = vsyncpa [#allocation3], 1 }
 0x362   :  { %5666 = vsyncpa [#allocation3 + $0x1], 1 }

</bundles_post_ra>
